<compile_context>
chip_gen: v7x
topology: tpu7x:2x2x1
jax: 0.10.0
libtpu: 0.0.40
codegen_flags: <defaults>
</compile_context>

<pallas_src>
import functools

import jax
import jax.numpy as jnp
import numpy as np
from jax import lax
from jax.experimental import pallas as pl
from jax.experimental.pallas import tpu as pltpu


def _psa_block_kernel(x_ref, wqkv_ref, bqkv_ref, wpe_ref,
                      wproj_ref, bproj_ref, wffn1_ref, bffn1_ref,
                      wffn2_ref, bffn2_ref, o_ref, *,
                      num_heads: int, key_dim: int, head_dim: int,
                      H: int, W: int, shortcut: bool):
    """One batch element per grid step. Activations are (S, C), channels on lanes."""
    S = H * W
    C = num_heads * head_dim
    scale = float(key_dim) ** -0.5
    f32 = jnp.float32

    x2d = x_ref[0].astype(f32)                                           # (S, C)

    # ---- qkv: 1x1 conv == one (S,C)x(C,2C) MXU matmul (BN scale pre-folded) ----
    qkv = jnp.dot(x2d, wqkv_ref[...], preferred_element_type=f32) + bqkv_ref[...]  # (S, 2C)

    per_head = 2 * key_dim + head_dim
    attn_cols = []
    v_cols = []
    for h in range(num_heads):                     # static unroll, num_heads is small
        base = h * per_head
        q = qkv[:, base:base + key_dim]                                  # (S, kd)
        k = qkv[:, base + key_dim:base + 2 * key_dim]                    # (S, kd)
        v = qkv[:, base + 2 * key_dim:base + per_head]                   # (S, hd)
        # q @ k^T without materializing a transpose.
        logits = lax.dot_general(q, k, (((1,), (1,)), ((), ())),
                                 preferred_element_type=f32) * scale     # (S, S)
        m = jnp.max(logits, axis=-1, keepdims=True)
        p = jnp.exp(logits - m)
        p = p / jnp.sum(p, axis=-1, keepdims=True)                       # softmax(dim=-1)
        attn_cols.append(jnp.dot(p, v, preferred_element_type=f32))      # (S, hd)
        v_cols.append(v)
    attn_sp = jnp.concatenate(attn_cols, axis=-1)                        # (S, C)
    v_full = jnp.concatenate(v_cols, axis=-1)                            # (S, C)

    # ---- pe: 3x3 depthwise conv on v (pad=1), 9 VPU FMA taps, halo built in-register ----
    v_img = v_full.reshape(H, W, C)                                      # lane dim preserved
    zrow = jnp.zeros((1, W, C), f32)
    zcol = jnp.zeros((H + 2, 1, C), f32)
    vp = jnp.concatenate([zrow, v_img, zrow], axis=0)
    vp = jnp.concatenate([zcol, vp, zcol], axis=1)                       # (H+2, W+2, C)
    wpe = wpe_ref[...]                                                   # (3, 3, C), hoisted
    pe = jnp.zeros((H, W, C), f32)
    for kh in range(3):
        for kw in range(3):
            pe = pe + vp[kh:kh + H, kw:kw + W, :] * wpe[kh:kh + 1, kw:kw + 1, :]
    pe2d = pe.reshape(S, C)                                              # (S, C)

    # ---- proj 1x1 conv (pe-BN bias folded into bproj) + outer residual ----
    a = jnp.dot(attn_sp + pe2d, wproj_ref[...], preferred_element_type=f32) + bproj_ref[...]
    y = x2d + a if shortcut else a

    # ---- FFN: 1x1 conv + SiLU -> 1x1 conv (+ outer residual) ----
    fmid = jnp.dot(y, wffn1_ref[...], preferred_element_type=f32) + bffn1_ref[...]  # (S, 2C)
    fmid = fmid * jax.nn.sigmoid(fmid)                                   # SiLU
    fout = jnp.dot(fmid, wffn2_ref[...], preferred_element_type=f32) + bffn2_ref[...]
    out = y + fout if shortcut else fout

    o_ref[0] = out.astype(o_ref.dtype)


def _fold_bn(gamma, beta, mean, var, eps=1e-3):
    # ConvModule uses BatchNorm2d(eps=0.001); eval-mode fold to scale/bias.
    scale = gamma / jnp.sqrt(var + eps)
    bias = beta - mean * scale
    return scale, bias


def psa_block_pallas(x_nchw, p, *, num_heads=4, attn_ratio=0.5, shortcut=True):
    """x_nchw: (B, C, H, W) float32 (PyTorch convention). p: dict of conv/BN params."""
    B, C, H, W = x_nchw.shape
    S = H * W
    head_dim = C // num_heads
    key_dim = int(head_dim * attn_ratio)
    C2 = 2 * C

    # NCHW -> (B, S, C): channels on the lane dim for every 1x1-conv matmul.
    x_sc = jnp.transpose(x_nchw.reshape(B, C, S), (0, 2, 1)).astype(jnp.float32)

    def fold_1x1(w_oihw, bn):
        s, bias = _fold_bn(*bn)
        wm = jnp.transpose(w_oihw[:, :, 0, 0], (1, 0)) * s[None, :]      # (Cin, Cout)
        return wm.astype(jnp.float32), bias.reshape(1, -1).astype(jnp.float32)

    wqkv, bqkv = fold_1x1(p['qkv_w'], p['qkv_bn'])
    wproj, bproj = fold_1x1(p['proj_w'], p['proj_bn'])
    wffn1, bffn1 = fold_1x1(p['ffn1_w'], p['ffn1_bn'])
    wffn2, bffn2 = fold_1x1(p['ffn2_w'], p['ffn2_bn'])

    spe, bpe_v = _fold_bn(*p['pe_bn'])
    # depthwise (C, 1, 3, 3) -> (3, 3, C), BN scale folded per channel
    wpe = (jnp.transpose(p['pe_w'][:, 0, :, :], (1, 2, 0)) * spe[None, None, :]).astype(jnp.float32)
    # pe-BN bias is a per-channel constant added before proj: fold it through wproj.
    bproj = (bproj + jnp.dot(bpe_v.reshape(1, C).astype(jnp.float32), wproj)).astype(jnp.float32)

    kernel = functools.partial(_psa_block_kernel, num_heads=num_heads,
                               key_dim=key_dim, head_dim=head_dim,
                               H=H, W=W, shortcut=shortcut)

    def full(shape):
        return pl.BlockSpec(shape, lambda b: (0,) * len(shape))

    # Advisory cost estimate for the XLA scheduler.
    flops = B * (2 * S * C * C2                                             # qkv
                 + num_heads * (2 * S * S * key_dim + 2 * S * S * head_dim) # attention
                 + 2 * 9 * S * C                                            # pe (depthwise)
                 + 2 * S * C * C                                            # proj
                 + 2 * S * C * C2 + 2 * S * C2 * C)                         # ffn
    transcendentals = B * (num_heads * S * S + S * C2)
    weights = (wqkv, bqkv, wpe, wproj, bproj, wffn1, bffn1, wffn2, bffn2)
    bytes_accessed = 4 * (x_sc.size + B * S * C + sum(int(w.size) for w in weights))

    out_sc = pl.pallas_call(
        kernel,
        out_shape=jax.ShapeDtypeStruct((B, S, C), jnp.float32),
        grid=(B,),
        in_specs=[
            pl.BlockSpec((1, S, C), lambda b: (b, 0, 0)),   # per-batch activation strip
            full(wqkv.shape), full(bqkv.shape),
            full(wpe.shape),
            full(wproj.shape), full(bproj.shape),
            full(wffn1.shape), full(bffn1.shape),
            full(wffn2.shape), full(bffn2.shape),
        ],
        out_specs=pl.BlockSpec((1, S, C), lambda b: (b, 0, 0)),
        compiler_params=pltpu.CompilerParams(
            dimension_semantics=("parallel",),              # megacore: split batch across TCs
            vmem_limit_bytes=32 * 1024 * 1024),
        cost_estimate=pl.CostEstimate(flops=flops,
                                      transcendentals=transcendentals,
                                      bytes_accessed=bytes_accessed),
    )(x_sc, *weights)

    return jnp.transpose(out_sc, (0, 2, 1)).reshape(B, C, H, W)


# ----------------------------- pure-JAX reference ------------------------------
def _reference(x, p, *, num_heads=4, attn_ratio=0.5, shortcut=True):
    B, C, H, W = x.shape
    S = H * W
    hd = C // num_heads
    kd = int(hd * attn_ratio)
    scale = kd ** -0.5
    hp = lax.Precision.HIGHEST

    def conv1x1_bn(t, w, bn):
        y = lax.conv_general_dilated(t, w, (1, 1), 'VALID',
                                     dimension_numbers=('NCHW', 'OIHW', 'NCHW'),
                                     precision=hp)
        s, b = _fold_bn(*bn)
        return y * s[None, :, None, None] + b[None, :, None, None]

    def dwconv3x3_bn(t, w, bn):
        y = lax.conv_general_dilated(t, w, (1, 1), ((1, 1), (1, 1)),
                                     dimension_numbers=('NCHW', 'OIHW', 'NCHW'),
                                     feature_group_count=C, precision=hp)
        s, b = _fold_bn(*bn)
        return y * s[None, :, None, None] + b[None, :, None, None]

    qkv = conv1x1_bn(x, p['qkv_w'], p['qkv_bn'])                   # (B, 2C, H, W)
    qkv = qkv.reshape(B, num_heads, 2 * kd + hd, S)
    q, k, v = qkv[:, :, :kd], qkv[:, :, kd:2 * kd], qkv[:, :, 2 * kd:]
    attn = jnp.einsum('bhds,bhdt->bhst', q, k, precision=hp) * scale
    attn = jax.nn.softmax(attn, axis=-1)
    o = jnp.einsum('bhdt,bhst->bhds', v, attn, precision=hp).reshape(B, C, H, W)
    pe = dwconv3x3_bn(v.reshape(B, C, H, W), p['pe_w'], p['pe_bn'])
    a = conv1x1_bn(o + pe, p['proj_w'], p['proj_bn'])
    y = x + a if shortcut else a
    f = conv1x1_bn(y, p['ffn1_w'], p['ffn1_bn'])
    f = f * jax.nn.sigmoid(f)
    f2 = conv1x1_bn(f, p['ffn2_w'], p['ffn2_bn'])
    return y + f2 if shortcut else f2


if __name__ == "__main__":
    # PSABlock(in_dim=128, attn_ratio=0.5, num_heads=4, shortcut=True); x: (2, 128, 8, 8).
    # (Channels must be a multiple of num_heads with key_dim > 0, and C=128 keeps every
    #  load/store lane-dense; spatial kept small so S = H*W = 64.)
    B, C, H, W = 2, 128, 8, 8
    num_heads, attn_ratio, shortcut = 4, 0.5, True
    C2 = 2 * C

    key = jax.random.PRNGKey(0)
    ks = iter(jax.random.split(key, 32))

    def conv_w(k, o, i, kh, kw):
        fan_in = i * kh * kw
        return jax.random.normal(k, (o, i, kh, kw), jnp.float32) * (fan_in ** -0.5)

    def bn_params(c):
        g = 1.0 + 0.1 * jax.random.normal(next(ks), (c,), jnp.float32)
        b = 0.1 * jax.random.normal(next(ks), (c,), jnp.float32)
        m = 0.1 * jax.random.normal(next(ks), (c,), jnp.float32)
        v = 0.5 + jnp.abs(jax.random.normal(next(ks), (c,), jnp.float32)) * 0.5
        return (g, b, m, v)

    x = jax.random.normal(next(ks), (B, C, H, W), jnp.float32)

    p = {
        'qkv_w': conv_w(next(ks), C2, C, 1, 1),  'qkv_bn': bn_params(C2),
        'pe_w':  conv_w(next(ks), C, 1, 3, 3),   'pe_bn':  bn_params(C),
        'proj_w': conv_w(next(ks), C, C, 1, 1),  'proj_bn': bn_params(C),
        'ffn1_w': conv_w(next(ks), C2, C, 1, 1), 'ffn1_bn': bn_params(C2),
        'ffn2_w': conv_w(next(ks), C, C2, 1, 1), 'ffn2_bn': bn_params(C),
    }

    out = psa_block_pallas(x, p, num_heads=num_heads, attn_ratio=attn_ratio,
                           shortcut=shortcut)
    out = jax.block_until_ready(out)

    ref = jax.block_until_ready(
        _reference(x, p, num_heads=num_heads, attn_ratio=attn_ratio, shortcut=shortcut))

    assert out.shape == (B, C, H, W), out.shape
    np.testing.assert_allclose(np.asarray(out), np.asarray(ref), rtol=1e-3, atol=1e-3)

    print("KERNEL_OK")
</pallas_src>

<mosaic_0001>
module attributes {stable_mosaic.version = 11 : i64} {
  func.func @_psa_block_kernel(%arg0: i32, %arg1: memref<1x64x128xf32, #tpu.memory_space<vmem>>, %arg2: memref<128x256xf32, #tpu.memory_space<vmem>>, %arg3: memref<1x256xf32, #tpu.memory_space<vmem>>, %arg4: memref<3x3x128xf32, #tpu.memory_space<vmem>>, %arg5: memref<128x128xf32, #tpu.memory_space<vmem>>, %arg6: memref<1x128xf32, #tpu.memory_space<vmem>>, %arg7: memref<128x256xf32, #tpu.memory_space<vmem>>, %arg8: memref<1x256xf32, #tpu.memory_space<vmem>>, %arg9: memref<256x128xf32, #tpu.memory_space<vmem>>, %arg10: memref<1x128xf32, #tpu.memory_space<vmem>>, %arg11: memref<1x64x128xf32, #tpu.memory_space<vmem>>) attributes {dimension_semantics = [#tpu.dimension_semantics<parallel>], iteration_bounds = array<i64: 2>, scalar_prefetch = 0 : i64, scratch_operands = 0 : i64, tpu.core_type = #tpu.core_type<tc>, window_params = [{transform_indices = @transform_0, window_bounds = array<i64: 1, 64, 128>}, {pipeline_mode = #tpu.pipeline_mode<synchronous>, transform_indices = @transform_1, window_bounds = array<i64: 128, 256>}, {pipeline_mode = #tpu.pipeline_mode<synchronous>, transform_indices = @transform_2, window_bounds = array<i64: 1, 256>}, {pipeline_mode = #tpu.pipeline_mode<synchronous>, transform_indices = @transform_3, window_bounds = array<i64: 3, 3, 128>}, {pipeline_mode = #tpu.pipeline_mode<synchronous>, transform_indices = @transform_4, window_bounds = array<i64: 128, 128>}, {pipeline_mode = #tpu.pipeline_mode<synchronous>, transform_indices = @transform_5, window_bounds = array<i64: 1, 128>}, {pipeline_mode = #tpu.pipeline_mode<synchronous>, transform_indices = @transform_6, window_bounds = array<i64: 128, 256>}, {pipeline_mode = #tpu.pipeline_mode<synchronous>, transform_indices = @transform_7, window_bounds = array<i64: 1, 256>}, {pipeline_mode = #tpu.pipeline_mode<synchronous>, transform_indices = @transform_8, window_bounds = array<i64: 256, 128>}, {pipeline_mode = #tpu.pipeline_mode<synchronous>, transform_indices = @transform_9, window_bounds = array<i64: 1, 128>}, {transform_indices = @transform_10, window_bounds = array<i64: 1, 64, 128>}]} {
    %c0 = arith.constant 0 : index
    %c0_0 = arith.constant 0 : index
    %c0_1 = arith.constant 0 : index
    %0 = vector.load %arg1[%c0, %c0_0, %c0_1] : memref<1x64x128xf32, #tpu.memory_space<vmem>>, vector<1x64x128xf32>
    %1 = vector.shape_cast %0 : vector<1x64x128xf32> to vector<64x128xf32>
    %c0_2 = arith.constant 0 : index
    %c0_3 = arith.constant 0 : index
    %2 = vector.load %arg2[%c0_2, %c0_3] : memref<128x256xf32, #tpu.memory_space<vmem>>, vector<128x256xf32>
    %cst = arith.constant dense<0.000000e+00> : vector<64x256xf32>
    %3 = tpu.matmul %1, %2, %cst {dimension_numbers = #tpu.dot_dimension_numbers<[1], [0], [0], [1], [0, 0, 1, 1], [], []>} : vector<64x128xf32>, vector<128x256xf32>, vector<64x256xf32> -> vector<64x256xf32>
    %c0_4 = arith.constant 0 : index
    %c0_5 = arith.constant 0 : index
    %4 = vector.load %arg3[%c0_4, %c0_5] : memref<1x256xf32, #tpu.memory_space<vmem>>, vector<1x256xf32>
    %5 = vector.broadcast %4 : vector<1x256xf32> to vector<64x256xf32>
    %6 = arith.addf %3, %5 : vector<64x256xf32>
    %7 = vector.extract_strided_slice %6 {offsets = [0, 0], sizes = [64, 16], strides = [1, 1]} : vector<64x256xf32> to vector<64x16xf32>
    %8 = vector.extract_strided_slice %6 {offsets = [0, 16], sizes = [64, 16], strides = [1, 1]} : vector<64x256xf32> to vector<64x16xf32>
    %9 = vector.extract_strided_slice %6 {offsets = [0, 32], sizes = [64, 32], strides = [1, 1]} : vector<64x256xf32> to vector<64x32xf32>
    %cst_6 = arith.constant dense<0.000000e+00> : vector<64x64xf32>
    %10 = tpu.matmul %7, %8, %cst_6 {dimension_numbers = #tpu.dot_dimension_numbers<[1], [1], [0], [0], [0, 0, 1, 0], [], []>} : vector<64x16xf32>, vector<64x16xf32>, vector<64x64xf32> -> vector<64x64xf32>
    %cst_7 = arith.constant 2.500000e-01 : f32
    %11 = vector.broadcast %cst_7 : f32 to vector<64x64xf32>
    %12 = arith.mulf %10, %11 : vector<64x64xf32>
    %cst_8 = arith.constant dense<0xFF800000> : vector<64xf32>
    %13 = vector.multi_reduction <maximumf>, %12, %cst_8 [1] : vector<64x64xf32> to vector<64xf32>
    %14 = vector.shape_cast %13 : vector<64xf32> to vector<64x1xf32>
    %15 = vector.broadcast %14 : vector<64x1xf32> to vector<64x64xf32>
    %16 = arith.subf %12, %15 : vector<64x64xf32>
    %17 = math.exp %16 : vector<64x64xf32>
    %cst_9 = arith.constant dense<0.000000e+00> : vector<64xf32>
    %18 = vector.multi_reduction <add>, %17, %cst_9 [1] : vector<64x64xf32> to vector<64xf32>
    %19 = vector.shape_cast %18 : vector<64xf32> to vector<64x1xf32>
    %20 = vector.broadcast %19 : vector<64x1xf32> to vector<64x64xf32>
    %21 = arith.divf %17, %20 : vector<64x64xf32>
    %cst_10 = arith.constant dense<0.000000e+00> : vector<64x32xf32>
    %22 = tpu.matmul %21, %9, %cst_10 {dimension_numbers = #tpu.dot_dimension_numbers<[1], [0], [0], [1], [0, 0, 1, 1], [], []>} : vector<64x64xf32>, vector<64x32xf32>, vector<64x32xf32> -> vector<64x32xf32>
    %23 = vector.extract_strided_slice %6 {offsets = [0, 64], sizes = [64, 16], strides = [1, 1]} : vector<64x256xf32> to vector<64x16xf32>
    %24 = vector.extract_strided_slice %6 {offsets = [0, 80], sizes = [64, 16], strides = [1, 1]} : vector<64x256xf32> to vector<64x16xf32>
    %25 = vector.extract_strided_slice %6 {offsets = [0, 96], sizes = [64, 32], strides = [1, 1]} : vector<64x256xf32> to vector<64x32xf32>
    %cst_11 = arith.constant dense<0.000000e+00> : vector<64x64xf32>
    %26 = tpu.matmul %23, %24, %cst_11 {dimension_numbers = #tpu.dot_dimension_numbers<[1], [1], [0], [0], [0, 0, 1, 0], [], []>} : vector<64x16xf32>, vector<64x16xf32>, vector<64x64xf32> -> vector<64x64xf32>
    %cst_12 = arith.constant 2.500000e-01 : f32
    %27 = vector.broadcast %cst_12 : f32 to vector<64x64xf32>
    %28 = arith.mulf %26, %27 : vector<64x64xf32>
    %cst_13 = arith.constant dense<0xFF800000> : vector<64xf32>
    %29 = vector.multi_reduction <maximumf>, %28, %cst_13 [1] : vector<64x64xf32> to vector<64xf32>
    %30 = vector.shape_cast %29 : vector<64xf32> to vector<64x1xf32>
    %31 = vector.broadcast %30 : vector<64x1xf32> to vector<64x64xf32>
    %32 = arith.subf %28, %31 : vector<64x64xf32>
    %33 = math.exp %32 : vector<64x64xf32>
    %cst_14 = arith.constant dense<0.000000e+00> : vector<64xf32>
    %34 = vector.multi_reduction <add>, %33, %cst_14 [1] : vector<64x64xf32> to vector<64xf32>
    %35 = vector.shape_cast %34 : vector<64xf32> to vector<64x1xf32>
    %36 = vector.broadcast %35 : vector<64x1xf32> to vector<64x64xf32>
    %37 = arith.divf %33, %36 : vector<64x64xf32>
    %cst_15 = arith.constant dense<0.000000e+00> : vector<64x32xf32>
    %38 = tpu.matmul %37, %25, %cst_15 {dimension_numbers = #tpu.dot_dimension_numbers<[1], [0], [0], [1], [0, 0, 1, 1], [], []>} : vector<64x64xf32>, vector<64x32xf32>, vector<64x32xf32> -> vector<64x32xf32>
    %39 = vector.extract_strided_slice %6 {offsets = [0, 128], sizes = [64, 16], strides = [1, 1]} : vector<64x256xf32> to vector<64x16xf32>
    %40 = vector.extract_strided_slice %6 {offsets = [0, 144], sizes = [64, 16], strides = [1, 1]} : vector<64x256xf32> to vector<64x16xf32>
    %41 = vector.extract_strided_slice %6 {offsets = [0, 160], sizes = [64, 32], strides = [1, 1]} : vector<64x256xf32> to vector<64x32xf32>
    %cst_16 = arith.constant dense<0.000000e+00> : vector<64x64xf32>
    %42 = tpu.matmul %39, %40, %cst_16 {dimension_numbers = #tpu.dot_dimension_numbers<[1], [1], [0], [0], [0, 0, 1, 0], [], []>} : vector<64x16xf32>, vector<64x16xf32>, vector<64x64xf32> -> vector<64x64xf32>
    %cst_17 = arith.constant 2.500000e-01 : f32
    %43 = vector.broadcast %cst_17 : f32 to vector<64x64xf32>
    %44 = arith.mulf %42, %43 : vector<64x64xf32>
    %cst_18 = arith.constant dense<0xFF800000> : vector<64xf32>
    %45 = vector.multi_reduction <maximumf>, %44, %cst_18 [1] : vector<64x64xf32> to vector<64xf32>
    %46 = vector.shape_cast %45 : vector<64xf32> to vector<64x1xf32>
    %47 = vector.broadcast %46 : vector<64x1xf32> to vector<64x64xf32>
    %48 = arith.subf %44, %47 : vector<64x64xf32>
    %49 = math.exp %48 : vector<64x64xf32>
    %cst_19 = arith.constant dense<0.000000e+00> : vector<64xf32>
    %50 = vector.multi_reduction <add>, %49, %cst_19 [1] : vector<64x64xf32> to vector<64xf32>
    %51 = vector.shape_cast %50 : vector<64xf32> to vector<64x1xf32>
    %52 = vector.broadcast %51 : vector<64x1xf32> to vector<64x64xf32>
    %53 = arith.divf %49, %52 : vector<64x64xf32>
    %cst_20 = arith.constant dense<0.000000e+00> : vector<64x32xf32>
    %54 = tpu.matmul %53, %41, %cst_20 {dimension_numbers = #tpu.dot_dimension_numbers<[1], [0], [0], [1], [0, 0, 1, 1], [], []>} : vector<64x64xf32>, vector<64x32xf32>, vector<64x32xf32> -> vector<64x32xf32>
    %55 = vector.extract_strided_slice %6 {offsets = [0, 192], sizes = [64, 16], strides = [1, 1]} : vector<64x256xf32> to vector<64x16xf32>
    %56 = vector.extract_strided_slice %6 {offsets = [0, 208], sizes = [64, 16], strides = [1, 1]} : vector<64x256xf32> to vector<64x16xf32>
    %57 = vector.extract_strided_slice %6 {offsets = [0, 224], sizes = [64, 32], strides = [1, 1]} : vector<64x256xf32> to vector<64x32xf32>
    %cst_21 = arith.constant dense<0.000000e+00> : vector<64x64xf32>
    %58 = tpu.matmul %55, %56, %cst_21 {dimension_numbers = #tpu.dot_dimension_numbers<[1], [1], [0], [0], [0, 0, 1, 0], [], []>} : vector<64x16xf32>, vector<64x16xf32>, vector<64x64xf32> -> vector<64x64xf32>
    %cst_22 = arith.constant 2.500000e-01 : f32
    %59 = vector.broadcast %cst_22 : f32 to vector<64x64xf32>
    %60 = arith.mulf %58, %59 : vector<64x64xf32>
    %cst_23 = arith.constant dense<0xFF800000> : vector<64xf32>
    %61 = vector.multi_reduction <maximumf>, %60, %cst_23 [1] : vector<64x64xf32> to vector<64xf32>
    %62 = vector.shape_cast %61 : vector<64xf32> to vector<64x1xf32>
    %63 = vector.broadcast %62 : vector<64x1xf32> to vector<64x64xf32>
    %64 = arith.subf %60, %63 : vector<64x64xf32>
    %65 = math.exp %64 : vector<64x64xf32>
    %cst_24 = arith.constant dense<0.000000e+00> : vector<64xf32>
    %66 = vector.multi_reduction <add>, %65, %cst_24 [1] : vector<64x64xf32> to vector<64xf32>
    %67 = vector.shape_cast %66 : vector<64xf32> to vector<64x1xf32>
    %68 = vector.broadcast %67 : vector<64x1xf32> to vector<64x64xf32>
    %69 = arith.divf %65, %68 : vector<64x64xf32>
    %cst_25 = arith.constant dense<0.000000e+00> : vector<64x32xf32>
    %70 = tpu.matmul %69, %57, %cst_25 {dimension_numbers = #tpu.dot_dimension_numbers<[1], [0], [0], [1], [0, 0, 1, 1], [], []>} : vector<64x64xf32>, vector<64x32xf32>, vector<64x32xf32> -> vector<64x32xf32>
    %71 = tpu.concatenate %22, %38, %54, %70 in 1 : vector<64x32xf32>, vector<64x32xf32>, vector<64x32xf32>, vector<64x32xf32> -> vector<64x128xf32>
    %72 = tpu.concatenate %9, %25, %41, %57 in 1 : vector<64x32xf32>, vector<64x32xf32>, vector<64x32xf32>, vector<64x32xf32> -> vector<64x128xf32>
    %73 = vector.shape_cast %72 : vector<64x128xf32> to vector<8x8x128xf32>
    %cst_26 = arith.constant 0.000000e+00 : f32
    %74 = vector.broadcast %cst_26 : f32 to vector<1x8x128xf32>
    %cst_27 = arith.constant 0.000000e+00 : f32
    %75 = vector.broadcast %cst_27 : f32 to vector<10x1x128xf32>
    %76 = tpu.concatenate %74, %73, %74 in 0 : vector<1x8x128xf32>, vector<8x8x128xf32>, vector<1x8x128xf32> -> vector<10x8x128xf32>
    %77 = tpu.concatenate %75, %76, %75 in 1 : vector<10x1x128xf32>, vector<10x8x128xf32>, vector<10x1x128xf32> -> vector<10x10x128xf32>
    %c0_28 = arith.constant 0 : index
    %c0_29 = arith.constant 0 : index
    %c0_30 = arith.constant 0 : index
    %78 = vector.load %arg4[%c0_28, %c0_29, %c0_30] : memref<3x3x128xf32, #tpu.memory_space<vmem>>, vector<3x3x128xf32>
    %cst_31 = arith.constant 0.000000e+00 : f32
    %79 = vector.broadcast %cst_31 : f32 to vector<8x8x128xf32>
    %80 = vector.extract_strided_slice %77 {offsets = [0, 0, 0], sizes = [8, 8, 128], strides = [1, 1, 1]} : vector<10x10x128xf32> to vector<8x8x128xf32>
    %81 = vector.extract_strided_slice %78 {offsets = [0, 0, 0], sizes = [1, 1, 128], strides = [1, 1, 1]} : vector<3x3x128xf32> to vector<1x1x128xf32>
    %82 = vector.broadcast %81 : vector<1x1x128xf32> to vector<8x8x128xf32>
    %83 = arith.mulf %80, %82 : vector<8x8x128xf32>
    %84 = arith.addf %79, %83 : vector<8x8x128xf32>
    %85 = vector.extract_strided_slice %77 {offsets = [0, 1, 0], sizes = [8, 8, 128], strides = [1, 1, 1]} : vector<10x10x128xf32> to vector<8x8x128xf32>
    %86 = vector.extract_strided_slice %78 {offsets = [0, 1, 0], sizes = [1, 1, 128], strides = [1, 1, 1]} : vector<3x3x128xf32> to vector<1x1x128xf32>
    %87 = vector.broadcast %86 : vector<1x1x128xf32> to vector<8x8x128xf32>
    %88 = arith.mulf %85, %87 : vector<8x8x128xf32>
    %89 = arith.addf %84, %88 : vector<8x8x128xf32>
    %90 = vector.extract_strided_slice %77 {offsets = [0, 2, 0], sizes = [8, 8, 128], strides = [1, 1, 1]} : vector<10x10x128xf32> to vector<8x8x128xf32>
    %91 = vector.extract_strided_slice %78 {offsets = [0, 2, 0], sizes = [1, 1, 128], strides = [1, 1, 1]} : vector<3x3x128xf32> to vector<1x1x128xf32>
    %92 = vector.broadcast %91 : vector<1x1x128xf32> to vector<8x8x128xf32>
    %93 = arith.mulf %90, %92 : vector<8x8x128xf32>
    %94 = arith.addf %89, %93 : vector<8x8x128xf32>
    %95 = vector.extract_strided_slice %77 {offsets = [1, 0, 0], sizes = [8, 8, 128], strides = [1, 1, 1]} : vector<10x10x128xf32> to vector<8x8x128xf32>
    %96 = vector.extract_strided_slice %78 {offsets = [1, 0, 0], sizes = [1, 1, 128], strides = [1, 1, 1]} : vector<3x3x128xf32> to vector<1x1x128xf32>
    %97 = vector.broadcast %96 : vector<1x1x128xf32> to vector<8x8x128xf32>
    %98 = arith.mulf %95, %97 : vector<8x8x128xf32>
    %99 = arith.addf %94, %98 : vector<8x8x128xf32>
    %100 = vector.extract_strided_slice %77 {offsets = [1, 1, 0], sizes = [8, 8, 128], strides = [1, 1, 1]} : vector<10x10x128xf32> to vector<8x8x128xf32>
    %101 = vector.extract_strided_slice %78 {offsets = [1, 1, 0], sizes = [1, 1, 128], strides = [1, 1, 1]} : vector<3x3x128xf32> to vector<1x1x128xf32>
    %102 = vector.broadcast %101 : vector<1x1x128xf32> to vector<8x8x128xf32>
    %103 = arith.mulf %100, %102 : vector<8x8x128xf32>
    %104 = arith.addf %99, %103 : vector<8x8x128xf32>
    %105 = vector.extract_strided_slice %77 {offsets = [1, 2, 0], sizes = [8, 8, 128], strides = [1, 1, 1]} : vector<10x10x128xf32> to vector<8x8x128xf32>
    %106 = vector.extract_strided_slice %78 {offsets = [1, 2, 0], sizes = [1, 1, 128], strides = [1, 1, 1]} : vector<3x3x128xf32> to vector<1x1x128xf32>
    %107 = vector.broadcast %106 : vector<1x1x128xf32> to vector<8x8x128xf32>
    %108 = arith.mulf %105, %107 : vector<8x8x128xf32>
    %109 = arith.addf %104, %108 : vector<8x8x128xf32>
    %110 = vector.extract_strided_slice %77 {offsets = [2, 0, 0], sizes = [8, 8, 128], strides = [1, 1, 1]} : vector<10x10x128xf32> to vector<8x8x128xf32>
    %111 = vector.extract_strided_slice %78 {offsets = [2, 0, 0], sizes = [1, 1, 128], strides = [1, 1, 1]} : vector<3x3x128xf32> to vector<1x1x128xf32>
    %112 = vector.broadcast %111 : vector<1x1x128xf32> to vector<8x8x128xf32>
    %113 = arith.mulf %110, %112 : vector<8x8x128xf32>
    %114 = arith.addf %109, %113 : vector<8x8x128xf32>
    %115 = vector.extract_strided_slice %77 {offsets = [2, 1, 0], sizes = [8, 8, 128], strides = [1, 1, 1]} : vector<10x10x128xf32> to vector<8x8x128xf32>
    %116 = vector.extract_strided_slice %78 {offsets = [2, 1, 0], sizes = [1, 1, 128], strides = [1, 1, 1]} : vector<3x3x128xf32> to vector<1x1x128xf32>
    %117 = vector.broadcast %116 : vector<1x1x128xf32> to vector<8x8x128xf32>
    %118 = arith.mulf %115, %117 : vector<8x8x128xf32>
    %119 = arith.addf %114, %118 : vector<8x8x128xf32>
    %120 = vector.extract_strided_slice %77 {offsets = [2, 2, 0], sizes = [8, 8, 128], strides = [1, 1, 1]} : vector<10x10x128xf32> to vector<8x8x128xf32>
    %121 = vector.extract_strided_slice %78 {offsets = [2, 2, 0], sizes = [1, 1, 128], strides = [1, 1, 1]} : vector<3x3x128xf32> to vector<1x1x128xf32>
    %122 = vector.broadcast %121 : vector<1x1x128xf32> to vector<8x8x128xf32>
    %123 = arith.mulf %120, %122 : vector<8x8x128xf32>
    %124 = arith.addf %119, %123 : vector<8x8x128xf32>
    %125 = vector.shape_cast %124 : vector<8x8x128xf32> to vector<64x128xf32>
    %126 = arith.addf %71, %125 : vector<64x128xf32>
    %c0_32 = arith.constant 0 : index
    %c0_33 = arith.constant 0 : index
    %127 = vector.load %arg5[%c0_32, %c0_33] : memref<128x128xf32, #tpu.memory_space<vmem>>, vector<128x128xf32>
    %cst_34 = arith.constant dense<0.000000e+00> : vector<64x128xf32>
    %128 = tpu.matmul %126, %127, %cst_34 {dimension_numbers = #tpu.dot_dimension_numbers<[1], [0], [0], [1], [0, 0, 1, 1], [], []>} : vector<64x128xf32>, vector<128x128xf32>, vector<64x128xf32> -> vector<64x128xf32>
    %c0_35 = arith.constant 0 : index
    %c0_36 = arith.constant 0 : index
    %129 = vector.load %arg6[%c0_35, %c0_36] : memref<1x128xf32, #tpu.memory_space<vmem>>, vector<1x128xf32>
    %130 = vector.broadcast %129 : vector<1x128xf32> to vector<64x128xf32>
    %131 = arith.addf %128, %130 : vector<64x128xf32>
    %132 = arith.addf %1, %131 : vector<64x128xf32>
    %c0_37 = arith.constant 0 : index
    %c0_38 = arith.constant 0 : index
    %133 = vector.load %arg7[%c0_37, %c0_38] : memref<128x256xf32, #tpu.memory_space<vmem>>, vector<128x256xf32>
    %cst_39 = arith.constant dense<0.000000e+00> : vector<64x256xf32>
    %134 = tpu.matmul %132, %133, %cst_39 {dimension_numbers = #tpu.dot_dimension_numbers<[1], [0], [0], [1], [0, 0, 1, 1], [], []>} : vector<64x128xf32>, vector<128x256xf32>, vector<64x256xf32> -> vector<64x256xf32>
    %c0_40 = arith.constant 0 : index
    %c0_41 = arith.constant 0 : index
    %135 = vector.load %arg8[%c0_40, %c0_41] : memref<1x256xf32, #tpu.memory_space<vmem>>, vector<1x256xf32>
    %136 = vector.broadcast %135 : vector<1x256xf32> to vector<64x256xf32>
    %137 = arith.addf %134, %136 : vector<64x256xf32>
    %138 = arith.negf %137 : vector<64x256xf32>
    %139 = math.exp %138 : vector<64x256xf32>
    %cst_42 = arith.constant 1.000000e+00 : f32
    %140 = vector.broadcast %cst_42 : f32 to vector<64x256xf32>
    %141 = arith.addf %140, %139 : vector<64x256xf32>
    %142 = arith.divf %140, %141 : vector<64x256xf32>
    %143 = arith.mulf %137, %142 : vector<64x256xf32>
    %c0_43 = arith.constant 0 : index
    %c0_44 = arith.constant 0 : index
    %144 = vector.load %arg9[%c0_43, %c0_44] : memref<256x128xf32, #tpu.memory_space<vmem>>, vector<256x128xf32>
    %cst_45 = arith.constant dense<0.000000e+00> : vector<64x128xf32>
    %145 = tpu.matmul %143, %144, %cst_45 {dimension_numbers = #tpu.dot_dimension_numbers<[1], [0], [0], [1], [0, 0, 1, 1], [], []>} : vector<64x256xf32>, vector<256x128xf32>, vector<64x128xf32> -> vector<64x128xf32>
    %c0_46 = arith.constant 0 : index
    %c0_47 = arith.constant 0 : index
    %146 = vector.load %arg10[%c0_46, %c0_47] : memref<1x128xf32, #tpu.memory_space<vmem>>, vector<1x128xf32>
    %147 = vector.broadcast %146 : vector<1x128xf32> to vector<64x128xf32>
    %148 = arith.addf %145, %147 : vector<64x128xf32>
    %149 = arith.addf %132, %148 : vector<64x128xf32>
    %c0_48 = arith.constant 0 : index
    %c0_49 = arith.constant 0 : index
    %c0_50 = arith.constant 0 : index
    %150 = vector.load %arg11[%c0_48, %c0_49, %c0_50] : memref<1x64x128xf32, #tpu.memory_space<vmem>>, vector<1x64x128xf32>
    %151 = vector.shape_cast %150 : vector<1x64x128xf32> to vector<64x128xf32>
    %152 = vector.shape_cast %149 : vector<64x128xf32> to vector<1x64x128xf32>
    tpu.vector_store %arg11[%c0_48, %c0_49, %c0_50], %152 {strides = array<i32>} : memref<1x64x128xf32, #tpu.memory_space<vmem>>, vector<1x64x128xf32>,
    return
  }
  func.func @transform_0(%arg0: i32) -> (i32, i32, i32) {
    %c0_i32 = arith.constant 0 : i32
    %c0_i32_0 = arith.constant 0 : i32
    %c0_i32_1 = arith.constant 0 : i32
    return %arg0, %c0_i32, %c0_i32_0 : i32, i32, i32
  }
  func.func @transform_1(%arg0: i32) -> (i32, i32) {
    %c0_i32 = arith.constant 0 : i32
    %c0_i32_0 = arith.constant 0 : i32
    %c0_i32_1 = arith.constant 0 : i32
    return %c0_i32, %c0_i32_0 : i32, i32
  }
  func.func @transform_2(%arg0: i32) -> (i32, i32) {
    %c0_i32 = arith.constant 0 : i32
    %c0_i32_0 = arith.constant 0 : i32
    %c0_i32_1 = arith.constant 0 : i32
    return %c0_i32, %c0_i32_0 : i32, i32
  }
  func.func @transform_3(%arg0: i32) -> (i32, i32, i32) {
    %c0_i32 = arith.constant 0 : i32
    %c0_i32_0 = arith.constant 0 : i32
    %c0_i32_1 = arith.constant 0 : i32
    %c0_i32_2 = arith.constant 0 : i32
    return %c0_i32, %c0_i32_0, %c0_i32_1 : i32, i32, i32
  }
  func.func @transform_4(%arg0: i32) -> (i32, i32) {
    %c0_i32 = arith.constant 0 : i32
    %c0_i32_0 = arith.constant 0 : i32
    %c0_i32_1 = arith.constant 0 : i32
    return %c0_i32, %c0_i32_0 : i32, i32
  }
  func.func @transform_5(%arg0: i32) -> (i32, i32) {
    %c0_i32 = arith.constant 0 : i32
    %c0_i32_0 = arith.constant 0 : i32
    %c0_i32_1 = arith.constant 0 : i32
    return %c0_i32, %c0_i32_0 : i32, i32
  }
  func.func @transform_6(%arg0: i32) -> (i32, i32) {
    %c0_i32 = arith.constant 0 : i32
    %c0_i32_0 = arith.constant 0 : i32
    %c0_i32_1 = arith.constant 0 : i32
    return %c0_i32, %c0_i32_0 : i32, i32
  }
  func.func @transform_7(%arg0: i32) -> (i32, i32) {
    %c0_i32 = arith.constant 0 : i32
    %c0_i32_0 = arith.constant 0 : i32
    %c0_i32_1 = arith.constant 0 : i32
    return %c0_i32, %c0_i32_0 : i32, i32
  }
  func.func @transform_8(%arg0: i32) -> (i32, i32) {
    %c0_i32 = arith.constant 0 : i32
    %c0_i32_0 = arith.constant 0 : i32
    %c0_i32_1 = arith.constant 0 : i32
    return %c0_i32, %c0_i32_0 : i32, i32
  }
  func.func @transform_9(%arg0: i32) -> (i32, i32) {
    %c0_i32 = arith.constant 0 : i32
    %c0_i32_0 = arith.constant 0 : i32
    %c0_i32_1 = arith.constant 0 : i32
    return %c0_i32, %c0_i32_0 : i32, i32
  }
  func.func @transform_10(%arg0: i32) -> (i32, i32, i32) {
    %c0_i32 = arith.constant 0 : i32
    %c0_i32_0 = arith.constant 0 : i32
    %c0_i32_1 = arith.constant 0 : i32
    return %arg0, %c0_i32, %c0_i32_0 : i32, i32, i32
  }
}

</mosaic_0001>

<bundles_post_ra>
// kernel: tpu_custom_call.1
= control target key start
LH: loop header
LB: loop body
LE: loop exit
PB: predicated region body
PF: predicated region fallthrough
CT: control target
= control target key end

     0   :  { %s7094_s0 = inlined_call_operand.hbm [shape: f32[2,64,128], index: 0, kind: input, shape index: {}]   ;;  %s7095_s1 = inlined_call_operand.hbm [shape: f32[128,256], index: 1, kind: input, shape index: {}]   ;;  %s7096_s2 = inlined_call_operand.vmem [shape: f32[1,256], index: 2, kind: input, shape index: {}]   ;;  %s7097_s3 = inlined_call_operand.hbm [shape: f32[3,3,128], index: 3, kind: input, shape index: {}]   ;;  %s7098_s4 = inlined_call_operand.hbm [shape: f32[128,128], index: 4, kind: input, shape index: {}]   ;;  %s7099_s5 = inlined_call_operand.vmem [shape: f32[1,128], index: 5, kind: input, shape index: {}]   ;;  %s7100_s6 = inlined_call_operand.hbm [shape: f32[128,256], index: 6, kind: input, shape index: {}]   ;;  %s7101_s7 = inlined_call_operand.vmem [shape: f32[1,256], index: 7, kind: input, shape index: {}]   ;;  %s7102_s8 = inlined_call_operand.hbm [shape: f32[256,128], index: 8, kind: input, shape index: {}]   ;;  %s7103_s9 = inlined_call_operand.vmem [shape: f32[1,128], index: 9, kind: input, shape index: {}]   ;;  %s7104_s10 = inlined_call_operand.hbm [shape: f32[2,64,128], index: 10, kind: output, shape index: {}]  }
   0x1   :  { %7134 = sst [smem:[#allocation43_spill]] %s7095_s1 }
   0x2   :  { %7135 = sst [smem:[#allocation44_spill]] %s7098_s4 }
   0x3   :  { %7136 = sst [smem:[#allocation45_spill]] %s7103_s9 }
   0x4   :  { %7137 = sst [smem:[#allocation46_spill]] %s7104_s10 }
   0x5   :  { %15 = vsyncpa [#allocation3], 0 }
   0x6   :  { %17 = vsyncpa [#allocation3 + $0x1], 0 }
   0x7   :  { %18 = vsyncpa [#allocation6], 0 }
   0x8   :  { %19 = vsyncpa [#allocation9], 0 }
   0x9   :  { %20 = vsyncpa [#allocation12], 0 }
   0xa   :  { %21 = vsyncpa [#allocation4], 0 }
   0xb   :  { %23 = vsyncpa [#allocation4 + $0x1], 0  ;;  %s5364_s13 = smov 0   ;;  %s5366_s14 = smov 0  }
   0xc   :  { %s5368_s15 = smov 0   ;;  %s5370_s16 = smov 0  }
   0xd LB: > { %s5288_s17 = smov [#allocation5]   ;;  %s5385_s19 = sadd.s32 4294967295, %s5286_s16   ;;  %s5286_s16 = sphi %s5370_s16, %s7218_s16   ;;  %s5282_s15 = sphi %s5368_s15, %s7217_s15   ;;  %s5278_s14 = sphi %s5366_s14, %s7216_s14   ;;  %s5274_s13 = sphi %s5364_s13, %s7215_s13  }
   0xe   : > { %s287_s18 = sshll.u32 %s5288_s17, 4  ;;  %p3704_p0 = scmp.ge.s32.totalorder %s5286_s16, 1  ;;  %s5390_s18 = int_to_ptr.vmem [resolvable:$true] %s287_s18 }
   0xf   : > { %p7107_p1 = scmp.eq.s32.totalorder %s5385_s19, 0  ;;  %p275_p2 = scmp.lt.s32.totalorder %s5286_s16, 3 }
  0x10   : > { %s5289_s21 = smov [#allocation8]   ;;  %s5290_s24 = smov [#allocation7]  }
  0x11   : > { %p5392_p3 = pnand %p3704_p0, %p275_p2  ;;  %s316_s22 = sshll.u32 %s5289_s21, 4  ;;  %s5405_s22 = int_to_ptr.vmem [resolvable:$true] %s316_s22 }
  0x12   : > { %s5407_s25 = sshll.u32 %s5290_s24, 4  ;;  %s7140_s1 = sld [smem:[#allocation43_spill]]  ;;  %s304_s25 = int_to_ptr.vmem [resolvable:$true] %s5407_s25 }
  0x13   : > { %s7138_s20 = scalar_select %p5392_p3, 1, 0 }
  0x14   : > { %p4631_p5 = pneg %p5392_p3 }
  0x16   : > { %p5401_p6 = pnand %p4631_p5, %p7107_p1 }
  0x18   : > { %s5038_s28 = scalar_lea.hbm %s7140_s1, 4096  ;;  %p5417_p8 = pneg %p5401_p6 }
  0x19   : > { %p5039_p7 = scmp.ne.s32.totalorder %s7140_s1, %s5038_s28  ;;  %p5045_p11 = scmp.lt.u32.totalorder %s5038_s28, %s7140_s1 }
  0x1b   : > { %p5041_p9 = pnand %p5417_p8, %p5039_p7 }
  0x1d   : > { %p5042_p10 = pneg %p5041_p9 }
  0x1f   : > { %p5047_p12 = pnand %p5045_p11, %p5042_p10 }
  0x21   : > { %5050 = shalt.err (!%p5047_p12)
}
  0x22   : > { %s5051_s21 = scalar_lea.vmem %s5390_s18, 4096  ;;  %p5059_p5 = scmp.lt.s32.totalorder %s5390_s18, %s5390_s18 }
  0x23   : > { %p5052_p13 = scmp.ne.s32.totalorder %s5390_s18, %s5051_s21  ;;  %p5060_p4 = scmp.lt.s32.totalorder %s5051_s21, %s5051_s21 }
  0x25   : > { %p5054_p0 = pnand %p5052_p13, %p5417_p8  ;;  %p5061_p7 = por %p5060_p4, %p5059_p5 }
  0x27   : > { %p5055_p2 = pneg %p5054_p0 }
  0x29   : > { %p5062_p9 = pnand %p5061_p7, %p5055_p2 }
  0x2b   : > { %5065 = shalt.err (!%p5062_p9)
}
  0x2c   : > { %s7106_s24 = smov 256   ;;  %s7113_s26 = smov 16  }
  0x2d   : > { %4634 = dma.hbm_to_vmem [thread:$0]  (!%p5401_p6), %s7140_s1, 4096, %s5390_s18, [#allocation6], %s7106_s24, %s7106_s24, %s7113_s26  }
  0x2e   : > { %s7142_s4 = sld [smem:[#allocation44_spill]] }
  0x34   : > { %s5066_s12 = scalar_lea.hbm %s7142_s4, 2048 }
  0x35   : > { %p5067_p4 = scmp.ne.s32.totalorder %s7142_s4, %s5066_s12  ;;  %p5073_p12 = scmp.lt.u32.totalorder %s5066_s12, %s7142_s4 }
  0x37   : > { %p5069_p10 = pnand %p5067_p4, %p5417_p8 }
  0x39   : > { %p5070_p11 = pneg %p5069_p10 }
  0x3b   : > { %p5075_p13 = pnand %p5073_p12, %p5070_p11 }
  0x3d   : > { %5078 = shalt.err (!%p5075_p13)
}
  0x3e   : > { %s5079_s18 = scalar_lea.vmem %s5405_s22, 2048  ;;  %p5087_p7 = scmp.lt.s32.totalorder %s5405_s22, %s5405_s22 }
  0x3f   : > { %p5080_p0 = scmp.ne.s32.totalorder %s5405_s22, %s5079_s18  ;;  %p5088_p9 = scmp.lt.s32.totalorder %s5079_s18, %s5079_s18 }
  0x41   : > { %p5082_p2 = pnand %p5080_p0, %p5417_p8  ;;  %p5089_p4 = por %p5088_p9, %p5087_p7 }
  0x43   : > { %p5083_p5 = pneg %p5082_p2 }
  0x45   : > { %p5090_p10 = pnand %p5089_p4, %p5083_p5 }
  0x47   : > { %5093 = shalt.err (!%p5090_p10)
}
  0x48   : > { %s7109_s27 = smov 128   ;;  %s7111_s9 = smov 8  }
  0x49   : > { %4640 = dma.hbm_to_vmem [thread:$0]  (!%p5401_p6), %s7142_s4, 2048, %s5405_s22, [#allocation9], %s7109_s27, %s7109_s27, %s7111_s9  }
  0x4a   : > { %s5094_s12 = scalar_lea.hbm %s7097_s3, 192 }
  0x4b   : > { %p5095_p11 = scmp.ne.s32.totalorder %s7097_s3, %s5094_s12  ;;  %p5101_p0 = scmp.lt.u32.totalorder %s5094_s12, %s7097_s3 }
  0x4d   : > { %p5097_p12 = pnand %p5095_p11, %p5417_p8 }
  0x4f   : > { %p5098_p13 = pneg %p5097_p12 }
  0x51   : > { %p5103_p2 = pnand %p5101_p0, %p5098_p13 }
  0x53   : > { %5106 = shalt.err (!%p5103_p2)
}
  0x54   : > { %s5107_s10 = scalar_lea.vmem %s304_s25, 192  ;;  %p5115_p4 = scmp.lt.s32.totalorder %s304_s25, %s304_s25 }
  0x55   : > { %p5108_p5 = scmp.ne.s32.totalorder %s304_s25, %s5107_s10  ;;  %p5116_p10 = scmp.lt.s32.totalorder %s5107_s10, %s5107_s10 }
  0x57   : > { %p5110_p7 = pnand %p5108_p5, %p5417_p8  ;;  %p5117_p1 = por %p5116_p10, %p5115_p4 }
  0x59   : > { %p5111_p9 = pneg %p5110_p7 }
  0x5b   : > { %p5118_p3 = pnand %p5117_p1, %p5111_p9 }
  0x5d   : > { %5121 = shalt.err (!%p5118_p3)
}
  0x5e   : > { %s5295_s22 = smov 64   ;;  %s5296_s28 = smov 4  }
  0x5f   : > { %4637 = dma.hbm_to_vmem [thread:$0]  (!%p5401_p6), %s7097_s3, 192, %s304_s25, [#allocation6], %s5295_s22, %s5295_s22, %s5296_s28  }
  0x60   : > { %s5297_s30 = smov [#allocation10]   ;;  %s5298_s17 = smov [#allocation11]  }
  0x61   : > { %s332_s12 = sshll.u32 %s5297_s30, 4  ;;  %s348_s21 = sshll.u32 %s5298_s17, 4  ;;  %s333_s12 = int_to_ptr.vmem [resolvable:$true] %s332_s12  ;;  %s349_s21 = int_to_ptr.vmem [resolvable:$true] %s348_s21 }
  0x62   : > { %s5122_s10 = scalar_lea.hbm %s7100_s6, 4096 }
  0x63   : > { %p5123_p1 = scmp.ne.s32.totalorder %s7100_s6, %s5122_s10  ;;  %p5129_p12 = scmp.lt.u32.totalorder %s5122_s10, %s7100_s6 }
  0x65   : > { %p5125_p3 = pnand %p5123_p1, %p5417_p8 }
  0x67   : > { %p5126_p11 = pneg %p5125_p3 }
  0x69   : > { %p5131_p13 = pnand %p5129_p12, %p5126_p11 }
  0x6b   : > { %5134 = shalt.err (!%p5131_p13)
}
  0x6c   : > { %s5135_s25 = scalar_lea.vmem %s333_s12, 4096  ;;  %p5143_p7 = scmp.lt.s32.totalorder %s333_s12, %s333_s12 }
  0x6d   : > { %p5136_p0 = scmp.ne.s32.totalorder %s333_s12, %s5135_s25  ;;  %p5144_p9 = scmp.lt.s32.totalorder %s5135_s25, %s5135_s25 }
  0x6f   : > { %p5138_p2 = pnand %p5136_p0, %p5417_p8  ;;  %p5145_p4 = por %p5144_p9, %p5143_p7 }
  0x71   : > { %p5139_p5 = pneg %p5138_p2 }
  0x73   : > { %p5146_p10 = pnand %p5145_p4, %p5139_p5 }
  0x75   : > { %5149 = shalt.err (!%p5146_p10)
}
  0x76   : > { %s7143_s26 = smov 16   ;;  %s7144_s27 = smov 256  }
  0x77   : > { %4643 = dma.hbm_to_vmem [thread:$0]  (!%p5401_p6), %s7100_s6, 4096, %s333_s12, [#allocation9], %s7144_s27, %s7144_s27, %s7143_s26  }
  0x78   : > { %s5150_s28 = scalar_lea.hbm %s7102_s8, 4096 }
  0x79   : > { %p5151_p1 = scmp.ne.s32.totalorder %s7102_s8, %s5150_s28  ;;  %p5157_p12 = scmp.lt.u32.totalorder %s5150_s28, %s7102_s8 }
  0x7b   : > { %p5153_p3 = pnand %p5151_p1, %p5417_p8 }
  0x7d   : > { %p5154_p11 = pneg %p5153_p3 }
  0x7f   : > { %p5159_p13 = pnand %p5157_p12, %p5154_p11 }
  0x81   : > { %5162 = shalt.err (!%p5159_p13)
}
  0x82   : > { %s5163_s18 = scalar_lea.vmem %s349_s21, 4096  ;;  %p5171_p7 = scmp.lt.s32.totalorder %s349_s21, %s349_s21 }
  0x83   : > { %p5164_p0 = scmp.ne.s32.totalorder %s349_s21, %s5163_s18  ;;  %p5172_p9 = scmp.lt.s32.totalorder %s5163_s18, %s5163_s18 }
  0x85   : > { %p5166_p2 = pnand %p5164_p0, %p5417_p8  ;;  %p5173_p4 = por %p5172_p9, %p5171_p7 }
  0x87   : > { %p5167_p5 = pneg %p5166_p2 }
  0x89   : > { %p5174_p10 = pnand %p5173_p4, %p5167_p5 }
  0x8b   : > { %5177 = shalt.err (!%p5174_p10)
}
  0x8c   : > { %s7145_s12 = smov 8   ;;  %s7146_s10 = smov 128  }
  0x8d   : > { %4646 = dma.hbm_to_vmem [thread:$0]  (!%p5401_p6), %s7102_s8, 4096, %s349_s21, [#allocation12], %s7146_s10, %s7146_s10, %s7145_s12  }
  0x8e   : > { %s3703_s23 = sadd.s32 4294967294, %s5286_s16   ;;  %s5530_s11 = sadd.s32 1, %s5286_s16  }
  0x8f   : > { %s36_s27 = sadd.s32 1, %s5282_s15  ;;  %s33_s1 = ssub.s32 %s5286_s16, %s5530_s11 }
  0x90   : > { %p43_p8 = scmp.ne.s32.totalorder %s5282_s15, %s5278_s14  ;;  %p34_p1 = scmp.eq.s32.totalorder %s33_s1, 0 }
  0x91   : > { %p44_p3 = scmp.eq.s32.totalorder %s5286_s16, 0  ;;  %p49_p11 = scmp.ne.s32.totalorder %s5278_s14, %s5274_s13 }
  0x92   : > { %p262_p12 = scmp.eq.s32.totalorder %s5385_s19, 1  ;;  %p7147_p0 = scmp.eq.s32.totalorder %s5385_s19, 0 }
  0x93   : > { %s5542_s4 = scalar_select %p34_p1, %s5282_s15, %s36_s27  }
  0x94   : > { %p45_p13 = por %p44_p3, %p43_p8  ;;  %p5546_p2 = por %p7147_p0, %p49_p11 }
  0x95   : > { %p5550_p6 = por %p262_p12, %p43_p8  ;;  %p268_p5 = scmp.eq.s32.totalorder %s3703_s23, 1 }
  0x96   : > { %p4660_p7 = scmp.lt.s32.totalorder %s5286_s16, 2  ;;  %s365_s22 = sand.u32 1, %s5282_s15  }
  0x97   : > { %s7149_s21 = scalar_select %p5550_p6, 1, 0 }
  0x98   : > { %p5556_p9 = por %p268_p5, %p49_p11  ;;  %s3711_s24 = sshll.u32 %s365_s22, 6 }
  0x99   : > { %s3841_s29 = sshll.u32 %s5286_s16, 10  ;;  %s369_s25 = scalar_lea.vmem [#allocation2], %s3711_s24 }
  0x9a   : > { %s7150_s28 = scalar_select %p5556_p9, 1, 0 }
  0x9b   : > { %s5564_s18 = scalar_lea.hbm %s7094_s0, %s3841_s29  ;;  %s376_s26 = sshll.u32 %s369_s25, 4  ;;  %s5570_s26 = int_to_ptr.vmem [resolvable:$true] %s376_s26 }
  0x9c   : > { %p5566_p4 = pnand %p4660_p7, %p45_p13  ;;  %s5572_s27 = scalar_lea.sflag [#allocation3], %s365_s22 }
  0x9d   : > { %s5178_s1 = scalar_lea.hbm %s5564_s18, 1024  ;;  %s5183_s30 = scalar_lea.hbm %s7094_s0, 2048 }
  0x9e   : > { %p5179_p10 = scmp.ne.s32.totalorder %s5564_s18, %s5178_s1  ;;  %p5180_p8 = pneg %p5566_p4 }
  0x9f   : > { %p5184_p11 = scmp.lt.u32.totalorder %s5564_s18, %s7094_s0  ;;  %p5185_p12 = scmp.lt.u32.totalorder %s5183_s30, %s5178_s1 }
  0xa0   : > { %p5181_p1 = pnand %p5180_p8, %p5179_p10  ;;  %p5187_p0 = scmp.lt.u32.totalorder %s5178_s1, %s5564_s18 }
  0xa1   : > { %p5186_p13 = por %p5185_p12, %p5184_p11 }
  0xa2   : > { %p5182_p3 = pneg %p5181_p1 }
  0xa3   : > { %p5188_p5 = por %p5187_p0, %p5186_p13 }
  0xa5   : > { %p5189_p7 = pnand %p5188_p5, %p5182_p3 }
  0xa7   : > { %5192 = shalt.err (!%p5189_p7)
}
  0xa8   : > { %s5193_s22 = scalar_lea.vmem %s5570_s26, 1024  ;;  %s5299_s24 = smov [#allocation2]  }
  0xa9   : > { %p5194_p10 = scmp.ne.s32.totalorder %s5570_s26, %s5193_s22  ;;  %s5198_s29 = sshll.u32 %s5299_s24, 4  ;;  %s5199_s29 = int_to_ptr.vmem [resolvable:$false] %s5198_s29 }
  0xaa   : > { %s5200_s17 = scalar_lea.vmem %s5199_s29, 2048  ;;  %p5201_p6 = scmp.lt.s32.totalorder %s5570_s26, %s5199_s29 }
  0xab   : > { %p5196_p1 = pnand %p5194_p10, %p5180_p8  ;;  %p5202_p11 = scmp.lt.s32.totalorder %s5200_s17, %s5193_s22 }
  0xad   : > { %p5197_p9 = pneg %p5196_p1  ;;  %p5203_p12 = por %p5202_p11, %p5201_p6 }
  0xaf   : > { %p5204_p13 = pnand %p5203_p12, %p5197_p9 }
  0xb1   : > { %5207 = shalt.err (!%p5204_p13)
}
  0xb2   : > { %4650 = dma.hbm_to_vmem [thread:$0]  (!%p5566_p4), %s5564_s18, 1024, %s5570_s26, %s5572_s27, %s7146_s10, %s7146_s10, %s7145_s12  }
  0xb3   : > { %p7152_p8 = scmp.ne.s32.totalorder %s7138_s20, 0 }
  0xb5   : > { %388 = sbr.rel (%p7152_p8) target bundleno = 2916 (0xb64), region = 60 }
  0xbc   : > { %s5606_s1 = sand.u32 1, %s5278_s14  }
  0xbd   : > { %s3715_s30 = sshll.u32 %s5606_s1, 6  ;;  %s391_s25 = scalar_lea.sflag [#allocation3], %s5606_s1 }
  0xbe   : > { %s5612_s23 = scalar_lea.vmem [#allocation2], %s3715_s30 }
  0xbf   : > { %5253 = dma.done.wait (%p5546_p2), %s391_s25, 1024  }
  0xc0   : > { %5255 = vsyncadd (%p5546_p2), %s391_s25, 4294966272  ;;  %p7153_p6 = scmp.eq.s32.totalorder %s5385_s19, 0 }
  0xc2   : > { %5257 = dma.done.wait (%p7153_p6), [#allocation6], 4288   ;;  %p7154_p9 = pmov %p7153_p6 }
  0xc3   : > { %p7155_p4 = pmov %p7153_p6 }
  0xc4   : > { %5259 = vsyncadd (%p7154_p9), [#allocation6], 4294963008 }
  0xc5   : > { %5261 = dma.done.wait (%p7155_p4), [#allocation9], 6144   ;;  %p7156_p3 = pmov %p7155_p4 }
  0xc7   : > { %5263 = vsyncadd (%p7156_p3), [#allocation9], 4294961152  ;;  %p7157_p0 = pmov %p7156_p3 }
  0xc9   : > { %5265 = dma.done.wait (%p7157_p0), [#allocation12], 4096   ;;  %p7158_p5 = pmov %p7157_p0 }
  0xca   : > { %v7115_v0 = vmov 0.0   ;;  %v460_v1 = vld [vmem:[#allocation5 + $0x8] sm:$0xff]  ;;  %v462_v2 = vld [vmem:[#allocation5 + $0x18] sm:$0xff]  ;;  %v459_v3 = vld [vmem:[#allocation5] sm:$0xff]  ;;  %v493_v57 = vlaneseq  ;;  %vm640_vm0 = vcmask 130048   ;;  %s5301_s10 = smov 112  }
  0xcb   : > { %5267 = vsyncadd (%p7158_p5), [#allocation12], 4294963200  ;;  %567 = vmatprep.mubr.f32.mxu0 %v7115_v0  ;;  %v4319_v4 = vpack.c.bf16 %v462_v2, %v460_v1  ;;  %v461_v5 = vld [vmem:[#allocation5 + $0x10] sm:$0xff]  ;;  %v464_v6 = vld [vmem:[#allocation5 + $0x28] sm:$0xff]  ;;  %s5302_s9 = smov 48   ;;  %s5303_s18 = smov 64  }
  0xcc   : > { %v466_v7 = vld [vmem:[#allocation5 + $0x38] sm:$0xff]  ;;  %v4321_v8 = vpack.c.bf16 %v461_v5, %v459_v3  ;;  %v463_v10 = vld [vmem:[#allocation5 + $0x20] sm:$0xff]  ;;  %v465_v11 = vld [vmem:[#allocation5 + $0x30] sm:$0xff]  ;;  %v5646_v58 = vshrl.u32 %v493_v57, 7  ;;  %s5304_s26 = smov 96   ;;  %s5305_s27 = smov 32  }
  0xcd   : > { %v4323_v9 = vpack.c.bf16 %v466_v7, %v464_v6  ;;  %v468_v12 = vld [vmem:[#allocation5 + $0x48] sm:$0xff]  ;;  %4320 = vmatprep.subr.bf16.mxu0 %v4319_v4  ;;  %v470_v13 = vld [vmem:[#allocation5 + $0x58] sm:$0xff]  ;;  %v4325_v14 = vpack.c.bf16 %v465_v11, %v463_v10  ;;  %v467_v16 = vld [vmem:[#allocation5 + $0x40] sm:$0xff]  ;;  %vm786_vm2 = vcmask 523264   ;;  %vm2455_vm3 = vcmask 1040384   ;;  %s7210_s20 = sld [smem:[#allocation45_spill]] }
  0xce   : > { %4322 = vmatpush1.bf16.msra.mxu0 %v4321_v8  ;;  %v4327_v15 = vpack.c.bf16 %v470_v13, %v468_v12  ;;  %v469_v17 = vld [vmem:[#allocation5 + $0x50] sm:$0xff]  ;;  %v472_v18 = vld [vmem:[#allocation5 + $0x68] sm:$0xff]  ;;  %v474_v19 = vld [vmem:[#allocation5 + $0x78] sm:$0xff]  ;;  %v5649_v59 = vsub.s32 0, %v5646_v58  ;;  %vm2370_vm4 = vcmask 261120   ;;  %vm2387_vm5 = vcmask 785408  }
  0xcf   : > { %4324 = vmatprep.subr.bf16.mxu0 %v4323_v9  ;;  %v4329_v20 = vpack.c.bf16 %v469_v17, %v467_v16  ;;  %v4331_v21 = vpack.c.bf16 %v474_v19, %v472_v18  ;;  %v471_v22 = vld [vmem:[#allocation5 + $0x60] sm:$0xff]  ;;  %v473_v23 = vld [vmem:[#allocation5 + $0x70] sm:$0xff]  ;;  %v476_v24 = vld [vmem:[#allocation5 + $0x88] sm:$0xff]  ;;  %vm2533_vm6 = vcmask 1046528   ;;  %vm2610_vm7 = vcmask 1045504   ;;  %s7026_s12 = scalar_lea.vmem [#allocation13], %s3715_s30 }
  0xd0   : > { %v478_v25 = vld [vmem:[#allocation5 + $0x98] sm:$0xff]  ;;  %v4333_v26 = vpack.c.bf16 %v473_v23, %v471_v22  ;;  %v475_v28 = vld [vmem:[#allocation5 + $0x80] sm:$0xff]  ;;  %v477_v29 = vld [vmem:[#allocation5 + $0x90] sm:$0xff]  ;;  %7159 = vst [vmem:[#allocation19_spill] sm:$0xff] %v5649_v59  ;;  %s3842_s30 = sshll.u32 %s5385_s19, 10  ;;  %s3569_s22 = scalar_lea.sflag [#allocation4], %s5606_s1 }
  0xd1   : > { %v4335_v27 = vpack.c.bf16 %v478_v25, %v476_v24  ;;  %v480_v30 = vld [vmem:[#allocation5 + $0xa8] sm:$0xff]  ;;  %v482_v31 = vld [vmem:[#allocation5 + $0xb8] sm:$0xff]  ;;  %v4337_v32 = vpack.c.bf16 %v477_v29, %v475_v28  ;;  %v479_v34 = vld [vmem:[#allocation5 + $0xa0] sm:$0xff]  ;;  %p7212_p7 = scmp.ne.s32.totalorder %s7149_s21, 0  ;;  %s5306_s19 = smov [#allocation13]  }
  0xd2   : > { %4326 = vmatpush1.bf16.msra.mxu0 %v4325_v14  ;;  %v4339_v33 = vpack.c.bf16 %v482_v31, %v480_v30  ;;  %v481_v35 = vld [vmem:[#allocation5 + $0xb0] sm:$0xff]  ;;  %v484_v36 = vld [vmem:[#allocation5 + $0xc8] sm:$0xff]  ;;  %v486_v37 = vld [vmem:[#allocation5 + $0xd8] sm:$0xff]  ;;  %s5212_s29 = sshll.u32 %s5306_s19, 4  ;;  %s5213_s29 = int_to_ptr.vmem [resolvable:$false] %s5212_s29 }
  0xd3   : > { %4328 = vmatprep.subr.bf16.mxu0 %v4327_v15  ;;  %v4341_v38 = vpack.c.bf16 %v481_v35, %v479_v34  ;;  %v4343_v39 = vpack.c.bf16 %v486_v37, %v484_v36  ;;  %v483_v40 = vld [vmem:[#allocation5 + $0xc0] sm:$0xff]  ;;  %v485_v41 = vld [vmem:[#allocation5 + $0xd0] sm:$0xff]  ;;  %v488_v42 = vld [vmem:[#allocation5 + $0xe8] sm:$0xff]  ;;  %s5214_s17 = scalar_lea.vmem %s5213_s29, 2048 }
  0xd4   : > { %v490_v43 = vld [vmem:[#allocation5 + $0xf8] sm:$0xff]  ;;  %v4345_v44 = vpack.c.bf16 %v485_v41, %v483_v40  ;;  %v487_v46 = vld [vmem:[#allocation5 + $0xe0] sm:$0xff]  ;;  %v489_v47 = vld [vmem:[#allocation5 + $0xf0] sm:$0xff] }
  0xd5   : > { %v4347_v45 = vpack.c.bf16 %v490_v43, %v488_v42  ;;  %v4349_v48 = vpack.c.bf16 %v489_v47, %v487_v46  ;;  %v451_v49 = vld [vmem:[%s5612_s23] sm:$0xff]  ;;  %v452_v50 = vld [vmem:[%s5612_s23 + $0x8] sm:$0xff]  ;;  %v453_v51 = vld [vmem:[%s5612_s23 + $0x10] sm:$0xff] }
  0xd6   : > { %4330 = vmatpush1.bf16.msra.mxu0 %v4329_v20  ;;  %v454_v52 = vld [vmem:[%s5612_s23 + $0x18] sm:$0xff]  ;;  %v455_v53 = vld [vmem:[%s5612_s23 + $0x20] sm:$0xff]  ;;  %v456_v54 = vld [vmem:[%s5612_s23 + $0x28] sm:$0xff] }
  0xd7   : > { %4332 = vmatprep.subr.bf16.mxu0 %v4331_v21  ;;  %v457_v55 = vld [vmem:[%s5612_s23 + $0x30] sm:$0xff]  ;;  %v458_v56 = vld [vmem:[%s5612_s23 + $0x38] sm:$0xff]  ;;  %v491_v60 = vld [vmem:[%s7096_s2] sm:$0x3]  ;;  %v5684_v21 = vsub.s32 1, %v5646_v58 }
  0xd8   : > { %v496_v61 = vrot.slane %v491_v60, %v5649_v59  ;;  %vm5779_vm1 = vmpackc.low %vm640_vm0, %vm640_vm0 }
  0xd9   : > { %7160 = vst [vmem:[#allocation20_spill] sm:$0xff] %v5684_v21  ;;  %v500_v25 = vrot.slane %v491_v60, %v5684_v21 }
  0xda   : > { %4334 = vmatpush1.bf16.msra.mxu0 %v4333_v26 }
  0xdb   : > { %4336 = vmatprep.subr.bf16.mxu0 %v4335_v27 }
  0xde   : > { %4338 = vmatpush1.bf16.msra.mxu0 %v4337_v32 }
  0xdf   : > { %4340 = vmatprep.subr.bf16.mxu0 %v4339_v33 }
  0xe2   : > { %4342 = vmatpush1.bf16.msra.mxu0 %v4341_v38 }
  0xe3   : > { %4344 = vmatprep.subr.bf16.mxu0 %v4343_v39 }
  0xe6   : > { %4346 = vmatpush1.bf16.msra.mxu0 %v4345_v44 }
  0xe7   : > { %4348 = vmatprep.subr.bf16.mxu0 %v4347_v45 }
  0xea   : > { %4350 = vmatpush1.bf16.msra.mxu0 %v4349_v48 }
  0xed   : > { %568 = vmatmul.mubr.f32.vlgmr.msra.gmra.mrb[0].mxu0 %v451_v49 }
  0xee   : > { %573 = vmatprep.mubr.f32.mxu0 %v7115_v0 }
  0xf1   : > { %574 = vmatmul.mubr.f32.gmra.mrb[2].mxu0 %v452_v50 }
  0xf2   : > { %579 = vmatprep.mubr.f32.mxu0 %v7115_v0 }
  0xf5   : > { %580 = vmatmul.mubr.f32.gmra.mrb[4].mxu0 %v453_v51 }
  0xf6   : > { %585 = vmatprep.mubr.f32.mxu0 %v7115_v0 }
  0xf9   : > { %586 = vmatmul.mubr.f32.gmra.mrb[6].mxu0 %v454_v52 }
  0xfa   : > { %591 = vmatprep.mubr.f32.mxu0 %v7115_v0 }
  0xfd   : > { %592 = vmatmul.mubr.f32.gmra.mrb[8].mxu0 %v455_v53 }
  0xfe   : > { %597 = vmatprep.mubr.f32.mxu0 %v7115_v0 }
 0x101   : > { %598 = vmatmul.mubr.f32.gmra.mrb[10].mxu0 %v456_v54 }
 0x102   : > { %603 = vmatprep.mubr.f32.mxu0 %v7115_v0 }
 0x105   : > { %604 = vmatmul.mubr.f32.gmra.mrb[12].mxu0 %v457_v55 }
 0x106   : > { %609 = vmatprep.mubr.f32.mxu0 %v7115_v0 }
 0x109   : > { %610 = vmatmul.mubr.f32.gmra.mrb[14].mxu0 %v458_v56 }
 0x1c0   : > { %v569_v62 = vpop.f32.mrb[0].mxu0 }
 0x1c1   : > { %v5655_v63 = vadd.f32 %v569_v62, %v496_v61  ;;  %v571_v1 = vpop.f32.mrb[1].mxu0 }
 0x1c2   : > { %v5699_v30 = vadd.f32 %v571_v1, %v500_v25 }
 0x1c3   : > { %4067 = vmatprep.mubr.msk.f32.mxu1 %vm640_vm0, %v5655_v63 }
 0x1c4   : > { %v575_v2 = vpop.f32.mrb[2].mxu0 }
 0x1c5   : > { %v5659_v3 = vadd.f32 %v575_v2, %v496_v61  ;;  %v577_v4 = vpop.f32.mrb[3].mxu0 }
 0x1c6   : > { %v5693_v28 = vadd.f32 %v577_v4, %v500_v25 }
 0x1c7   : > { %v5663_v5 = vpack.i.bf16 %v5659_v3, %v5655_v63 }
 0x1c8   : > { %v581_v6 = vpop.f32.mrb[4].mxu0  ;;  %v5709_v32 = vpack.i.bf16 %v5693_v28, %v5699_v30 }
 0x1c9   : > { %v583_v7 = vpop.f32.mrb[5].mxu0  ;;  %4719 = vrot.lane.b32.xlu0 %v5663_v5, %s5301_s10  ;;  %v5667_v9 = vadd.f32 %v581_v6, %v496_v61 }
 0x1ca   : > { %v5711_v33 = vadd.f32 %v583_v7, %v500_v25 }
 0x1cc   : > { %v587_v8 = vpop.f32.mrb[6].mxu0 }
 0x1cd   : > { %v5669_v10 = vadd.f32 %v587_v8, %v496_v61  ;;  %v589_v11 = vpop.f32.mrb[7].mxu0  ;;  %4724 = vrot.lane.b32.xlu0 %v5663_v5, %s5302_s9 }
 0x1ce   : > { %v5705_v31 = vadd.f32 %v589_v11, %v500_v25 }
 0x1cf   : > { %v4728_v12 = vpack.i.bf16 %v5669_v10, %v5667_v9 }
 0x1d0   : > { %v593_v13 = vpop.f32.mrb[8].mxu0  ;;  %v5723_v36 = vpack.i.bf16 %v5705_v31, %v5711_v33 }
 0x1d1   : > { %4729 = vrot.lane.b32.xlu1 %v4728_v12, %s5301_s10  ;;  %v595_v14 = vpop.f32.mrb[9].mxu0  ;;  %v5676_v15 = vadd.f32 %v593_v13, %v496_v61 }
 0x1d2   : > { %v5717_v34 = vadd.f32 %v595_v14, %v500_v25 }
 0x1d4   : > { %v599_v16 = vpop.f32.mrb[10].mxu0 }
 0x1d5   : > { %v5678_v17 = vadd.f32 %v599_v16, %v496_v61  ;;  %v601_v18 = vpop.f32.mrb[11].mxu0  ;;  %4734 = vrot.lane.b32.xlu1 %v4728_v12, %s5302_s9 }
 0x1d6   : > { %v5719_v35 = vadd.f32 %v601_v18, %v500_v25 }
 0x1d7   : > { %v4743_v19 = vpack.i.bf16 %v5678_v17, %v5676_v15 }
 0x1d8   : > { %v605_v20 = vpop.f32.mrb[12].mxu0  ;;  %v5735_v39 = vpack.i.bf16 %v5719_v35, %v5717_v34 }
 0x1d9   : > { %4744 = vrot.lane.b32.xlu1 %v4743_v19, %s5302_s9  ;;  %4739 = vrot.lane.b32.xlu0 %v4743_v19, %s5301_s10  ;;  %v607_v22 = vpop.f32.mrb[13].mxu0  ;;  %v5688_v23 = vadd.f32 %v605_v20, %v496_v61 }
 0x1da   : > { %v5729_v37 = vadd.f32 %v607_v22, %v500_v25 }
 0x1dc   : > { %v611_v24 = vpop.f32.mrb[14].mxu0 }
 0x1dd   : > { %v5691_v26 = vadd.f32 %v611_v24, %v496_v61  ;;  %v613_v27 = vpop.f32.mrb[15].mxu0 }
 0x1de   : > { %v5731_v38 = vadd.f32 %v613_v27, %v500_v25 }
 0x1df   : > { %v5697_v29 = vpack.i.bf16 %v5691_v26, %v5688_v23 }
 0x1e0   : > { %v5743_v40 = vpack.i.bf16 %v5731_v38, %v5729_v37 }
 0x1e1   : > { %4754 = vrot.lane.b32.xlu1 %v5697_v29, %s5302_s9  ;;  %4749 = vrot.lane.b32.xlu0 %v5697_v29, %s5301_s10 }
 0x1e5   : > { %1028 = vrot.lane.b32.xlu1 %v5655_v63, %s5303_s18  ;;  %4759 = vrot.lane.b32.xlu0 %v5709_v32, %s5301_s10 }
 0x1e9   : > { %4764 = vrot.lane.b32.xlu1 %v5723_v36, %s5301_s10  ;;  %1030 = vrot.lane.b32.xlu0 %v5659_v3, %s5303_s18 }
 0x1ed   : > { %1032 = vrot.lane.b32.xlu1 %v5667_v9, %s5303_s18  ;;  %4769 = vrot.lane.b32.xlu0 %v5735_v39, %s5301_s10 }
 0x1f1   : > { %4774 = vrot.lane.b32.xlu1 %v5743_v40, %s5301_s10  ;;  %1034 = vrot.lane.b32.xlu0 %v5669_v10, %s5303_s18  ;;  %s3582_s10 = sshll.u32 %s7026_s12, 4  ;;  %s7048_s10 = int_to_ptr.vmem [resolvable:$true] %s3582_s10 }
 0x1f2   : > { %s5208_s24 = scalar_lea.vmem %s7048_s10, 1024  ;;  %p5215_p11 = scmp.lt.s32.totalorder %s7048_s10, %s5213_s29 }
 0x1f3   : > { %p5209_p2 = scmp.ne.s32.totalorder %s7048_s10, %s5208_s24  ;;  %p5216_p12 = scmp.lt.s32.totalorder %s5214_s17, %s5208_s24 }
 0x1f5   : > { %1038 = vrot.lane.b32.xlu1 %v5678_v17, %s5303_s18  ;;  %1036 = vrot.lane.b32.xlu0 %v5676_v15, %s5303_s18  ;;  %p5210_p10 = pnand %p5209_p2, %p7212_p7  ;;  %p5217_p13 = por %p5216_p12, %p5215_p11 }
 0x1f7   : > { %p5211_p1 = pneg %p5210_p10 }
 0x1f9   : > { %1042 = vrot.lane.b32.xlu1 %v5691_v26, %s5303_s18  ;;  %1040 = vrot.lane.b32.xlu0 %v5688_v23, %s5303_s18  ;;  %p5218_p8 = pnand %p5217_p13, %p5211_p1 }
 0x1fd   : > { %875 = vrot.lane.b32.xlu1 %v5655_v63, %s5304_s26  ;;  %877 = vrot.lane.b32.xlu0 %v5659_v3, %s5304_s26 }
 0x201   : > { %879 = vrot.lane.b32.xlu1 %v5667_v9, %s5304_s26  ;;  %881 = vrot.lane.b32.xlu0 %v5669_v10, %s5304_s26 }
 0x205   : > { %887 = vrot.lane.b32.xlu1 %v5688_v23, %s5304_s26  ;;  %883 = vrot.lane.b32.xlu0 %v5676_v15, %s5304_s26 }
 0x209   : > { %4784 = vrot.lane.b32.xlu1 %v4728_v12, %s5305_s27  ;;  %885 = vrot.lane.b32.xlu0 %v5678_v17, %s5304_s26 }
 0x20d   : > { %4789 = vrot.lane.b32.xlu1 %v4743_v19, %s5305_s27  ;;  %889 = vrot.lane.b32.xlu0 %v5691_v26, %s5304_s26 }
 0x211   : > { %4779 = vrot.lane.b32.xlu0 %v5663_v5, %s5305_s27 }
 0x23b   : > { %v4720_v41 = vpop.permute.xlu0 %4719 }
 0x23c   : > { %v4722_v42 = vunpack.i.h.bf16 %v4720_v41  ;;  %v4721_v43 = vunpack.i.l.bf16 %v4720_v41 }
 0x23e   : > { %v4351_v45 = vpack.c.bf16 %v4722_v42, %v4721_v43 }
 0x23f   : > { %v4725_v46 = vpop.permute.xlu0 %4724 }
 0x240   : > { %v4727_v47 = vunpack.i.h.bf16 %v4725_v46  ;;  %v4726_v48 = vunpack.i.l.bf16 %v4725_v46  ;;  %4353 = vmatprep.subr.msk.bf16.mxu1 %vm5779_vm1, %v4351_v45 }
 0x241   : > { %4356 = vmatpush3.bf16.xpose.msk.msra.mxu1 %vm5779_vm1, %v4351_v45 }
 0x242   : > { %v4391_v49 = vpack.c.bf16 %v4727_v47, %v4726_v48 }
 0x243   : > { %v4730_v50 = vpop.permute.xlu1 %4729 }
 0x244   : > { %v4732_v51 = vunpack.i.h.bf16 %v4730_v50  ;;  %v4731_v52 = vunpack.i.l.bf16 %v4730_v50  ;;  %4393 = vmatprep.subr.msk.bf16.mxu0 %vm5779_vm1, %v4391_v49 }
 0x245   : > { %4396 = vmatpush3.bf16.xpose.msk.msra.mxu0 %vm5779_vm1, %v4391_v49 }
 0x246   : > { %v4357_v53 = vpack.c.bf16 %v4732_v51, %v4731_v52 }
 0x247   : > { %v4735_v54 = vpop.permute.xlu1 %4734 }
 0x248   : > { %v4737_v55 = vunpack.i.h.bf16 %v4735_v54  ;;  %v4736_v56 = vunpack.i.l.bf16 %v4735_v54  ;;  %4359 = vmatprep.subr.msk.bf16.mxu1 %vm5779_vm1, %v4357_v53 }
 0x249   : > { %4362 = vmatpush3.bf16.xpose.msk.msra.mxu1 %vm5779_vm1, %v4357_v53 }
 0x24a   : > { %v4397_v57 = vpack.c.bf16 %v4737_v55, %v4736_v56 }
 0x24b   : > { %v4745_v60 = vpop.permute.xlu1 %4744  ;;  %v4740_v61 = vpop.permute.xlu0 %4739 }
 0x24c   : > { %v4747_v62 = vunpack.i.h.bf16 %v4745_v60  ;;  %v4746_v63 = vunpack.i.l.bf16 %v4745_v60  ;;  %v4742_v1 = vunpack.i.h.bf16 %v4740_v61  ;;  %v4741_v2 = vunpack.i.l.bf16 %v4740_v61  ;;  %4399 = vmatprep.subr.msk.bf16.mxu0 %vm5779_vm1, %v4397_v57 }
 0x24d   : > { %4402 = vmatpush3.bf16.xpose.msk.msra.mxu0 %vm5779_vm1, %v4397_v57 }
 0x24e   : > { %v4403_v4 = vpack.c.bf16 %v4747_v62, %v4746_v63  ;;  %v4363_v5 = vpack.c.bf16 %v4742_v1, %v4741_v2 }
 0x250   : > { %4365 = vmatprep.subr.msk.bf16.mxu1 %vm5779_vm1, %v4363_v5  ;;  %4405 = vmatprep.subr.msk.bf16.mxu0 %vm5779_vm1, %v4403_v4 }
 0x251   : > { %4368 = vmatpush3.bf16.xpose.msk.msra.mxu1 %vm5779_vm1, %v4363_v5 }
 0x253   : > { %v4755_v6 = vpop.permute.xlu1 %4754  ;;  %v4750_v7 = vpop.permute.xlu0 %4749 }
 0x254   : > { %v4757_v8 = vunpack.i.h.bf16 %v4755_v6  ;;  %v4756_v11 = vunpack.i.l.bf16 %v4755_v6  ;;  %v4752_v12 = vunpack.i.h.bf16 %v4750_v7  ;;  %v4751_v13 = vunpack.i.l.bf16 %v4750_v7 }
 0x255   : > { %4408 = vmatpush3.bf16.xpose.msk.msra.mxu0 %vm5779_vm1, %v4403_v4 }
 0x256   : > { %v4409_v14 = vpack.c.bf16 %v4757_v8, %v4756_v11  ;;  %v4369_v16 = vpack.c.bf16 %v4752_v12, %v4751_v13 }
 0x257   : > { %v5807_v18 = vpop.permute.xlu1 %1028  ;;  %v4760_v19 = vpop.permute.xlu0 %4759 }
 0x258   : > { %v4762_v20 = vunpack.i.h.bf16 %v4760_v19  ;;  %v4761_v22 = vunpack.i.l.bf16 %v4760_v19  ;;  %4371 = vmatprep.subr.msk.bf16.mxu1 %vm5779_vm1, %v4369_v16  ;;  %4411 = vmatprep.subr.msk.bf16.mxu0 %vm5779_vm1, %v4409_v14 }
 0x259   : > { %4123 = vmatprep.mubr.msk.f32.mxu0 %vm640_vm0, %v5807_v18  ;;  %4374 = vmatpush3.bf16.xpose.msk.msra.mxu1 %vm5779_vm1, %v4369_v16 }
 0x25a   : > { %v4431_v27 = vpack.c.bf16 %v4762_v20, %v4761_v22 }
 0x25b   : > { %v4765_v24 = vpop.permute.xlu1 %4764  ;;  %v5817_v25 = vpop.permute.xlu0 %1030 }
 0x25c   : > { %v4767_v43 = vunpack.i.h.bf16 %v4765_v24  ;;  %v4766_v45 = vunpack.i.l.bf16 %v4765_v24 }
 0x25d   : > { %4414 = vmatpush3.bf16.xpose.msk.msra.mxu0 %vm5779_vm1, %v4409_v14 }
 0x25e   : > { %4433 = vmatprep.subr.msk.bf16.mxu0 %vm5779_vm1, %v4431_v27  ;;  %v4437_v48 = vpack.c.bf16 %v4767_v43, %v4766_v45 }
 0x25f   : > { %v5823_v41 = vpop.permute.xlu1 %1032  ;;  %v4770_v42 = vpop.permute.xlu0 %4769 }
 0x260   : > { %7163 = vst [vmem:[#allocation21_spill] sm:$0xff] %v5823_v41  ;;  %4068 = vmatmul.mubr.msk.f32.vlgmr.msra.gmra.mrb[0].mxu1 %vm640_vm0, %v5659_v3 }
 0x261   : > { %4070 = vmatprep.mubr.msk.f32.mxu1 %vm640_vm0, %v5667_v9 }
 0x263   : > { %v4775_v46 = vpop.permute.xlu1 %4774  ;;  %v5829_v47 = vpop.permute.xlu0 %1034 }
 0x264   : > { %7164 = vst [vmem:[#allocation22_spill] sm:$0xff] %v5829_v47  ;;  %4071 = vmatmul.mubr.msk.f32.gmra.mrb[2].mxu1 %vm640_vm0, %v5669_v10  ;;  %4124 = vmatmul.mubr.msk.f32.vlgmr.msra.gmra.mrb[16].mxu0 %vm640_vm0, %v5817_v25  ;;  %v4772_v10 = vunpack.i.h.bf16 %v4770_v42  ;;  %v4777_v52 = vunpack.i.h.bf16 %v4775_v46  ;;  %v4776_v53 = vunpack.i.l.bf16 %v4775_v46 }
 0x265   : > { %4073 = vmatprep.mubr.msk.f32.mxu1 %vm640_vm0, %v5676_v15  ;;  %4126 = vmatprep.mubr.msk.f32.mxu0 %vm640_vm0, %v5823_v41  ;;  %v4771_v15 = vunpack.i.l.bf16 %v4770_v42 }
 0x266   : > { %4436 = vmatpush3.bf16.xpose.msk.msra.mxu0 %vm5779_vm1, %v4431_v27  ;;  %v4449_v57 = vpack.c.bf16 %v4777_v52, %v4776_v53 }
 0x267   : > { %4439 = vmatprep.subr.msk.bf16.mxu0 %vm5779_vm1, %v4437_v48  ;;  %v5843_v3 = vpop.permute.xlu1 %1038  ;;  %v5845_v9 = vpop.permute.xlu0 %1036 }
 0x268   : > { %7165 = vst [vmem:[#allocation23_spill] sm:$0xff] %v5845_v9  ;;  %4074 = vmatmul.mubr.msk.f32.gmra.mrb[4].mxu1 %vm640_vm0, %v5678_v17  ;;  %4127 = vmatmul.mubr.msk.f32.gmra.mrb[18].mxu0 %vm640_vm0, %v5829_v47  ;;  %v4443_v17 = vpack.c.bf16 %v4772_v10, %v4771_v15 }
 0x269   : > { %4076 = vmatprep.mubr.msk.f32.mxu1 %vm640_vm0, %v5688_v23  ;;  %4129 = vmatprep.mubr.msk.f32.mxu0 %vm640_vm0, %v5845_v9 }
 0x26b   : > { %v5855_v49 = vpop.permute.xlu1 %1042  ;;  %v5857_v50 = vpop.permute.xlu0 %1040 }
 0x26c   : > { %7166 = vst [vmem:[#allocation24_spill] sm:$0xff] %v5855_v49  ;;  %7167 = vst [vmem:[#allocation25_spill] sm:$0xff] %v5857_v50  ;;  %4077 = vmatmul.mubr.msk.f32.gmra.mrb[6].mxu1 %vm640_vm0, %v5691_v26  ;;  %4130 = vmatmul.mubr.msk.f32.gmra.mrb[20].mxu0 %vm640_vm0, %v5843_v3 }
 0x26d   : > { %4132 = vmatprep.mubr.msk.f32.mxu0 %vm640_vm0, %v5857_v50 }
 0x26e   : > { %4442 = vmatpush3.bf16.xpose.msk.msra.mxu0 %vm5779_vm1, %v4437_v48 }
 0x26f   : > { %4445 = vmatprep.subr.msk.bf16.mxu0 %vm5779_vm1, %v4443_v17  ;;  %v5869_v23 = vpop.permute.xlu1 %875  ;;  %v5871_v51 = vpop.permute.xlu0 %877 }
 0x270   : > { %v4375_v26 = vpack.c.bf16 %v5871_v51, %v5869_v23  ;;  %4133 = vmatmul.mubr.msk.f32.gmra.mrb[22].mxu0 %vm640_vm0, %v5855_v49 }
 0x271   : > { %4179 = vmatprep.mubr.msk.f32.mxu0 %vm640_vm0, %v5699_v30 }
 0x272   : > { %4376 = vmatprep.subr.bf16.mxu1 %v4375_v26 }
 0x273   : > { %v5879_v54 = vpop.permute.xlu1 %879  ;;  %v5881_v55 = vpop.permute.xlu0 %881  ;;  %4378 = vmatpush3.bf16.msra.mxu1 %v4375_v26 }
 0x274   : > { %7168 = vst [vmem:[#allocation26_spill] sm:$0xff] %v5879_v54  ;;  %7169 = vst [vmem:[#allocation27_spill] sm:$0xff] %v5881_v55  ;;  %v4379_v56 = vpack.c.bf16 %v5881_v55, %v5879_v54 }
 0x276   : > { %4448 = vmatpush3.bf16.xpose.msk.msra.mxu0 %vm5779_vm1, %v4443_v17  ;;  %4380 = vmatprep.subr.bf16.mxu1 %v4379_v56 }
 0x277   : > { %4451 = vmatprep.subr.msk.bf16.mxu0 %vm5779_vm1, %v4449_v57  ;;  %v5889_v60 = vpop.permute.xlu0 %883  ;;  %4382 = vmatpush3.bf16.msra.mxu1 %v4379_v56  ;;  %v5897_v63 = vpop.permute.xlu1 %887 }
 0x278   : > { %7170 = vst [vmem:[#allocation28_spill] sm:$0xff] %v5889_v60  ;;  %7172 = vst [vmem:[#allocation30_spill] sm:$0xff] %v5897_v63 }
 0x27b   : > { %v5891_v61 = vpop.permute.xlu0 %885 }
 0x27c   : > { %7171 = vst [vmem:[#allocation29_spill] sm:$0xff] %v5891_v61  ;;  %v4383_v62 = vpack.c.bf16 %v5891_v61, %v5889_v60 }
 0x27e   : > { %4454 = vmatpush3.bf16.xpose.msk.msra.mxu0 %vm5779_vm1, %v4449_v57  ;;  %4384 = vmatprep.subr.bf16.mxu1 %v4383_v62 }
 0x27f   : > { %v5899_v1 = vpop.permute.xlu0 %889  ;;  %4386 = vmatpush3.bf16.msra.mxu1 %v4383_v62 }
 0x280   : > { %7173 = vst [vmem:[#allocation31_spill] sm:$0xff] %v5899_v1  ;;  %v4387_v2 = vpack.c.bf16 %v5899_v1, %v5897_v63 }
 0x282   : > { %4388 = vmatprep.subr.bf16.mxu1 %v4387_v2 }
 0x283   : > { %v4780_v4 = vpop.permute.xlu0 %4779  ;;  %4390 = vmatpush3.bf16.msra.mxu1 %v4387_v2 }
 0x284   : > { %v4782_v5 = vunpack.i.h.bf16 %v4780_v4  ;;  %v4781_v6 = vunpack.i.l.bf16 %v4780_v4 }
 0x285   : > { %4180 = vmatmul.mubr.msk.f32.vlgmr.msra.gmra.mrb[24].mxu0 %vm640_vm0, %v5693_v28 }
 0x286   : > { %4182 = vmatprep.mubr.msk.f32.mxu0 %vm640_vm0, %v5711_v33  ;;  %v5907_v7 = vpack.c.bf16 %v4782_v5, %v4781_v6 }
 0x288   : > { %4416 = vmatprep.subr.bf16.mxu1 %v5907_v7 }
 0x289   : > { %4183 = vmatmul.mubr.msk.f32.gmra.mrb[26].mxu0 %vm640_vm0, %v5705_v31 }
 0x28a   : > { %4185 = vmatprep.mubr.msk.f32.mxu0 %vm640_vm0, %v5717_v34 }
 0x28d   : > { %4186 = vmatmul.mubr.msk.f32.gmra.mrb[28].mxu0 %vm640_vm0, %v5719_v35 }
 0x28e   : > { %4188 = vmatprep.mubr.msk.f32.mxu0 %vm640_vm0, %v5729_v37 }
 0x291   : > { %4189 = vmatmul.mubr.msk.f32.gmra.mrb[30].mxu0 %vm640_vm0, %v5731_v38 }
 0x333   : > { %v4069_v8 = vpop.f32.mrb[0].mxu1 }
 0x334   : > { %v5920_v11 = vmul.f32 0.25, %v4069_v8  ;;  %v739_v12 = vpop.f32.mrb[1].mxu1 }
 0x335   : > { %v5928_v27 = vmul.f32 0.25, %v739_v12 }
 0x336   : > { %v790_v13 = vsel %vm786_vm2, %v5920_v11, -inf }
 0x337   : > { %v4125_v14 = vpop.f32.mrb[16].mxu0  ;;  %791 = vmax.xlane.f32.xlu1 %v790_v13  ;;  %v4072_v16 = vpop.f32.mrb[2].mxu1  ;;  %v787_v26 = vsel %vm786_vm2, %v5928_v27, -inf }
 0x338   : > { %v5924_v19 = vmul.f32 0.25, %v4125_v14  ;;  %v749_v20 = vpop.f32.mrb[3].mxu1  ;;  %v1158_v22 = vpop.f32.mrb[17].mxu0  ;;  %v5936_v17 = vmul.f32 0.25, %v4072_v16 }
 0x339   : > { %v5926_v24 = vmul.f32 0.25, %v1158_v22  ;;  %v5952_v14 = vmul.f32 0.25, %v749_v20 }
 0x33a   : > { %v1208_v42 = vsel %vm786_vm2, %v5924_v19, -inf  ;;  %v796_v5 = vsel %vm786_vm2, %v5936_v17, -inf }
 0x33b   : > { %1209 = vmax.xlane.f32.xlu0 %v1208_v42  ;;  %v4075_v43 = vpop.f32.mrb[4].mxu1  ;;  %v4128_v45 = vpop.f32.mrb[18].mxu0  ;;  %v1205_v46 = vsel %vm786_vm2, %v5926_v24, -inf }
 0x33c   : > { %v1168_v48 = vpop.f32.mrb[19].mxu0  ;;  %1206 = vmax.xlane.f32.xlu1 %v1205_v46  ;;  %v759_v10 = vpop.f32.mrb[5].mxu1  ;;  %v5944_v4 = vmul.f32 0.25, %v4128_v45  ;;  %v5960_v45 = vmul.f32 0.25, %v4075_v43  ;;  %v793_v46 = vsel %vm786_vm2, %v5952_v14, -inf }
 0x33d   : > { %v5934_v15 = vmul.f32 0.25, %v1168_v48  ;;  %v5940_v52 = vmul.f32 0.25, %v759_v10 }
 0x33e   : > { %v1214_v16 = vsel %vm786_vm2, %v5944_v4, -inf }
 0x33f   : > { %v4131_v53 = vpop.f32.mrb[20].mxu0  ;;  %788 = vmax.xlane.f32.xlu0 %v787_v26  ;;  %v4078_v56 = vpop.f32.mrb[6].mxu1  ;;  %v1211_v57 = vsel %vm786_vm2, %v5934_v15, -inf  ;;  %v799_v12 = vsel %vm786_vm2, %v5940_v52, -inf  ;;  %v802_v26 = vsel %vm786_vm2, %v5960_v45, -inf }
 0x340   : > { %v1178_v62 = vpop.f32.mrb[21].mxu0  ;;  %1212 = vmax.xlane.f32.xlu1 %v1211_v57  ;;  %v769_v2 = vpop.f32.mrb[7].mxu1  ;;  %v5968_v10 = vmul.f32 0.25, %v4131_v53  ;;  %v5974_v57 = vmul.f32 0.25, %v4078_v56 }
 0x341   : > { %v5948_v6 = vmul.f32 0.25, %v1178_v62  ;;  %v5956_v22 = vmul.f32 0.25, %v769_v2 }
 0x342   : > { %v1220_v62 = vsel %vm786_vm2, %v5968_v10, -inf  ;;  %v808_v53 = vsel %vm786_vm2, %v5974_v57, -inf }
 0x343   : > { %v4134_v8 = vpop.f32.mrb[22].mxu0  ;;  %797 = vmax.xlane.f32.xlu0 %v796_v5  ;;  %v1217_v42 = vsel %vm786_vm2, %v5948_v6, -inf  ;;  %v805_v20 = vsel %vm786_vm2, %v5956_v22, -inf }
 0x344   : > { %v1188_v13 = vpop.f32.mrb[23].mxu0  ;;  %800 = vmax.xlane.f32.xlu1 %v799_v12  ;;  %v5978_v2 = vmul.f32 0.25, %v4134_v8 }
 0x345   : > { %v5964_v48 = vmul.f32 0.25, %v1188_v13 }
 0x346   : > { %v1226_v56 = vsel %vm786_vm2, %v5978_v2, -inf }
 0x347   : > { %1215 = vmax.xlane.f32.xlu0 %v1214_v16  ;;  %v1223_v43 = vsel %vm786_vm2, %v5964_v48, -inf }
 0x348   : > { %1218 = vmax.xlane.f32.xlu1 %v1217_v42 }
 0x34b   : > { %794 = vmax.xlane.f32.xlu0 %v793_v46 }
 0x34c   : > { %806 = vmax.xlane.f32.xlu1 %v805_v20 }
 0x34f   : > { %803 = vmax.xlane.f32.xlu0 %v802_v26 }
 0x350   : > { %1224 = vmax.xlane.f32.xlu1 %v1223_v43 }
 0x353   : > { %1221 = vmax.xlane.f32.xlu0 %v1220_v62 }
 0x357   : > { %809 = vmax.xlane.f32.xlu0 %v808_v53 }
 0x358   : > { %v4181_v5 = vpop.f32.mrb[24].mxu0 }
 0x359   : > { %v1568_v12 = vpop.f32.mrb[25].mxu0  ;;  %v5982_v13 = vmul.f32 0.25, %v4181_v5 }
 0x35a   : > { %v5984_v16 = vmul.f32 0.25, %v1568_v12 }
 0x35b   : > { %1227 = vmax.xlane.f32.xlu0 %v1226_v56  ;;  %v1618_v20 = vsel %vm786_vm2, %v5982_v13, -inf }
 0x35c   : > { %v4184_v42 = vpop.f32.mrb[26].mxu0  ;;  %v1615_v46 = vsel %vm786_vm2, %v5984_v16, -inf }
 0x35d   : > { %v1578_v8 = vpop.f32.mrb[27].mxu0  ;;  %1616 = vmax.xlane.f32.xlu1 %v1615_v46  ;;  %v6014_v0 = vmul.f32 0.25, %v4184_v42 }
 0x35e   : > { %v6002_v5 = vmul.f32 0.25, %v1578_v8 }
 0x35f   : > { %1619 = vmax.xlane.f32.xlu0 %v1618_v20 }
 0x360   : > { %v4187_v26 = vpop.f32.mrb[28].mxu0  ;;  %v1621_v56 = vsel %vm786_vm2, %v6002_v5, -inf }
 0x361   : > { %v1588_v43 = vpop.f32.mrb[29].mxu0  ;;  %v6016_v8 = vmul.f32 0.25, %v4187_v26 }
 0x362   : > { %v6004_v12 = vmul.f32 0.25, %v1588_v43  ;;  %v1624_v43 = vsel %vm786_vm2, %v6014_v0, -inf }
 0x364   : > { %v4190_v62 = vpop.f32.mrb[30].mxu0  ;;  %v1627_v46 = vsel %vm786_vm2, %v6004_v12, -inf }
 0x365   : > { %v1598_v53 = vpop.f32.mrb[31].mxu0  ;;  %v6020_v60 = vmul.f32 0.25, %v4190_v62 }
 0x36e   : > { %4794 = vrot.lane.b32.xlu1 %v5697_v29, %s5305_s27  ;;  %v6008_v29 = vmul.f32 0.25, %v1598_v53  ;;  %v1630_v53 = vsel %vm786_vm2, %v6016_v8, -inf }
 0x370   : > { %v1633_v20 = vsel %vm786_vm2, %v6008_v29, -inf }
 0x375   : > { %4799 = vrot.lane.b32.xlu0 %v5709_v32, %s5304_s26 }
 0x379   : > { %4804 = vrot.lane.b32.xlu0 %v5723_v36, %s5304_s26 }
 0x37d   : > { %4809 = vrot.lane.b32.xlu0 %v5735_v39, %s5304_s26 }
 0x381   : > { %4814 = vrot.lane.b32.xlu0 %v5743_v40, %s5304_s26 }
 0x392   : > { %1622 = vmax.xlane.f32.xlu1 %v1621_v56  ;;  %v1636_v56 = vsel %vm786_vm2, %v6020_v60, -inf }
 0x396   : > { %1628 = vmax.xlane.f32.xlu1 %v1627_v46  ;;  %v6026_v46 = vpop.permute.xlu1 %4784 }
 0x39a   : > { %1634 = vmax.xlane.f32.xlu1 %v1633_v20  ;;  %v6028_v42 = vpop.permute.xlu1 %4789 }
 0x3a0   : > { %1625 = vmax.xlane.f32.xlu0 %v1624_v43 }
 0x3a4   : > { %1631 = vmax.xlane.f32.xlu0 %v1630_v53 }
 0x3a8   : > { %1637 = vmax.xlane.f32.xlu0 %v1636_v56 }
 0x3c4   : > { %v792_v26 = vpop.xlane.xlu1 %791 }
 0x3c5   : > { %v812_v20 = vsub.f32 %v5920_v11, %v792_v26 }
 0x3c7   : > { %v821_v9 = vmul.f32 1.442695, %v812_v20 }
 0x3c8   : > { %v1210_v55 = vpop.xlane.xlu0 %1209 }
 0x3c9   : > { %4838 = vpow2.f32 %v821_v9  ;;  %v1230_v62 = vsub.f32 %v5924_v19, %v1210_v55  ;;  %v1207_v43 = vpop.xlane.xlu1 %1206 }
 0x3ca   : > { %v1229_v53 = vsub.f32 %v5926_v24, %v1207_v43 }
 0x3cb   : > { %v1239_v47 = vmul.f32 1.442695, %v1230_v62 }
 0x3cc   : > { %v789_v54 = vpop.xlane.xlu0 %788  ;;  %v1237_v1 = vmul.f32 1.442695, %v1229_v53 }
 0x3cd   : > { %4840 = vpow2.f32 %v1239_v47  ;;  %v811_v56 = vsub.f32 %v5928_v27, %v789_v54  ;;  %v1213_v41 = vpop.xlane.xlu1 %1212 }
 0x3ce   : > { %v1231_v24 = vsub.f32 %v5934_v15, %v1213_v41 }
 0x3cf   : > { %v819_v49 = vmul.f32 1.442695, %v811_v56 }
 0x3d0   : > { %v798_v63 = vpop.xlane.xlu0 %797  ;;  %v1241_v43 = vmul.f32 1.442695, %v1231_v24 }
 0x3d1   : > { %4842 = vpow2.f32 %v819_v49  ;;  %v814_v11 = vsub.f32 %v5936_v17, %v798_v63  ;;  %v801_v26 = vpop.xlane.xlu1 %800 }
 0x3d2   : > { %4844 = vpow2.f32 %v1237_v1 }
 0x3d3   : > { %v6035_v20 = vpop.eup %4838  ;;  %v825_v9 = vmul.f32 1.442695, %v814_v11 }
 0x3d4   : > { %v1216_v55 = vpop.xlane.xlu0 %1215  ;;  %v838_v19 = vsel %vm786_vm2, %v6035_v20, 0.0 }
 0x3d5   : > { %4846 = vpow2.f32 %v825_v9  ;;  %v1232_v47 = vsub.f32 %v5944_v4, %v1216_v55  ;;  %839 = vadd.xlane.f32.xlu0 %v838_v19  ;;  %v1219_v27 = vpop.xlane.xlu1 %1218  ;;  %v815_v4 = vsub.f32 %v5940_v52, %v801_v26 }
 0x3d6   : > { %v1233_v19 = vsub.f32 %v5948_v6, %v1219_v27 }
 0x3d7   : > { %v6040_v54 = vpop.eup %4840  ;;  %v1243_v49 = vmul.f32 1.442695, %v1232_v47 }
 0x3d8   : > { %v795_v63 = vpop.xlane.xlu0 %794  ;;  %v1256_v17 = vsel %vm786_vm2, %v6040_v54, 0.0 }
 0x3d9   : > { %4848 = vpow2.f32 %v1243_v49  ;;  %v813_v1 = vsub.f32 %v5952_v14, %v795_v63  ;;  %1257 = vadd.xlane.f32.xlu0 %v1256_v17  ;;  %v807_v9 = vpop.xlane.xlu1 %806  ;;  %v827_v14 = vmul.f32 1.442695, %v815_v4  ;;  %v1245_v63 = vmul.f32 1.442695, %v1233_v19 }
 0x3da   : > { %v817_v17 = vsub.f32 %v5956_v22, %v807_v9 }
 0x3db   : > { %v6046_v62 = vpop.eup %4842  ;;  %v823_v53 = vmul.f32 1.442695, %v813_v1 }
 0x3dc   : > { %v804_v56 = vpop.xlane.xlu0 %803  ;;  %v835_v41 = vsel %vm786_vm2, %v6046_v62, 0.0  ;;  %v6051_v15 = vpop.eup %4844 }
 0x3dd   : > { %4850 = vpow2.f32 %v823_v53  ;;  %v816_v11 = vsub.f32 %v5960_v45, %v804_v56  ;;  %836 = vadd.xlane.f32.xlu1 %v835_v41  ;;  %v1253_v24 = vsel %vm786_vm2, %v6051_v15, 0.0  ;;  %v1225_v27 = vpop.xlane.xlu1 %1224 }
 0x3de   : > { %4852 = vpow2.f32 %v1241_v43  ;;  %v1235_v56 = vsub.f32 %v5964_v48, %v1225_v27 }
 0x3df   : > { %v6054_v55 = vpop.eup %4846  ;;  %v829_v47 = vmul.f32 1.442695, %v816_v11 }
 0x3e0   : > { %v1222_v52 = vpop.xlane.xlu0 %1221  ;;  %v844_v26 = vsel %vm786_vm2, %v6054_v55, 0.0 }
 0x3e1   : > { %4854 = vpow2.f32 %v829_v47  ;;  %v1234_v49 = vsub.f32 %v5968_v10, %v1222_v52  ;;  %845 = vadd.xlane.f32.xlu0 %v844_v26  ;;  %1254 = vadd.xlane.f32.xlu1 %v1253_v24  ;;  %v831_v10 = vmul.f32 1.442695, %v817_v17 }
 0x3e2   : > { %4856 = vpow2.f32 %v827_v14 }
 0x3e3   : > { %v6062_v45 = vpop.eup %4848  ;;  %v1247_v6 = vmul.f32 1.442695, %v1234_v49 }
 0x3e4   : > { %v810_v1 = vpop.xlane.xlu0 %809  ;;  %v1262_v43 = vsel %vm786_vm2, %v6062_v45, 0.0 }
 0x3e5   : > { %4858 = vpow2.f32 %v1247_v6  ;;  %v818_v4 = vsub.f32 %v5974_v57, %v810_v1  ;;  %1263 = vadd.xlane.f32.xlu0 %v1262_v43  ;;  %v1249_v57 = vmul.f32 1.442695, %v1235_v56 }
 0x3e6   : > { %4860 = vpow2.f32 %v1245_v63 }
 0x3e7   : > { %v6068_v53 = vpop.eup %4850  ;;  %v833_v41 = vmul.f32 1.442695, %v818_v4 }
 0x3e8   : > { %v1228_v11 = vpop.xlane.xlu0 %1227  ;;  %v841_v22 = vsel %vm786_vm2, %v6068_v53, 0.0  ;;  %v6073_v9 = vpop.eup %4852 }
 0x3e9   : > { %4862 = vpow2.f32 %v833_v41  ;;  %v1236_v14 = vsub.f32 %v5978_v2, %v1228_v11  ;;  %842 = vadd.xlane.f32.xlu1 %v841_v22  ;;  %v1259_v26 = vsel %vm786_vm2, %v6073_v9, 0.0 }
 0x3ea   : > { %4864 = vpow2.f32 %v831_v10 }
 0x3eb   : > { %v6076_v19 = vpop.eup %4854  ;;  %v1251_v47 = vmul.f32 1.442695, %v1236_v14 }
 0x3ec   : > { %v1620_v52 = vpop.xlane.xlu0 %1619  ;;  %v850_v48 = vsel %vm786_vm2, %v6076_v19, 0.0  ;;  %v6082_v24 = vpop.eup %4856 }
 0x3ed   : > { %4866 = vpow2.f32 %v1251_v47  ;;  %v1640_v49 = vsub.f32 %v5982_v13, %v1620_v52  ;;  %851 = vadd.xlane.f32.xlu0 %v850_v48  ;;  %1260 = vadd.xlane.f32.xlu1 %v1259_v26  ;;  %v847_v6 = vsel %vm786_vm2, %v6082_v24, 0.0  ;;  %v1617_v47 = vpop.xlane.xlu1 %1616 }
 0x3ee   : > { %4868 = vpow2.f32 %v1249_v57 }
 0x3ef   : > { %v6085_v2 = vpop.eup %4858  ;;  %v1649_v63 = vmul.f32 1.442695, %v1640_v49  ;;  %v1639_v49 = vsub.f32 %v5984_v16, %v1617_v47 }
 0x3f0   : > { %v1268_v17 = vsel %vm786_vm2, %v6085_v2, 0.0  ;;  %v6091_v27 = vpop.eup %4860  ;;  %v6119_v52 = vpop.permute.xlu0 %4799 }
 0x3f1   : > { %4870 = vpow2.f32 %v1649_v63  ;;  %1269 = vadd.xlane.f32.xlu0 %v1268_v17  ;;  %848 = vadd.xlane.f32.xlu1 %v847_v6  ;;  %v1265_v43 = vsel %vm786_vm2, %v6091_v27, 0.0  ;;  %v6123_v48 = vpop.permute.xlu1 %4794  ;;  %v1647_v6 = vmul.f32 1.442695, %v1639_v49 }
 0x3f2   : > { %v4797_v61 = vunpack.i.h.bf16 %v6123_v48 }
 0x3f3   : > { %v6093_v1 = vpop.eup %4862  ;;  %4872 = vpow2.f32 %v1647_v6 }
 0x3f4   : > { %v856_v13 = vsel %vm786_vm2, %v6093_v1, 0.0  ;;  %v6099_v4 = vpop.eup %4864  ;;  %v6125_v26 = vpop.permute.xlu0 %4804 }
 0x3f5   : > { %857 = vadd.xlane.f32.xlu0 %v856_v13  ;;  %1266 = vadd.xlane.f32.xlu1 %v1265_v43  ;;  %v853_v41 = vsel %vm786_vm2, %v6099_v4, 0.0 }
 0x3f7   : > { %v6101_v10 = vpop.eup %4866 }
 0x3f8   : > { %v1274_v56 = vsel %vm786_vm2, %v6101_v10, 0.0  ;;  %v6107_v11 = vpop.eup %4868  ;;  %v6128_v17 = vpop.permute.xlu0 %4809 }
 0x3f9   : > { %1275 = vadd.xlane.f32.xlu0 %v1274_v56  ;;  %854 = vadd.xlane.f32.xlu1 %v853_v41  ;;  %v1271_v57 = vsel %vm786_vm2, %v6107_v11, 0.0 }
 0x3fb   : > { %v6109_v22 = vpop.eup %4870 }
 0x3fc   : > { %v1666_v14 = vsel %vm786_vm2, %v6109_v22, 0.0  ;;  %v6131_v13 = vpop.permute.xlu0 %4814 }
 0x3fd   : > { %1667 = vadd.xlane.f32.xlu1 %v1666_v14  ;;  %1272 = vadd.xlane.f32.xlu0 %v1271_v57  ;;  %v6135_v47 = vpop.eup %4872 }
 0x40e   : > { %4819 = vrot.lane.b32.xlu1 %v5709_v32, %s5302_s9 }
 0x413   : > { %4824 = vrot.lane.b32.xlu0 %v5723_v36, %s5302_s9 }
 0x417   : > { %4829 = vrot.lane.b32.xlu0 %v5735_v39, %s5302_s9 }
 0x41f   : > { %v1623_v63 = vpop.xlane.xlu1 %1622 }
 0x420   : > { %v1641_v32 = vsub.f32 %v6002_v5, %v1623_v63 }
 0x422   : > { %v1651_v36 = vmul.f32 1.442695, %v1641_v32  ;;  %v1663_v32 = vsel %vm786_vm2, %v6135_v47, 0.0 }
 0x423   : > { %v1629_v43 = vpop.xlane.xlu1 %1628 }
 0x424   : > { %4874 = vpow2.f32 %v1651_v36  ;;  %v1643_v41 = vsub.f32 %v6004_v12, %v1629_v43 }
 0x426   : > { %v1655_v5 = vmul.f32 1.442695, %v1643_v41 }
 0x427   : > { %v1635_v57 = vpop.xlane.xlu1 %1634 }
 0x428   : > { %v1645_v63 = vsub.f32 %v6008_v29, %v1635_v57 }
 0x42d   : > { %v1626_v56 = vpop.xlane.xlu0 %1625 }
 0x42e   : > { %v1642_v39 = vsub.f32 %v6014_v0, %v1626_v56  ;;  %v6141_v36 = vpop.eup %4874  ;;  %v1659_v0 = vmul.f32 1.442695, %v1645_v63 }
 0x42f   : > { %v1669_v12 = vsel %vm786_vm2, %v6141_v36, 0.0 }
 0x430   : > { %v1653_v14 = vmul.f32 1.442695, %v1642_v39 }
 0x431   : > { %v1632_v16 = vpop.xlane.xlu0 %1631 }
 0x432   : > { %4876 = vpow2.f32 %v1653_v14  ;;  %v1644_v49 = vsub.f32 %v6016_v8, %v1632_v16 }
 0x434   : > { %v1657_v6 = vmul.f32 1.442695, %v1644_v49 }
 0x435   : > { %v1638_v16 = vpop.xlane.xlu0 %1637 }
 0x436   : > { %4878 = vpow2.f32 %v1657_v6  ;;  %1664 = vadd.xlane.f32.xlu0 %v1663_v32  ;;  %v1646_v49 = vsub.f32 %v6020_v60, %v1638_v16 }
 0x437   : > { %4880 = vpow2.f32 %v1655_v5 }
 0x438   : > { %4882 = vpow2.f32 %v1659_v0  ;;  %v1661_v5 = vmul.f32 1.442695, %v1646_v49 }
 0x43a   : > { %1670 = vadd.xlane.f32.xlu0 %v1669_v12  ;;  %4884 = vpow2.f32 %v1661_v5 }
 0x43c   : > { %v6145_v43 = vpop.eup %4876 }
 0x43d   : > { %v1672_v29 = vsel %vm786_vm2, %v6145_v43, 0.0 }
 0x43e   : > { %1673 = vadd.xlane.f32.xlu1 %v1672_v29 }
 0x440   : > { %v6149_v8 = vpop.eup %4878 }
 0x441   : > { %v1678_v56 = vsel %vm786_vm2, %v6149_v8, 0.0  ;;  %v6153_v39 = vpop.eup %4880 }
 0x442   : > { %1679 = vadd.xlane.f32.xlu1 %v1678_v56  ;;  %v1675_v41 = vsel %vm786_vm2, %v6153_v39, 0.0  ;;  %v6157_v14 = vpop.eup %4882 }
 0x443   : > { %v1681_v57 = vsel %vm786_vm2, %v6157_v14, 0.0 }
 0x444   : > { %v6172_v6 = vpop.eup %4884 }
 0x445   : > { %v1684_v32 = vsel %vm786_vm2, %v6172_v6, 0.0 }
 0x446   : > { %1676 = vadd.xlane.f32.xlu1 %v1675_v41  ;;  %v4787_v41 = vunpack.i.h.bf16 %v6026_v46 }
 0x44a   : > { %1682 = vadd.xlane.f32.xlu1 %v1681_v57  ;;  %v4786_v57 = vunpack.i.l.bf16 %v6026_v46 }
 0x44c   : > { %v4419_v50 = vpack.c.bf16 %v4787_v41, %v4786_v57  ;;  %v4802_v41 = vunpack.i.h.bf16 %v6119_v52 }
 0x450   : > { %4834 = vrot.lane.b32.xlu0 %v5743_v40, %s5302_s9 }
 0x45b   : > { %1858 = vrot.lane.b32.xlu1 %v5693_v28, %s5303_s18 }
 0x45f   : > { %1868 = vrot.lane.b32.xlu1 %v5729_v37, %s5303_s18 }
 0x462   : > { %v840_v63 = vpop.xlane.xlu0 %839 }
 0x463   : > { %2123 = vrot.lane.b32.xlu1 %v5693_v28, %s5305_s27  ;;  %4886 = vrcp.f32 %v840_v63 }
 0x466   : > { %v1258_v60 = vpop.xlane.xlu0 %1257 }
 0x467   : > { %2125 = vrot.lane.b32.xlu1 %v5711_v33, %s5305_s27 }
 0x46a   : > { %v837_v40 = vpop.xlane.xlu1 %836 }
 0x46b   : > { %4888 = vrcp.f32 %v837_v40  ;;  %v4792_v40 = vunpack.i.h.bf16 %v6028_v42 }
 0x46d   : > { %v4887_v29 = vpop.eup %4886 }
 0x46e   : > { %v846_v0 = vpop.xlane.xlu0 %845  ;;  %v1255_v12 = vpop.xlane.xlu1 %1254  ;;  %v862_v63 = vmul.f32 %v4887_v29, %v6035_v20 }
 0x46f   : > { %1685 = vadd.xlane.f32.xlu0 %v1684_v32  ;;  %4890 = vrcp.f32 %v846_v0  ;;  %v4791_v32 = vunpack.i.l.bf16 %v6028_v42 }
 0x471   : > { %v4423_v20 = vpack.c.bf16 %v4792_v40, %v4791_v32 }
 0x472   : > { %v1264_v16 = vpop.xlane.xlu0 %1263 }
 0x475   : > { %v4889_v56 = vpop.eup %4888 }
 0x476   : > { %v843_v49 = vpop.xlane.xlu1 %842  ;;  %v860_v5 = vmul.f32 %v4889_v56, %v6046_v62  ;;  %v4796_v62 = vunpack.i.l.bf16 %v6123_v48 }
 0x477   : > { %4892 = vrcp.f32 %v843_v49 }
 0x478   : > { %4095 = vmatprep.mubr.msk.f32.mxu1 %vm786_vm2, %v860_v5  ;;  %v4427_v5 = vpack.c.bf16 %v4797_v61, %v4796_v62 }
 0x479   : > { %4096 = vmatmul.mubr.msk.f32.vlgmr.msra.gmra.mrb[8].mxu1 %vm786_vm2, %v862_v63  ;;  %v4891_v49 = vpop.eup %4890 }
 0x47a   : > { %4418 = vmatpush3.bf16.msra.mxu1 %v5907_v7  ;;  %v852_v46 = vpop.xlane.xlu0 %851  ;;  %v1261_v0 = vpop.xlane.xlu1 %1260  ;;  %v4801_v7 = vunpack.i.l.bf16 %v6119_v52  ;;  %v866_v48 = vmul.f32 %v4891_v49, %v6054_v55  ;;  %v4807_v49 = vunpack.i.h.bf16 %v6125_v26 }
 0x47b   : > { %4420 = vmatprep.subr.bf16.mxu1 %v4419_v50  ;;  %4894 = vrcp.f32 %v852_v46 }
 0x47c   : > { %v4455_v61 = vpack.c.bf16 %v4802_v41, %v4801_v7  ;;  %v4812_v41 = vunpack.i.h.bf16 %v6128_v17  ;;  %v4811_v7 = vunpack.i.l.bf16 %v6128_v17  ;;  %v4816_v17 = vunpack.i.l.bf16 %v6131_v13 }
 0x47e   : > { %4422 = vmatpush3.bf16.msra.mxu1 %v4419_v50  ;;  %v1270_v29 = vpop.xlane.xlu0 %1269  ;;  %v849_v56 = vpop.xlane.xlu1 %848 }
 0x47f   : > { %4424 = vmatprep.subr.bf16.mxu1 %v4423_v20  ;;  %4896 = vrcp.f32 %v849_v56 }
 0x480   : > { %4898 = vrcp.f32 %v1255_v12 }
 0x481   : > { %v4893_v42 = vpop.eup %4892 }
 0x482   : > { %4426 = vmatpush3.bf16.msra.mxu1 %v4423_v20  ;;  %v1267_v57 = vpop.xlane.xlu1 %1266  ;;  %v864_v63 = vmul.f32 %v4893_v42, %v6068_v53  ;;  %v858_v50 = vpop.xlane.xlu0 %857  ;;  %v4806_v42 = vunpack.i.l.bf16 %v6125_v26 }
 0x483   : > { %4428 = vmatprep.subr.bf16.mxu1 %v4427_v5  ;;  %4900 = vrcp.f32 %v858_v50  ;;  %v4463_v50 = vpack.c.bf16 %v4812_v41, %v4811_v7 }
 0x484   : > { %4098 = vmatprep.mubr.msk.f32.mxu1 %vm786_vm2, %v864_v63  ;;  %v4459_v26 = vpack.c.bf16 %v4807_v49, %v4806_v42 }
 0x485   : > { %1856 = vrot.lane.b32.xlu0 %v5699_v30, %s5303_s18  ;;  %4099 = vmatmul.mubr.msk.f32.gmra.mrb[10].mxu1 %vm786_vm2, %v866_v48  ;;  %v4895_v52 = vpop.eup %4894  ;;  %v4817_v48 = vunpack.i.h.bf16 %v6131_v13 }
 0x486   : > { %4430 = vmatpush3.bf16.msra.mxu1 %v4427_v5  ;;  %v855_v40 = vpop.xlane.xlu1 %854  ;;  %v1276_v53 = vpop.xlane.xlu0 %1275  ;;  %v870_v46 = vmul.f32 %v4895_v52, %v6076_v19 }
 0x487   : > { %4456 = vmatprep.subr.bf16.mxu1 %v4455_v61  ;;  %4902 = vrcp.f32 %v855_v40  ;;  %v4467_v52 = vpack.c.bf16 %v4817_v48, %v4816_v17 }
 0x488   : > { %4904 = vrcp.f32 %v1258_v60 }
 0x489   : > { %1860 = vrot.lane.b32.xlu0 %v5711_v33, %s5303_s18  ;;  %v4897_v55 = vpop.eup %4896  ;;  %4906 = vrcp.f32 %v1261_v0 }
 0x48a   : > { %v868_v32 = vmul.f32 %v4897_v55, %v6082_v24  ;;  %4908 = vrcp.f32 %v1264_v16  ;;  %v4899_v12 = vpop.eup %4898  ;;  %v1273_v20 = vpop.xlane.xlu0 %1272 }
 0x48b   : > { %4910 = vrcp.f32 %v1267_v57  ;;  %v1278_v16 = vmul.f32 %v4899_v12, %v6051_v15 }
 0x48c   : > { %4101 = vmatprep.mubr.msk.f32.mxu1 %vm786_vm2, %v868_v32  ;;  %4912 = vrcp.f32 %v1270_v29  ;;  %v1668_v29 = vpop.xlane.xlu1 %1667 }
 0x48d   : > { %1862 = vrot.lane.b32.xlu0 %v5705_v31, %s5303_s18  ;;  %4102 = vmatmul.mubr.msk.f32.gmra.mrb[12].mxu1 %vm786_vm2, %v870_v46  ;;  %v4901_v62 = vpop.eup %4900  ;;  %4914 = vrcp.f32 %v1273_v20 }
 0x48e   : > { %v874_v19 = vmul.f32 %v4901_v62, %v6093_v1  ;;  %4916 = vrcp.f32 %v1276_v53 }
 0x48f   : > { %4918 = vrcp.f32 %v1668_v29 }
 0x491   : > { %1864 = vrot.lane.b32.xlu0 %v5717_v34, %s5303_s18  ;;  %v4903_v60 = vpop.eup %4902 }
 0x492   : > { %v872_v24 = vmul.f32 %v4903_v60, %v6099_v4  ;;  %v4905_v0 = vpop.eup %4904 }
 0x493   : > { %v4907_v56 = vpop.eup %4906  ;;  %v1280_v1 = vmul.f32 %v4905_v0, %v6040_v54 }
 0x494   : > { %4104 = vmatprep.mubr.msk.f32.mxu1 %vm786_vm2, %v872_v24  ;;  %v4909_v4 = vpop.eup %4908  ;;  %v1282_v5 = vmul.f32 %v4907_v56, %v6073_v9 }
 0x495   : > { %1866 = vrot.lane.b32.xlu0 %v5719_v35, %s5303_s18  ;;  %4105 = vmatmul.mubr.msk.f32.gmra.mrb[14].mxu1 %vm786_vm2, %v874_v19  ;;  %v4911_v15 = vpop.eup %4910  ;;  %v1284_v54 = vmul.f32 %v4909_v4, %v6062_v45 }
 0x496   : > { %4151 = vmatprep.mubr.msk.f32.mxu1 %vm786_vm2, %v1278_v16  ;;  %v4913_v57 = vpop.eup %4912  ;;  %v1286_v9 = vmul.f32 %v4911_v15, %v6091_v27 }
 0x497   : > { %v4915_v63 = vpop.eup %4914  ;;  %v1288_v45 = vmul.f32 %v4913_v57, %v6085_v2  ;;  %v4825_v2 = vpop.permute.xlu0 %4824 }
 0x498   : > { %v4917_v40 = vpop.eup %4916  ;;  %v1290_v27 = vmul.f32 %v4915_v63, %v6107_v11  ;;  %v4827_v24 = vunpack.i.h.bf16 %v4825_v2 }
 0x499   : > { %1870 = vrot.lane.b32.xlu0 %v5731_v38, %s5303_s18  ;;  %4152 = vmatmul.mubr.msk.f32.vlgmr.msra.gmra.mrb[16].mxu1 %vm786_vm2, %v1280_v1  ;;  %v1292_v13 = vmul.f32 %v4917_v40, %v6101_v10  ;;  %v4919_v20 = vpop.eup %4918  ;;  %v4826_v10 = vunpack.i.l.bf16 %v4825_v2 }
 0x49a   : > { %4458 = vmatpush3.bf16.msra.mxu1 %v4455_v61  ;;  %4154 = vmatprep.mubr.msk.f32.mxu1 %vm786_vm2, %v1282_v5  ;;  %v4820_v61 = vpop.permute.xlu1 %4819  ;;  %v1690_v16 = vmul.f32 %v4919_v20, %v6109_v22 }
 0x49b   : > { %4460 = vmatprep.subr.bf16.mxu1 %v4459_v26  ;;  %v4822_v55 = vunpack.i.h.bf16 %v4820_v61  ;;  %v4821_v53 = vunpack.i.l.bf16 %v4820_v61  ;;  %v4830_v11 = vpop.permute.xlu0 %4829  ;;  %v4477_v49 = vpack.c.bf16 %v4827_v24, %v4826_v10 }
 0x49c   : > { %v4831_v4 = vunpack.i.l.bf16 %v4830_v11 }
 0x49d   : > { %2121 = vrot.lane.b32.xlu0 %v5699_v30, %s5305_s27  ;;  %4155 = vmatmul.mubr.msk.f32.gmra.mrb[18].mxu1 %vm786_vm2, %v1284_v54  ;;  %v4471_v32 = vpack.c.bf16 %v4822_v55, %v4821_v53 }
 0x49e   : > { %4462 = vmatpush3.bf16.msra.mxu1 %v4459_v26  ;;  %4157 = vmatprep.mubr.msk.f32.mxu1 %vm786_vm2, %v1286_v9 }
 0x49f   : > { %4464 = vmatprep.subr.bf16.mxu1 %v4463_v50 }
 0x4a1   : > { %2127 = vrot.lane.b32.xlu0 %v5705_v31, %s5305_s27  ;;  %4158 = vmatmul.mubr.msk.f32.gmra.mrb[20].mxu1 %vm786_vm2, %v1288_v45  ;;  %v7174_v45 = vmov 0.0  }
 0x4a2   : > { %4466 = vmatpush3.bf16.msra.mxu1 %v4463_v50  ;;  %4160 = vmatprep.mubr.msk.f32.mxu1 %vm786_vm2, %v1290_v27  ;;  %v2437_v40 = vrot.slane %v7174_v45, 7 }
 0x4a3   : > { %4468 = vmatprep.subr.bf16.mxu1 %v4467_v52 }
 0x4a4   : > { %v6273_v53 = vsel %vm2455_vm3, 0.0, %v2437_v40  ;;  %v6276_v44 = vsel %vm2455_vm3, %v2437_v40, 0.0 }
 0x4a5   : > { %4161 = vmatmul.mubr.msk.f32.gmra.mrb[22].mxu1 %vm786_vm2, %v1292_v13  ;;  %7175 = vst [vmem:[#allocation32_spill] sm:$0xff] %v6273_v53  ;;  %7176 = vst [vmem:[#allocation33_spill] sm:$0xff] %v6276_v44  ;;  %v2576_v13 = vsub.s32 2, %v5646_v58 }
 0x4a6   : > { %4470 = vmatpush3.bf16.msra.mxu1 %v4467_v52  ;;  %v2474_v52 = vld [vmem:[#allocation7] sm:$0x7] }
 0x4a7   : > { %4473 = vmatprep.subr.msk.bf16.mxu1 %vm5779_vm1, %v4471_v32  ;;  %v6291_v58 = vrot.slane %v2474_v52, %v2576_v13 }
 0x4a9   : > { %v2578_v10 = vmul.f32 %v6291_v58, %v6273_v53 }
 0x4c3   : > { %v1665_v46 = vpop.xlane.xlu0 %1664 }
 0x4c4   : > { %4920 = vrcp.f32 %v1665_v46 }
 0x4c7   : > { %v1671_v12 = vpop.xlane.xlu0 %1670 }
 0x4c8   : > { %4922 = vrcp.f32 %v1671_v12  ;;  %v2405_v12 = vsel %vm2370_vm4, %v5871_v51, %v5817_v25  ;;  %v6303_v51 = vrot.slane %v2474_v52, %v5649_v59 }
 0x4cb   : > { %v1674_v62 = vpop.xlane.xlu1 %1673  ;;  %v4835_v41 = vpop.permute.xlu0 %4834 }
 0x4cc   : > { %4924 = vrcp.f32 %v1674_v62  ;;  %v4837_v26 = vunpack.i.h.bf16 %v4835_v41  ;;  %v4836_v54 = vunpack.i.l.bf16 %v4835_v41 }
 0x4ce   : > { %v4921_v60 = vpop.eup %4920  ;;  %v4489_v63 = vpack.c.bf16 %v4837_v26, %v4836_v54 }
 0x4cf   : > { %v1680_v19 = vpop.xlane.xlu1 %1679  ;;  %v1688_v0 = vmul.f32 %v4921_v60, %v6135_v47  ;;  %v4832_v47 = vunpack.i.h.bf16 %v4830_v11 }
 0x4d0   : > { %4926 = vrcp.f32 %v1680_v19  ;;  %v2579_v19 = vmul.f32 %v6291_v58, %v6276_v44 }
 0x4d1   : > { %4207 = vmatprep.mubr.msk.f32.mxu1 %vm786_vm2, %v1688_v0  ;;  %v4483_v15 = vpack.c.bf16 %v4832_v47, %v4831_v4 }
 0x4d2   : > { %v4923_v56 = vpop.eup %4922  ;;  %4208 = vmatmul.mubr.msk.f32.vlgmr.msra.gmra.mrb[24].mxu1 %vm786_vm2, %v1690_v16  ;;  %v2481_v16 = vmul.f32 %v6303_v51, %v6273_v53 }
 0x4d3   : > { %4476 = vmatpush3.bf16.xpose.msk.msra.mxu1 %vm5779_vm1, %v4471_v32  ;;  %v1677_v42 = vpop.xlane.xlu1 %1676  ;;  %v1692_v1 = vmul.f32 %v4923_v56, %v6141_v36  ;;  %v6280_v32 = vrot.slane %v2474_v52, %v5684_v21  ;;  %v2475_v56 = vld [vmem:[#allocation7 + $0x4] sm:$0x7] }
 0x4d4   : > { %4928 = vrcp.f32 %v1677_v42  ;;  %4479 = vmatprep.subr.msk.bf16.mxu1 %vm5779_vm1, %v4477_v49  ;;  %v6315_v47 = vrot.slane %v2475_v56, %v5684_v21  ;;  %v6317_v4 = vrot.slane %v2475_v56, %v2576_v13  ;;  %v6331_v54 = vrot.slane %v2475_v56, %v5649_v59 }
 0x4d5   : > { %4210 = vmatprep.mubr.msk.f32.mxu1 %vm786_vm2, %v1692_v1  ;;  %v2502_v46 = vmul.f32 %v6280_v32, %v6276_v44  ;;  %v2611_v1 = vrot.slane %v2578_v10, 2 }
 0x4d6   : > { %v4925_v22 = vpop.eup %4924 }
 0x4d7   : > { %v1683_v29 = vpop.xlane.xlu1 %1682  ;;  %v1694_v5 = vmul.f32 %v4925_v22, %v6145_v43  ;;  %v2535_v24 = vrot.slane %v2502_v46, 1  ;;  %v2612_v22 = vrot.slane %v2579_v19, 2 }
 0x4d8   : > { %4930 = vrcp.f32 %v1683_v29 }
 0x4d9   : > { %4211 = vmatmul.mubr.msk.f32.gmra.mrb[26].mxu1 %vm786_vm2, %v1694_v5  ;;  %v2476_v5 = vld [vmem:[#allocation7 + $0x8] sm:$0x7]  ;;  %v2613_v26 = vsel %vm2610_vm7, %v2611_v1, %v2612_v22 }
 0x4da   : > { %v4927_v36 = vpop.eup %4926 }
 0x4db   : > { %4482 = vmatpush3.bf16.xpose.msk.msra.mxu1 %vm5779_vm1, %v4477_v49  ;;  %v1698_v9 = vmul.f32 %v4927_v36, %v6149_v8 }
 0x4dc   : > { %4485 = vmatprep.subr.msk.bf16.mxu1 %vm5779_vm1, %v4483_v15 }
 0x4de   : > { %v4929_v7 = vpop.eup %4928 }
 0x4df   : > { %v1696_v57 = vmul.f32 %v4929_v7, %v6153_v39  ;;  %v1859_v39 = vpop.permute.xlu1 %1858 }
 0x4e1   : > { %4213 = vmatprep.mubr.msk.f32.mxu1 %vm786_vm2, %v1696_v57 }
 0x4e2   : > { %v4931_v43 = vpop.eup %4930  ;;  %4214 = vmatmul.mubr.msk.f32.gmra.mrb[28].mxu1 %vm786_vm2, %v1698_v9  ;;  %v6334_v9 = vrot.slane %v2476_v5, %v5684_v21 }
 0x4e3   : > { %4488 = vmatpush3.bf16.xpose.msk.msra.mxu1 %vm5779_vm1, %v4483_v15  ;;  %v1700_v48 = vmul.f32 %v4931_v43, %v6157_v14  ;;  %v1869_v61 = vpop.permute.xlu1 %1868 }
 0x4e4   : > { %4491 = vmatprep.subr.msk.bf16.mxu1 %vm5779_vm1, %v4489_v63 }
 0x4e5   : > { %4216 = vmatprep.mubr.msk.f32.mxu1 %vm786_vm2, %v1700_v48 }
 0x4e7   : > { %v2124_v2 = vpop.permute.xlu1 %2123 }
 0x4e8   : > { %v2413_v62 = vsel %vm786_vm2, %v2405_v12, %v2124_v2 }
 0x4e9   : > { %v2421_v25 = vsel %vm2387_vm5, %v2413_v62, %v5693_v28  ;;  %v2404_v28 = vsel %vm2370_vm4, %v5869_v23, %v5807_v18 }
 0x4ea   : > { %v2439_v49 = vrot.slane %v2421_v25, 7 }
 0x4eb   : > { %4494 = vmatpush3.bf16.xpose.msk.msra.mxu1 %vm5779_vm1, %v4489_v63  ;;  %v6340_v48 = vpop.permute.xlu1 %2125 }
 0x4ec   : > { %v6320_v41 = vsel %vm2455_vm3, %v2439_v49, 0.0  ;;  %v6325_v18 = vsel %vm2455_vm3, 0.0, %v2439_v49 }
 0x4ed   : > { %v2678_v43 = vmul.f32 %v6315_v47, %v6320_v41  ;;  %v2754_v63 = vmul.f32 %v6317_v4, %v6320_v41  ;;  %v2677_v40 = vmul.f32 %v6315_v47, %v6325_v18  ;;  %v2847_v1 = vmul.f32 %v6334_v9, %v6325_v18 }
 0x4ee   : > { %v2848_v22 = vmul.f32 %v6334_v9, %v6320_v41 }
 0x4ef   : > { %v2711_v25 = vrot.slane %v2678_v43, 1  ;;  %v2787_v43 = vrot.slane %v2754_v63, 2 }
 0x4fc   : > { %v1686_v8 = vpop.xlane.xlu0 %1685 }
 0x4fd   : > { %4932 = vrcp.f32 %v1686_v8 }
 0x500   : > { %v1857_v17 = vpop.permute.xlu0 %1856 }
 0x504   : > { %v1861_v50 = vpop.permute.xlu0 %1860 }
 0x507   : > { %v4933_v27 = vpop.eup %4932 }
 0x508   : > { %v1863_v55 = vpop.permute.xlu0 %1862  ;;  %v1702_v14 = vmul.f32 %v4933_v27, %v6172_v6  ;;  %v2501_v6 = vmul.f32 %v6280_v32, %v6273_v53 }
 0x50a   : > { %4217 = vmatmul.mubr.msk.f32.gmra.mrb[30].mxu1 %vm786_vm2, %v1702_v14  ;;  %v2534_v60 = vrot.slane %v2501_v6, 1 }
 0x50b   : > { %4235 = vmatprep.mubr.msk.f32.mxu1 %vm640_vm0, %v1857_v17 }
 0x50c   : > { %v1865_v11 = vpop.permute.xlu0 %1864  ;;  %v2536_v42 = vsel %vm2533_vm6, %v2534_v60, %v2535_v24 }
 0x50d   : > { %v2566_v15 = vadd.f32 %v2536_v42, %v2481_v16  ;;  %v2753_v16 = vmul.f32 %v6317_v4, %v6325_v18  ;;  %v2710_v42 = vrot.slane %v2677_v40, 1 }
 0x50e   : > { %4236 = vmatmul.mubr.msk.f32.vlgmr.msra.gmra.mrb[32].mxu1 %vm640_vm0, %v1859_v39 }
 0x50f   : > { %4238 = vmatprep.mubr.msk.f32.mxu1 %vm640_vm0, %v1861_v50  ;;  %v2643_v39 = vadd.f32 %v2613_v26, %v2566_v15  ;;  %v2656_v26 = vmul.f32 %v6331_v54, %v6325_v18  ;;  %v2712_v40 = vsel %vm2533_vm6, %v2710_v42, %v2711_v25 }
 0x510   : > { %v1867_v20 = vpop.permute.xlu0 %1866 }
 0x512   : > { %4239 = vmatmul.mubr.msk.f32.gmra.mrb[34].mxu1 %vm640_vm0, %v1863_v55 }
 0x513   : > { %4241 = vmatprep.mubr.msk.f32.mxu1 %vm640_vm0, %v1865_v11 }
 0x514   : > { %v1871_v0 = vpop.permute.xlu0 %1870 }
 0x516   : > { %4242 = vmatmul.mubr.msk.f32.gmra.mrb[36].mxu1 %vm640_vm0, %v1867_v20 }
 0x517   : > { %4244 = vmatprep.mubr.msk.f32.mxu1 %vm640_vm0, %v1869_v61 }
 0x518   : > { %v2122_v29 = vpop.permute.xlu0 %2121 }
 0x519   : > { %v4495_v36 = vpack.c.bf16 %v2124_v2, %v2122_v29  ;;  %v2412_v7 = vsel %vm786_vm2, %v2404_v28, %v2122_v29 }
 0x51a   : > { %v2420_v23 = vsel %vm2387_vm5, %v2412_v7, %v5699_v30  ;;  %4245 = vmatmul.mubr.msk.f32.gmra.mrb[38].mxu1 %vm640_vm0, %v1871_v0  ;;  %v6344_v30 = vrot.slane %v2476_v5, %v2576_v13 }
 0x51b   : > { %v2438_v57 = vrot.slane %v2420_v23, 7  ;;  %4496 = vmatprep.subr.bf16.mxu1 %v4495_v36  ;;  %v6374_v23 = vrot.slane %v2476_v5, %v5649_v59 }
 0x51c   : > { %v6342_v8 = vpop.permute.xlu0 %2127  ;;  %4498 = vmatpush3.bf16.msra.mxu1 %v4495_v36 }
 0x51d   : > { %v2457_v17 = vsel %vm2455_vm3, 0.0, %v2438_v57  ;;  %v2466_v50 = vsel %vm2455_vm3, %v2438_v57, 0.0  ;;  %v4499_v61 = vpack.c.bf16 %v6342_v8, %v6340_v48  ;;  %v2827_v5 = vmul.f32 %v6374_v23, %v6325_v18 }
 0x51e   : > { %v2482_v27 = vmul.f32 %v6303_v51, %v2457_v17  ;;  %v2503_v52 = vmul.f32 %v6280_v32, %v2457_v17  ;;  %v2504_v55 = vmul.f32 %v6280_v32, %v2466_v50  ;;  %v2580_v14 = vmul.f32 %v6291_v58, %v2457_v17 }
 0x51f   : > { %v2581_v13 = vmul.f32 %v6291_v58, %v2466_v50  ;;  %v2655_v2 = vmul.f32 %v6331_v54, %v2457_v17  ;;  %v2675_v11 = vmul.f32 %v6315_v47, %v2457_v17  ;;  %v2676_v6 = vmul.f32 %v6315_v47, %v2466_v50  ;;  %4500 = vmatprep.subr.bf16.mxu1 %v4499_v61 }
 0x520   : > { %v2537_v46 = vrot.slane %v2503_v52, 1  ;;  %v2538_v12 = vrot.slane %v2504_v55, 1  ;;  %v2614_v62 = vrot.slane %v2580_v14, 2  ;;  %v2751_v20 = vmul.f32 %v6317_v4, %v2457_v17  ;;  %4502 = vmatpush3.bf16.msra.mxu1 %v4499_v61 }
 0x521   : > { %v2615_v60 = vrot.slane %v2581_v13, 2  ;;  %v2707_v24 = vrot.slane %v2675_v11, 1  ;;  %v2708_v10 = vrot.slane %v2676_v6, 1  ;;  %v2752_v19 = vmul.f32 %v6317_v4, %v2466_v50 }
 0x522   : > { %v2539_v0 = vsel %vm2533_vm6, %v2537_v46, %v2538_v12  ;;  %v2663_v56 = vadd.f32 %v2655_v2, %v2643_v39  ;;  %v2783_v29 = vrot.slane %v2751_v20, 2  ;;  %v2786_v39 = vrot.slane %v2753_v16, 2 }
 0x523   : > { %v2567_v49 = vadd.f32 %v2539_v0, %v2482_v27  ;;  %v2616_v28 = vsel %vm2610_vm7, %v2614_v62, %v2615_v60  ;;  %v2784_v15 = vrot.slane %v2752_v19, 2  ;;  %v2709_v36 = vsel %vm2533_vm6, %v2707_v24, %v2708_v10 }
 0x524   : > { %v2739_v57 = vadd.f32 %v2709_v36, %v2663_v56  ;;  %v2923_v17 = vmul.f32 %v6344_v30, %v6325_v18  ;;  %v2924_v50 = vmul.f32 %v6344_v30, %v6320_v41  ;;  %v2879_v52 = vrot.slane %v2847_v1, 1 }
 0x525   : > { %v2644_v7 = vadd.f32 %v2616_v28, %v2567_v49  ;;  %v2785_v27 = vsel %vm2610_vm7, %v2783_v29, %v2784_v15  ;;  %v2880_v55 = vrot.slane %v2848_v22, 1  ;;  %v2788_v63 = vsel %vm2610_vm7, %v2786_v39, %v2787_v43 }
 0x526   : > { %v2815_v13 = vadd.f32 %v2785_v27, %v2739_v57  ;;  %v2955_v2 = vrot.slane %v2923_v17, 2  ;;  %v2956_v11 = vrot.slane %v2924_v50, 2 }
 0x527   : > { %v2664_v61 = vadd.f32 %v2656_v26, %v2644_v7  ;;  %v2881_v12 = vsel %vm2533_vm6, %v2879_v52, %v2880_v55 }
 0x528   : > { %v2835_v46 = vadd.f32 %v2827_v5, %v2815_v13  ;;  %v2957_v20 = vsel %vm2610_vm7, %v2955_v2, %v2956_v11 }
 0x529   : > { %v2740_v14 = vadd.f32 %v2712_v40, %v2664_v61 }
 0x52a   : > { %v2911_v62 = vadd.f32 %v2881_v12, %v2835_v46 }
 0x52b   : > { %v6385_v6 = vadd.f32 %v2788_v63, %v2740_v14 }
 0x52c   : > { %v6389_v60 = vadd.f32 %v2957_v20, %v2911_v62 }
 0x52e   : > { %7177 = vst [vmem:[#allocation34_spill] sm:$0xff] %v6389_v60 }
 0x54c   : > { %v6391_v24 = vpop.f32.mrb[8].mxu1 }
 0x54d   : > { %7178 = vst [vmem:[#allocation35_spill] sm:$0xff] %v6391_v24  ;;  %v6393_v10 = vpop.f32.mrb[9].mxu1 }
 0x54e   : > { %7179 = vst [vmem:[#allocation36_spill] sm:$0xff] %v6393_v10 }
 0x558   : > { %v6395_v19 = vpop.f32.mrb[10].mxu1 }
 0x559   : > { %7180 = vst [vmem:[#allocation37_spill] sm:$0xff] %v6395_v19  ;;  %v6397_v25 = vpop.f32.mrb[11].mxu1 }
 0x55a   : > { %7181 = vst [vmem:[#allocation38_spill] sm:$0xff] %v6397_v25 }
 0x560   : > { %v6399_v0 = vpop.f32.mrb[12].mxu1 }
 0x561   : > { %7182 = vst [vmem:[#allocation39_spill] sm:$0xff] %v6399_v0  ;;  %v6401_v16 = vpop.f32.mrb[13].mxu1 }
 0x562   : > { %7183 = vst [vmem:[#allocation40_spill] sm:$0xff] %v6401_v16 }
 0x568   : > { %v6403_v56 = vpop.f32.mrb[14].mxu1 }
 0x569   : > { %7184 = vst [vmem:[#allocation41_spill] sm:$0xff] %v6403_v56  ;;  %v6405_v49 = vpop.f32.mrb[15].mxu1 }
 0x56a   : > { %7185 = vst [vmem:[#allocation42_spill] sm:$0xff] %v6405_v49 }
 0x56c   : > { %v6407_v42 = vpop.f32.mrb[16].mxu1 }
 0x56d   : > { %v6409_v1 = vpop.f32.mrb[17].mxu1 }
 0x570   : > { %v6411_v22 = vpop.f32.mrb[18].mxu1 }
 0x571   : > { %v6413_v28 = vpop.f32.mrb[19].mxu1 }
 0x574   : > { %v6415_v29 = vpop.f32.mrb[20].mxu1 }
 0x575   : > { %v6417_v15 = vpop.f32.mrb[21].mxu1 }
 0x578   : > { %v6419_v36 = vpop.f32.mrb[22].mxu1 }
 0x579   : > { %v6421_v7 = vpop.f32.mrb[23].mxu1 }
 0x5a5   : > { %v6423_v26 = vpop.f32.mrb[24].mxu1 }
 0x5a6   : > { %v6425_v57 = vpop.f32.mrb[25].mxu1 }
 0x5ac   : > { %v6427_v43 = vpop.f32.mrb[26].mxu1 }
 0x5ad   : > { %v6429_v39 = vpop.f32.mrb[27].mxu1 }
 0x5b5   : > { %v6431_v17 = vpop.f32.mrb[28].mxu1 }
 0x5b6   : > { %v6433_v50 = vpop.f32.mrb[29].mxu1 }
 0x5dd   : > { %v6435_v61 = vpop.f32.mrb[30].mxu1 }
 0x5de   : > { %v6437_v40 = vpop.f32.mrb[31].mxu1 }
 0x5e1   : > { %v4237_v27 = vpop.f32.mrb[32].mxu1 }
 0x5e2   : > { %v2026_v52 = vmul.f32 0.25, %v4237_v27  ;;  %v1986_v55 = vpop.f32.mrb[33].mxu1 }
 0x5e3   : > { %v2025_v14 = vmul.f32 0.25, %v1986_v55 }
 0x5e4   : > { %v2036_v13 = vsel %vm786_vm2, %v2026_v52, -inf }
 0x5e5   : > { %2037 = vmax.xlane.f32.xlu0 %v2036_v13  ;;  %v4240_v5 = vpop.f32.mrb[34].mxu1  ;;  %v2033_v63 = vsel %vm786_vm2, %v2025_v14, -inf }
 0x5e6   : > { %v2028_v2 = vmul.f32 0.25, %v4240_v5  ;;  %2034 = vmax.xlane.f32.xlu1 %v2033_v63  ;;  %v1996_v11 = vpop.f32.mrb[35].mxu1 }
 0x5e7   : > { %v2027_v46 = vmul.f32 0.25, %v1996_v11 }
 0x5e8   : > { %v2042_v12 = vsel %vm786_vm2, %v2028_v2, -inf }
 0x5e9   : > { %v4243_v62 = vpop.f32.mrb[36].mxu1  ;;  %v2039_v20 = vsel %vm786_vm2, %v2027_v46, -inf }
 0x5ea   : > { %v2030_v21 = vmul.f32 0.25, %v4243_v62  ;;  %2043 = vmax.xlane.f32.xlu1 %v2042_v12  ;;  %2040 = vmax.xlane.f32.xlu0 %v2039_v20  ;;  %v2006_v27 = vpop.f32.mrb[37].mxu1 }
 0x5eb   : > { %v2029_v55 = vmul.f32 0.25, %v2006_v27 }
 0x5ec   : > { %v2048_v59 = vsel %vm786_vm2, %v2030_v21, -inf }
 0x5ed   : > { %v4246_v13 = vpop.f32.mrb[38].mxu1  ;;  %v2045_v49 = vsel %vm786_vm2, %v2029_v55, -inf }
 0x5ee   : > { %v6445_v56 = vmul.f32 0.25, %v4246_v13  ;;  %2049 = vmax.xlane.f32.xlu1 %v2048_v59  ;;  %2046 = vmax.xlane.f32.xlu0 %v2045_v49  ;;  %v2016_v5 = vpop.f32.mrb[39].mxu1 }
 0x5ef   : > { %v2031_v63 = vmul.f32 0.25, %v2016_v5 }
 0x5f0   : > { %v2054_v11 = vsel %vm786_vm2, %v6445_v56, -inf }
 0x5f1   : > { %v2051_v62 = vsel %vm786_vm2, %v2031_v63, -inf }
 0x5f2   : > { %2055 = vmax.xlane.f32.xlu1 %v2054_v11  ;;  %2052 = vmax.xlane.f32.xlu0 %v2051_v62 }
 0x603   : > { %2131 = vrot.lane.b32.xlu1 %v5719_v35, %s5305_s27 }
 0x608   : > { %2129 = vrot.lane.b32.xlu0 %v5717_v34, %s5305_s27 }
 0x672   : > { %v2038_v12 = vpop.xlane.xlu0 %2037 }
 0x673   : > { %v2058_v20 = vsub.f32 %v2026_v52, %v2038_v12  ;;  %v2035_v27 = vpop.xlane.xlu1 %2034 }
 0x674   : > { %v2057_v59 = vsub.f32 %v2025_v14, %v2035_v27 }
 0x675   : > { %v2067_v49 = vmul.f32 1.442695, %v2058_v20 }
 0x676   : > { %v2065_v13 = vmul.f32 1.442695, %v2057_v59 }
 0x677   : > { %4934 = vpow2.f32 %v2067_v49  ;;  %v2044_v5 = vpop.xlane.xlu1 %2043  ;;  %v2041_v44 = vpop.xlane.xlu0 %2040 }
 0x678   : > { %4936 = vpow2.f32 %v2065_v13  ;;  %v2060_v53 = vsub.f32 %v2028_v2, %v2044_v5  ;;  %v2059_v16 = vsub.f32 %v2027_v46, %v2041_v44 }
 0x67a   : > { %v2071_v11 = vmul.f32 1.442695, %v2060_v53  ;;  %v2069_v25 = vmul.f32 1.442695, %v2059_v16 }
 0x67b   : > { %v2050_v62 = vpop.xlane.xlu1 %2049  ;;  %v2047_v0 = vpop.xlane.xlu0 %2046 }
 0x67c   : > { %4938 = vpow2.f32 %v2071_v11  ;;  %v2062_v19 = vsub.f32 %v2030_v21, %v2050_v62  ;;  %v2061_v60 = vsub.f32 %v2029_v55, %v2047_v0 }
 0x67d   : > { %4940 = vpow2.f32 %v2069_v25 }
 0x67e   : > { %v2075_v10 = vmul.f32 1.442695, %v2062_v19  ;;  %v2073_v24 = vmul.f32 1.442695, %v2061_v60 }
 0x67f   : > { %v2056_v52 = vpop.xlane.xlu1 %2055  ;;  %v2053_v12 = vpop.xlane.xlu0 %2052 }
 0x680   : > { %4942 = vpow2.f32 %v2073_v24  ;;  %v2063_v27 = vsub.f32 %v2031_v63, %v2053_v12  ;;  %v2064_v59 = vsub.f32 %v6445_v56, %v2056_v52  ;;  %v7186_v56 = vld [vmem:[#allocation29_spill] sm:$0xff] }
 0x681   : > { %v6454_v14 = vpop.eup %4934  ;;  %4944 = vpow2.f32 %v2075_v10 }
 0x682   : > { %v6456_v20 = vpop.eup %4936  ;;  %v2084_v53 = vsel %vm786_vm2, %v6454_v14, 0.0  ;;  %v2077_v49 = vmul.f32 1.442695, %v2063_v27  ;;  %v2079_v13 = vmul.f32 1.442695, %v2064_v59 }
 0x683   : > { %2085 = vadd.xlane.f32.xlu1 %v2084_v53  ;;  %v2132_v44 = vpop.permute.xlu1 %2131  ;;  %v6460_v2 = vpop.permute.xlu0 %2129  ;;  %v2081_v21 = vsel %vm786_vm2, %v6456_v20, 0.0 }
 0x684   : > { %v4503_v60 = vpack.c.bf16 %v2132_v44, %v6460_v2  ;;  %2082 = vadd.xlane.f32.xlu0 %v2081_v21  ;;  %4946 = vpow2.f32 %v2077_v49  ;;  %v7188_v21 = vld [vmem:[#allocation30_spill] sm:$0xff]  ;;  %v7189_v49 = vld [vmem:[#allocation24_spill] sm:$0xff] }
 0x685   : > { %4948 = vpow2.f32 %v2079_v13  ;;  %v7190_v13 = vld [vmem:[#allocation31_spill] sm:$0xff] }
 0x686   : > { %v6465_v19 = vpop.eup %4938  ;;  %4504 = vmatprep.subr.bf16.mxu1 %v4503_v60 }
 0x687   : > { %4506 = vmatpush3.bf16.msra.mxu1 %v4503_v60  ;;  %v2090_v24 = vsel %vm786_vm2, %v6465_v19, 0.0  ;;  %v6469_v10 = vpop.eup %4940 }
 0x688   : > { %2091 = vadd.xlane.f32.xlu1 %v2090_v24  ;;  %v2087_v16 = vsel %vm786_vm2, %v6469_v10, 0.0 }
 0x689   : > { %2088 = vadd.xlane.f32.xlu0 %v2087_v16 }
 0x68a   : > { %v6471_v25 = vpop.eup %4942 }
 0x68b   : > { %v6473_v0 = vpop.eup %4944  ;;  %v2093_v46 = vsel %vm786_vm2, %v6471_v25, 0.0 }
 0x68c   : > { %2094 = vadd.xlane.f32.xlu1 %v2093_v46  ;;  %v2096_v55 = vsel %vm786_vm2, %v6473_v0, 0.0 }
 0x68d   : > { %2097 = vadd.xlane.f32.xlu0 %v2096_v55 }
 0x68e   : > { %v6486_v5 = vpop.eup %4946 }
 0x68f   : > { %v2099_v11 = vsel %vm786_vm2, %v6486_v5, 0.0  ;;  %v6490_v62 = vpop.eup %4948 }
 0x690   : > { %v2102_v53 = vsel %vm786_vm2, %v6490_v62, 0.0 }
 0x69d   : > { %2133 = vrot.lane.b32.xlu1 %v5729_v37, %s5305_s27 }
 0x6a3   : > { %2135 = vrot.lane.b32.xlu0 %v5731_v38, %s5305_s27 }
 0x6c1   : > { %2100 = vadd.xlane.f32.xlu1 %v2099_v11  ;;  %v2411_v11 = vsel %vm2370_vm4, %v7190_v13, %v7189_v49 }
 0x6c2   : > { %2103 = vadd.xlane.f32.xlu0 %v2102_v53 }
 0x6d2   : > { %2284 = vrot.lane.b32.xlu1 %v6407_v42, %s5305_s27  ;;  %v2409_v42 = vsel %vm2370_vm4, %v7186_v56, %v5843_v3 }
 0x6d6   : > { %2314 = vrot.lane.b32.xlu1 %v6425_v57, %s5303_s18 }
 0x6d8   : > { %2282 = vrot.lane.b32.xlu0 %v6409_v1, %s5305_s27  ;;  %v2417_v1 = vsel %vm786_vm2, %v2409_v42, %v2132_v44  ;;  %v7187_v44 = vld [vmem:[#allocation25_spill] sm:$0xff] }
 0x6d9   : > { %v2410_v60 = vsel %vm2370_vm4, %v7188_v21, %v7187_v44 }
 0x6da   : > { %2286 = vrot.lane.b32.xlu1 %v6413_v28, %s5305_s27 }
 0x6dc   : > { %2316 = vrot.lane.b32.xlu0 %v6423_v26, %s5303_s18 }
 0x6de   : > { %2318 = vrot.lane.b32.xlu1 %v6429_v39, %s5303_s18 }
 0x6e0   : > { %2288 = vrot.lane.b32.xlu0 %v6411_v22, %s5305_s27 }
 0x6e2   : > { %2290 = vrot.lane.b32.xlu1 %v6417_v15, %s5305_s27  ;;  %v2425_v15 = vsel %vm2387_vm5, %v2417_v1, %v5719_v35 }
 0x6e3   : > { %v2443_v22 = vrot.slane %v2425_v15, 7 }
 0x6e4   : > { %2320 = vrot.lane.b32.xlu0 %v6427_v43, %s5303_s18 }
 0x6e5   : > { %v6521_v39 = vsel %vm2455_vm3, 0.0, %v2443_v22  ;;  %v6524_v43 = vsel %vm2455_vm3, %v2443_v22, 0.0 }
 0x6e6   : > { %v2514_v52 = vmul.f32 %v6280_v32, %v6524_v43  ;;  %v2513_v35 = vmul.f32 %v6280_v32, %v6521_v39  ;;  %v2591_v53 = vmul.f32 %v6291_v58, %v6524_v43  ;;  %v2590_v42 = vmul.f32 %v6291_v58, %v6521_v39 }
 0x6e8   : > { %2292 = vrot.lane.b32.xlu0 %v6415_v29, %s5305_s27  ;;  %v2553_v55 = vrot.slane %v2514_v52, 1 }
 0x710   : > { %v2086_v28 = vpop.xlane.xlu1 %2085 }
 0x711   : > { %v2083_v26 = vpop.xlane.xlu0 %2082 }
 0x712   : > { %4950 = vrcp.f32 %v2083_v26 }
 0x713   : > { %4952 = vrcp.f32 %v2086_v28 }
 0x715   : > { %v2092_v57 = vpop.xlane.xlu1 %2091 }
 0x716   : > { %v2089_v29 = vpop.xlane.xlu0 %2088 }
 0x717   : > { %4954 = vrcp.f32 %v2089_v29  ;;  %v2487_v29 = vmul.f32 %v6303_v51, %v6521_v39 }
 0x718   : > { %4956 = vrcp.f32 %v2092_v57 }
 0x719   : > { %v2095_v63 = vpop.xlane.xlu1 %2094 }
 0x71a   : > { %v2098_v24 = vpop.xlane.xlu0 %2097  ;;  %4958 = vrcp.f32 %v2095_v63  ;;  %v2630_v63 = vrot.slane %v2591_v53, 2 }
 0x71b   : > { %4960 = vrcp.f32 %v2098_v24 }
 0x71c   : > { %v4951_v3 = vpop.eup %4950 }
 0x71d   : > { %v2106_v12 = vmul.f32 %v4951_v3, %v6456_v20  ;;  %v2134_v16 = vpop.permute.xlu1 %2133  ;;  %v2552_v20 = vrot.slane %v2513_v35, 1  ;;  %v4953_v26 = vpop.eup %4952  ;;  %v2629_v3 = vrot.slane %v2590_v42, 2 }
 0x71e   : > { %v2418_v46 = vsel %vm786_vm2, %v2410_v60, %v2134_v16  ;;  %v2136_v56 = vpop.permute.xlu0 %2135  ;;  %v2108_v52 = vmul.f32 %v4953_v26, %v6454_v14 }
 0x71f   : > { %4263 = vmatprep.mubr.msk.f32.mxu1 %vm786_vm2, %v2106_v12  ;;  %v2426_v27 = vsel %vm2387_vm5, %v2418_v46, %v5729_v37  ;;  %v4507_v1 = vpack.c.bf16 %v2136_v56, %v2134_v16  ;;  %v2419_v28 = vsel %vm786_vm2, %v2411_v11, %v2136_v56  ;;  %v2554_v37 = vsel %vm2533_vm6, %v2552_v20, %v2553_v55 }
 0x720   : > { %v2444_v59 = vrot.slane %v2426_v27, 7  ;;  %v2427_v22 = vsel %vm2387_vm5, %v2419_v28, %v5731_v38  ;;  %v2572_v44 = vadd.f32 %v2554_v37, %v2487_v29  ;;  %v2631_v20 = vsel %vm2610_vm7, %v2629_v3, %v2630_v63 }
 0x721   : > { %v4955_v15 = vpop.eup %4954  ;;  %4508 = vmatprep.subr.bf16.mxu1 %v4507_v1  ;;  %v2445_v35 = vrot.slane %v2427_v22, 7 }
 0x722   : > { %v6548_v57 = vsel %vm2455_vm3, %v2444_v59, 0.0  ;;  %4510 = vmatpush3.bf16.msra.mxu1 %v4507_v1  ;;  %v6556_v12 = vsel %vm2455_vm3, 0.0, %v2444_v59  ;;  %v4957_v21 = vpop.eup %4956  ;;  %v2110_v16 = vmul.f32 %v4955_v15, %v6469_v10  ;;  %v2649_v10 = vadd.f32 %v2631_v20, %v2572_v44 }
 0x723   : > { %v2516_v60 = vmul.f32 %v6280_v32, %v6548_v57  ;;  %v2593_v38 = vmul.f32 %v6291_v58, %v6548_v57  ;;  %v2688_v24 = vmul.f32 %v6315_v47, %v6548_v57  ;;  %v2764_v14 = vmul.f32 %v6317_v4, %v6548_v57 }
 0x724   : > { %v4959_v46 = vpop.eup %4958  ;;  %v2464_v55 = vsel %vm2455_vm3, 0.0, %v2445_v35  ;;  %v2515_v27 = vmul.f32 %v6280_v32, %v6556_v12  ;;  %v2473_v59 = vsel %vm2455_vm3, %v2445_v35, 0.0  ;;  %v2112_v49 = vmul.f32 %v4957_v21, %v6465_v19 }
 0x725   : > { %4264 = vmatmul.mubr.msk.f32.vlgmr.msra.gmra.mrb[40].mxu1 %vm786_vm2, %v2108_v52  ;;  %v4961_v13 = vpop.eup %4960  ;;  %v2556_v11 = vrot.slane %v2516_v60, 1  ;;  %v2633_v53 = vrot.slane %v2593_v38, 2  ;;  %v2726_v56 = vrot.slane %v2688_v24, 1  ;;  %v2114_v42 = vmul.f32 %v4959_v46, %v6471_v25 }
 0x726   : > { %4266 = vmatprep.mubr.msk.f32.mxu1 %vm786_vm2, %v2110_v16  ;;  %v2802_v1 = vrot.slane %v2764_v14, 2  ;;  %v2662_v28 = vmul.f32 %v6331_v54, %v2464_v55  ;;  %v2689_v26 = vmul.f32 %v6315_v47, %v2464_v55  ;;  %v2488_v37 = vmul.f32 %v6303_v51, %v6556_v12 }
 0x727   : > { %v2690_v15 = vmul.f32 %v6315_v47, %v2473_v59  ;;  %v2765_v19 = vmul.f32 %v6317_v4, %v2464_v55  ;;  %v2555_v22 = vrot.slane %v2515_v27, 1  ;;  %v2592_v25 = vmul.f32 %v6291_v58, %v6556_v12 }
 0x728   : > { %v2116_v29 = vmul.f32 %v4961_v13, %v6473_v0  ;;  %v2661_v63 = vmul.f32 %v6331_v54, %v6556_v12  ;;  %v2687_v3 = vmul.f32 %v6315_v47, %v6556_v12  ;;  %v2763_v52 = vmul.f32 %v6317_v4, %v6556_v12 }
 0x729   : > { %4267 = vmatmul.mubr.msk.f32.gmra.mrb[42].mxu1 %vm786_vm2, %v2112_v49  ;;  %v2766_v35 = vmul.f32 %v6317_v4, %v2473_v59  ;;  %v2860_v44 = vmul.f32 %v6334_v9, %v2473_v59  ;;  %v2557_v21 = vsel %vm2533_vm6, %v2555_v22, %v2556_v11  ;;  %v2632_v60 = vrot.slane %v2592_v25, 2 }
 0x72a   : > { %4269 = vmatprep.mubr.msk.f32.mxu1 %vm786_vm2, %v2114_v42  ;;  %v2728_v38 = vrot.slane %v2689_v26, 1  ;;  %v2573_v0 = vadd.f32 %v2557_v21, %v2488_v37  ;;  %v2669_v24 = vadd.f32 %v2661_v63, %v2649_v10  ;;  %v2725_v16 = vrot.slane %v2687_v3, 1 }
 0x72b   : > { %v2729_v46 = vrot.slane %v2690_v15, 1  ;;  %v2634_v14 = vsel %vm2610_vm7, %v2632_v60, %v2633_v53  ;;  %v2801_v27 = vrot.slane %v2763_v52, 2  ;;  %v2859_v20 = vmul.f32 %v6334_v9, %v2464_v55 }
 0x72c   : > { %v2936_v49 = vmul.f32 %v6344_v30, %v2473_v59  ;;  %v2650_v13 = vadd.f32 %v2634_v14, %v2573_v0  ;;  %v2727_v42 = vsel %vm2533_vm6, %v2725_v16, %v2726_v56  ;;  %v2935_v11 = vmul.f32 %v6344_v30, %v2464_v55  ;;  %v3003_v14 = vld [vmem:[#allocation8] sm:$0xff] }
 0x72d   : > { %4270 = vmatmul.mubr.msk.f32.gmra.mrb[44].mxu1 %vm786_vm2, %v2116_v29  ;;  %v2804_v22 = vrot.slane %v2765_v19, 2  ;;  %v2805_v26 = vrot.slane %v2766_v35, 2  ;;  %v2745_v25 = vadd.f32 %v2727_v42, %v2669_v24  ;;  %v2898_v29 = vrot.slane %v2860_v44, 1 }
 0x72e   : > { %v2670_v37 = vadd.f32 %v2662_v28, %v2650_v13  ;;  %v2803_v10 = vsel %vm2610_vm7, %v2801_v27, %v2802_v1  ;;  %v2897_v15 = vrot.slane %v2859_v20, 1  ;;  %v2730_v53 = vsel %vm2533_vm6, %v2728_v38, %v2729_v46  ;;  %v3004_v27 = vld [vmem:[#allocation8 + $0x8] sm:$0xff]  ;;  %v3005_v20 = vld [vmem:[#allocation8 + $0x10] sm:$0xff]  ;;  %v3006_v13 = vld [vmem:[#allocation8 + $0x18] sm:$0xff] }
 0x72f   : > { %v2821_v63 = vadd.f32 %v2803_v10, %v2745_v25  ;;  %v2833_v3 = vmul.f32 %v6374_v23, %v2464_v55  ;;  %v2973_v59 = vrot.slane %v2935_v11, 2  ;;  %v2974_v21 = vrot.slane %v2936_v49, 2  ;;  %v3007_v11 = vld [vmem:[#allocation8 + $0x20] sm:$0xff]  ;;  %v3010_v25 = vld [vmem:[#allocation8 + $0x38] sm:$0xff] }
 0x730   : > { %v2746_v52 = vadd.f32 %v2730_v53, %v2670_v37  ;;  %v2806_v56 = vsel %vm2610_vm7, %v2804_v22, %v2805_v26  ;;  %v2899_v19 = vsel %vm2533_vm6, %v2897_v15, %v2898_v29  ;;  %v4511_v49 = vpack.c.bf16 %v3004_v27, %v3003_v14  ;;  %v3008_v22 = vld [vmem:[#allocation8 + $0x28] sm:$0xff]  ;;  %v3009_v26 = vld [vmem:[#allocation8 + $0x30] sm:$0xff]  ;;  %v3011_v29 = vld [vmem:[#allocation8 + $0x40] sm:$0xff] }
 0x731   : > { %v2841_v60 = vadd.f32 %v2833_v3, %v2821_v63  ;;  %v2975_v28 = vsel %vm2610_vm7, %v2973_v59, %v2974_v21  ;;  %v4515_v42 = vpack.c.bf16 %v3006_v13, %v3005_v20  ;;  %v3012_v37 = vld [vmem:[#allocation8 + $0x48] sm:$0xff]  ;;  %v3013_v15 = vld [vmem:[#allocation8 + $0x50] sm:$0xff]  ;;  %v3014_v53 = vld [vmem:[#allocation8 + $0x58] sm:$0xff] }
 0x732   : > { %v6606_v0 = vadd.f32 %v2806_v56, %v2746_v52  ;;  %4512 = vmatprep.subr.bf16.mxu0 %v4511_v49  ;;  %v4527_v10 = vpack.c.bf16 %v3012_v37, %v3011_v29  ;;  %v4531_v63 = vpack.c.bf16 %v3014_v53, %v3013_v15  ;;  %v3015_v3 = vld [vmem:[#allocation8 + $0x60] sm:$0xff]  ;;  %v3016_v52 = vld [vmem:[#allocation8 + $0x68] sm:$0xff]  ;;  %v3017_v21 = vld [vmem:[#allocation8 + $0x70] sm:$0xff] }
 0x733   : > { %v2917_v35 = vadd.f32 %v2899_v19, %v2841_v60  ;;  %4514 = vmatpush3.bf16.msra.mxu0 %v4511_v49  ;;  %v4535_v59 = vpack.c.bf16 %v3016_v52, %v3015_v3  ;;  %v3018_v56 = vld [vmem:[#allocation8 + $0x78] sm:$0xff]  ;;  %v3144_v14 = vld [vmem:[#allocation10 + $0x28] sm:$0xff]  ;;  %v3145_v49 = vld [vmem:[#allocation10 + $0x30] sm:$0xff] }
 0x734   : > { %4516 = vmatprep.subr.bf16.mxu0 %v4515_v42  ;;  %v4539_v60 = vpack.c.bf16 %v3018_v56, %v3017_v21  ;;  %v3148_v13 = vld [vmem:[#allocation10 + $0x48] sm:$0xff]  ;;  %v3153_v15 = vld [vmem:[#allocation10 + $0x70] sm:$0xff] }
 0x735   : > { %v6610_v1 = vadd.f32 %v2975_v28, %v2917_v35  ;;  %v3156_v53 = vld [vmem:[#allocation10 + $0x88] sm:$0xff]  ;;  %v7191_v52 = vld [vmem:[#allocation21_spill] sm:$0xff] }
 0x737   : > { %4518 = vmatpush3.bf16.msra.mxu0 %v4515_v42  ;;  %v3150_v42 = vld [vmem:[#allocation10 + $0x58] sm:$0xff] }
 0x74e   : > { %v2101_v44 = vpop.xlane.xlu1 %2100 }
 0x74f   : > { %4962 = vrcp.f32 %v2101_v44  ;;  %v2104_v38 = vpop.xlane.xlu0 %2103 }
 0x750   : > { %4964 = vrcp.f32 %v2104_v38 }
 0x759   : > { %v4963_v55 = vpop.eup %4962 }
 0x75a   : > { %v2118_v24 = vmul.f32 %v4963_v55, %v6486_v5  ;;  %v4965_v16 = vpop.eup %4964  ;;  %v4519_v5 = vpack.c.bf16 %v3008_v22, %v3007_v11  ;;  %v3147_v22 = vld [vmem:[#allocation10 + $0x40] sm:$0xff] }
 0x75b   : > { %v2120_v46 = vmul.f32 %v4965_v16, %v6490_v62  ;;  %v4523_v62 = vpack.c.bf16 %v3010_v25, %v3009_v26  ;;  %v3154_v26 = vld [vmem:[#allocation10 + $0x78] sm:$0xff] }
 0x75c   : > { %4272 = vmatprep.mubr.msk.f32.mxu1 %vm786_vm2, %v2118_v24  ;;  %4520 = vmatprep.subr.bf16.mxu0 %v4519_v5  ;;  %v3139_v24 = vld [vmem:[#allocation10] sm:$0xff] }
 0x75d   : > { %4273 = vmatmul.mubr.msk.f32.gmra.mrb[46].mxu1 %vm786_vm2, %v2120_v46  ;;  %4522 = vmatpush3.bf16.msra.mxu0 %v4519_v5  ;;  %v3141_v46 = vld [vmem:[#allocation10 + $0x10] sm:$0xff]  ;;  %v3152_v5 = vld [vmem:[#allocation10 + $0x68] sm:$0xff] }
 0x75e   : > { %3247 = vmatprep.mubr.f32.mxu1 %v7174_v45  ;;  %4524 = vmatprep.subr.bf16.mxu0 %v4523_v62  ;;  %v4545_v27 = vpack.c.bf16 %v3141_v46, %v3139_v24  ;;  %v4555_v37 = vpack.c.bf16 %v3154_v26, %v3152_v5  ;;  %v3161_v24 = vld [vmem:[#allocation10 + $0xb0] sm:$0xff]  ;;  %v3166_v46 = vld [vmem:[#allocation10 + $0xd8] sm:$0xff] }
 0x761   : > { %4526 = vmatpush3.bf16.msra.mxu0 %v4523_v62 }
 0x762   : > { %4528 = vmatprep.subr.bf16.mxu0 %v4527_v10 }
 0x765   : > { %4530 = vmatpush3.bf16.msra.mxu0 %v4527_v10  ;;  %v3151_v10 = vld [vmem:[#allocation10 + $0x60] sm:$0xff] }
 0x766   : > { %4532 = vmatprep.subr.bf16.mxu0 %v4531_v63  ;;  %v4557_v3 = vpack.c.bf16 %v3153_v15, %v3151_v10  ;;  %v7195_v10 = vld [vmem:[#allocation23_spill] sm:$0xff]  ;;  %v7196_v15 = vld [vmem:[#allocation28_spill] sm:$0xff] }
 0x769   : > { %4534 = vmatpush3.bf16.msra.mxu0 %v4531_v63  ;;  %v3158_v63 = vld [vmem:[#allocation10 + $0x98] sm:$0xff] }
 0x76a   : > { %4536 = vmatprep.subr.bf16.mxu0 %v4535_v59  ;;  %v4559_v56 = vpack.c.bf16 %v3158_v63, %v3156_v53  ;;  %v2408_v53 = vsel %vm2370_vm4, %v7196_v15, %v7195_v10 }
 0x76d   : > { %4538 = vmatpush3.bf16.msra.mxu0 %v4535_v59  ;;  %v7192_v59 = vld [vmem:[#allocation26_spill] sm:$0xff] }
 0x76e   : > { %4540 = vmatprep.subr.bf16.mxu0 %v4539_v60  ;;  %v2406_v21 = vsel %vm2370_vm4, %v7192_v59, %v7191_v52 }
 0x771   : > { %4542 = vmatpush3.bf16.msra.mxu0 %v4539_v60  ;;  %v3155_v60 = vld [vmem:[#allocation10 + $0x80] sm:$0xff] }
 0x7f8   : > { %v4265_v19 = vpop.f32.mrb[40].mxu1 }
 0x7f9   : > { %2348 = vrot.lane.b32.xlu0 %v4265_v19, %s5304_s26  ;;  %v2235_v35 = vpop.f32.mrb[41].mxu1  ;;  %v3157_v19 = vld [vmem:[#allocation10 + $0x90] sm:$0xff] }
 0x7fa   : > { %2346 = vrot.lane.b32.xlu1 %v2235_v35, %s5304_s26  ;;  %v2414_v35 = vsel %vm786_vm2, %v2406_v21, %v6340_v48  ;;  %v3165_v48 = vld [vmem:[#allocation10 + $0xd0] sm:$0xff] }
 0x7fc   : > { %v4268_v28 = vpop.f32.mrb[42].mxu1 }
 0x7fd   : > { %2324 = vrot.lane.b32.xlu0 %v6431_v17, %s5303_s18  ;;  %v2245_v44 = vpop.f32.mrb[43].mxu1  ;;  %v3140_v17 = vld [vmem:[#allocation10 + $0x8] sm:$0xff] }
 0x7fe   : > { %2322 = vrot.lane.b32.xlu1 %v6433_v50, %s5303_s18  ;;  %v3142_v50 = vld [vmem:[#allocation10 + $0x18] sm:$0xff] }
 0x7ff   : > { %v4543_v16 = vpack.c.bf16 %v3142_v50, %v3140_v17  ;;  %v3159_v50 = vld [vmem:[#allocation10 + $0xa0] sm:$0xff] }
 0x800   : > { %v4271_v38 = vpop.f32.mrb[44].mxu1 }
 0x801   : > { %2352 = vrot.lane.b32.xlu0 %v4268_v28, %s5304_s26  ;;  %v2255_v55 = vpop.f32.mrb[45].mxu1  ;;  %4544 = vmatprep.subr.bf16.mxu1 %v4543_v16  ;;  %v3160_v28 = vld [vmem:[#allocation10 + $0xa8] sm:$0xff] }
 0x802   : > { %2350 = vrot.lane.b32.xlu1 %v2245_v44, %s5304_s26  ;;  %4546 = vmatpush1.bf16.msra.mxu1 %v4545_v27  ;;  %v3162_v44 = vld [vmem:[#allocation10 + $0xb8] sm:$0xff]  ;;  %v3164_v16 = vld [vmem:[#allocation10 + $0xc8] sm:$0xff] }
 0x803   : > { %v4563_v17 = vpack.c.bf16 %v3162_v44, %v3160_v28  ;;  %v4567_v27 = vpack.c.bf16 %v3166_v46, %v3164_v16 }
 0x805   : > { %2296 = vrot.lane.b32.xlu0 %v6419_v36, %s5305_s27  ;;  %v3146_v36 = vld [vmem:[#allocation10 + $0x38] sm:$0xff] }
 0x806   : > { %2294 = vrot.lane.b32.xlu1 %v6421_v7, %s5305_s27  ;;  %v4547_v20 = vpack.c.bf16 %v3146_v36, %v3144_v14  ;;  %v3143_v7 = vld [vmem:[#allocation10 + $0x20] sm:$0xff]  ;;  %v4565_v36 = vpack.c.bf16 %v3161_v24, %v3159_v50 }
 0x807   : > { %v4549_v11 = vpack.c.bf16 %v3145_v49, %v3143_v7  ;;  %v2506_v7 = vmul.f32 %v6280_v32, %v6320_v41  ;;  %v2505_v49 = vmul.f32 %v6280_v32, %v6325_v18 }
 0x808   : > { %4548 = vmatprep.subr.bf16.mxu1 %v4547_v20  ;;  %v3163_v20 = vld [vmem:[#allocation10 + $0xc0] sm:$0xff] }
 0x809   : > { %2356 = vrot.lane.b32.xlu0 %v4271_v38, %s5304_s26  ;;  %4550 = vmatpush1.bf16.msra.mxu1 %v4549_v11  ;;  %v4561_v38 = vpack.c.bf16 %v3157_v19, %v3155_v60  ;;  %v7193_v11 = vld [vmem:[#allocation22_spill] sm:$0xff]  ;;  %v2483_v19 = vmul.f32 %v6303_v51, %v6325_v18 }
 0x80a   : > { %2354 = vrot.lane.b32.xlu1 %v2255_v55, %s5304_s26  ;;  %v2422_v55 = vsel %vm2387_vm5, %v2414_v35, %v5711_v33 }
 0x80b   : > { %v2440_v14 = vrot.slane %v2422_v55, 7 }
 0x80d   : > { %2328 = vrot.lane.b32.xlu0 %v6435_v61, %s5303_s18  ;;  %v4551_v61 = vpack.c.bf16 %v3150_v42, %v3148_v13  ;;  %v2459_v33 = vsel %vm2455_vm3, 0.0, %v2440_v14  ;;  %v2468_v13 = vsel %vm2455_vm3, %v2440_v14, 0.0  ;;  %v4569_v42 = vpack.c.bf16 %v3165_v48, %v3163_v20 }
 0x80e   : > { %2326 = vrot.lane.b32.xlu1 %v6437_v40, %s5303_s18  ;;  %v3149_v40 = vld [vmem:[#allocation10 + $0x50] sm:$0xff]  ;;  %v2508_v5 = vmul.f32 %v6280_v32, %v2468_v13  ;;  %v2585_v63 = vmul.f32 %v6291_v58, %v2468_v13  ;;  %v2849_v52 = vmul.f32 %v6334_v9, %v2459_v33  ;;  %v2584_v60 = vmul.f32 %v6291_v58, %v2459_v33 }
 0x80f   : > { %v4553_v29 = vpack.c.bf16 %v3149_v40, %v3147_v22  ;;  %4552 = vmatprep.subr.bf16.mxu1 %v4551_v61  ;;  %v7194_v61 = vld [vmem:[#allocation27_spill] sm:$0xff]  ;;  %v2541_v40 = vrot.slane %v2506_v7, 1  ;;  %v6678_v55 = vmul.f32 %v6344_v30, %v2459_v33  ;;  %v2755_v7 = vmul.f32 %v6317_v4, %v2459_v33 }
 0x810   : > { %v2407_v22 = vsel %vm2370_vm4, %v7194_v61, %v7193_v11  ;;  %v2621_v50 = vrot.slane %v2585_v63, 2  ;;  %v2882_v24 = vrot.slane %v2849_v52, 1  ;;  %v2620_v14 = vrot.slane %v2584_v60, 2 }
 0x811   : > { %4554 = vmatpush1.bf16.msra.mxu1 %v4553_v29  ;;  %v2415_v26 = vsel %vm786_vm2, %v2407_v22, %v6342_v8  ;;  %v2583_v29 = vmul.f32 %v6291_v58, %v6320_v41  ;;  %v2544_v8 = vrot.slane %v2508_v5, 1  ;;  %v2416_v41 = vsel %vm786_vm2, %v2408_v53, %v6460_v2 }
 0x812   : > { %4556 = vmatprep.subr.bf16.mxu1 %v4555_v37  ;;  %v2582_v37 = vmul.f32 %v6291_v58, %v6325_v18  ;;  %v2424_v2 = vsel %vm2387_vm5, %v2416_v41, %v5717_v34  ;;  %v2484_v18 = vmul.f32 %v6303_v51, %v2459_v33  ;;  %v2828_v5 = vmul.f32 %v6374_v23, %v2459_v33 }
 0x813   : > { %v2618_v35 = vrot.slane %v2583_v29, 2  ;;  %v2442_v34 = vrot.slane %v2424_v2, 7  ;;  %v2622_v15 = vsel %vm2610_vm7, %v2620_v14, %v2621_v50  ;;  %v2789_v63 = vrot.slane %v2755_v7, 2 }
 0x814   : > { %v2617_v44 = vrot.slane %v2582_v37, 2  ;;  %v2657_v37 = vmul.f32 %v6331_v54, %v2459_v33 }
 0x815   : > { %4558 = vmatpush1.bf16.msra.mxu1 %v4557_v3  ;;  %v2423_v3 = vsel %vm2387_vm5, %v2415_v26, %v5705_v31  ;;  %v2680_v31 = vmul.f32 %v6315_v47, %v2468_v13  ;;  %v2926_v26 = vmul.f32 %v6344_v30, %v2468_v13 }
 0x816   : > { %4560 = vmatprep.subr.bf16.mxu1 %v4559_v56  ;;  %v2850_v56 = vmul.f32 %v6334_v9, %v2468_v13  ;;  %v2441_v28 = vrot.slane %v2423_v3, 7  ;;  %v2619_v48 = vsel %vm2610_vm7, %v2617_v44, %v2618_v35  ;;  %v6710_v3 = vsel %vm2455_vm3, 0.0, %v2442_v34 }
 0x817   : > { %v2714_v61 = vrot.slane %v2680_v31, 1  ;;  %v2959_v2 = vrot.slane %v2926_v26, 2 }
 0x818   : > { %v2883_v46 = vrot.slane %v2850_v56, 1  ;;  %v6689_v20 = vsel %vm2455_vm3, %v2441_v28, 0.0 }
 0x819   : > { %4562 = vmatpush1.bf16.msra.mxu1 %v4561_v38  ;;  %v2756_v38 = vmul.f32 %v6317_v4, %v2468_v13  ;;  %v6713_v13 = vsel %vm2455_vm3, %v2442_v34, 0.0  ;;  %v2587_v50 = vmul.f32 %v6291_v58, %v6689_v20 }
 0x81a   : > { %4564 = vmatprep.subr.bf16.mxu1 %v4563_v17  ;;  %v6706_v10 = vsel %vm2533_vm6, %v2882_v24, %v2883_v46  ;;  %v2512_v44 = vmul.f32 %v6280_v32, %v6713_v13 }
 0x81b   : > { %v2790_v22 = vrot.slane %v2756_v38, 2 }
 0x81d   : > { %4566 = vmatpush1.bf16.msra.mxu1 %v4565_v36  ;;  %v2679_v36 = vmul.f32 %v6315_v47, %v2459_v33 }
 0x81e   : > { %4568 = vmatprep.subr.bf16.mxu1 %v4567_v27  ;;  %v6686_v27 = vsel %vm2455_vm3, 0.0, %v2441_v28 }
 0x81f   : > { %v2681_v29 = vmul.f32 %v6315_v47, %v6686_v27  ;;  %v2713_v53 = vrot.slane %v2679_v36, 1  ;;  %v2509_v41 = vmul.f32 %v6280_v32, %v6686_v27  ;;  %v2757_v35 = vmul.f32 %v6317_v4, %v6686_v27 }
 0x820   : > { %v2851_v28 = vmul.f32 %v6334_v9, %v6686_v27  ;;  %v2829_v34 = vmul.f32 %v6374_v23, %v6686_v27  ;;  %v2586_v26 = vmul.f32 %v6291_v58, %v6686_v27 }
 0x821   : > { %4570 = vmatpush1.bf16.msra.mxu1 %v4569_v42  ;;  %v2715_v38 = vsel %vm2533_vm6, %v2713_v53, %v2714_v61  ;;  %v2546_v36 = vrot.slane %v2509_v41, 1  ;;  %v2792_v7 = vrot.slane %v2757_v35, 2  ;;  %v2589_v53 = vmul.f32 %v6291_v58, %v6713_v13 }
 0x822   : > { %v2485_v41 = vmul.f32 %v6303_v51, %v6686_v27 }
 0x830   : > { %v4274_v25 = vpop.f32.mrb[46].mxu1 }
 0x831   : > { %2360 = vrot.lane.b32.xlu0 %v4274_v25, %s5304_s26  ;;  %v2265_v62 = vpop.f32.mrb[47].mxu1  ;;  %v2507_v25 = vmul.f32 %v6280_v32, %v2459_v33  ;;  %v2758_v33 = vmul.f32 %v6317_v4, %v6689_v20 }
 0x832   : > { %2358 = vrot.lane.b32.xlu1 %v2265_v62, %s5304_s26  ;;  %v2540_v62 = vrot.slane %v2505_v49, 1  ;;  %v6693_v49 = vpop.permute.xlu0 %2282  ;;  %s7211_s26 = sld [smem:[#allocation46_spill]] }
 0x833   : > { %v2543_v59 = vrot.slane %v2507_v25, 1  ;;  %v2682_v25 = vmul.f32 %v6315_v47, %v6689_v20 }
 0x834   : > { %v2542_v21 = vsel %vm2533_vm6, %v2540_v62, %v2541_v40  ;;  %v6695_v40 = vpop.permute.xlu1 %2284  ;;  %v2958_v62 = vrot.slane %v6678_v55, 2  ;;  %v2852_v55 = vmul.f32 %v6334_v9, %v6689_v20 }
 0x835   : > { %v2568_v17 = vadd.f32 %v2542_v21, %v2483_v19  ;;  %v2545_v16 = vsel %vm2533_vm6, %v2543_v59, %v2544_v8  ;;  %v2510_v59 = vmul.f32 %v6280_v32, %v6689_v20  ;;  %v2658_v21 = vmul.f32 %v6331_v54, %v6686_v27 }
 0x836   : > { %v2569_v42 = vadd.f32 %v2545_v16, %v2484_v18  ;;  %v2717_v56 = vrot.slane %v2682_v25, 1  ;;  %v6723_v60 = vpop.permute.xlu0 %2316  ;;  %v2716_v19 = vrot.slane %v2681_v29, 1  ;;  %v2791_v16 = vsel %vm2610_vm7, %v2789_v63, %v2790_v22 }
 0x837   : > { %v2645_v11 = vadd.f32 %v2619_v48, %v2568_v17  ;;  %v2511_v17 = vmul.f32 %v6280_v32, %v6710_v3  ;;  %v2547_v46 = vrot.slane %v2510_v59, 1  ;;  %v2793_v18 = vrot.slane %v2758_v33, 2 }
 0x838   : > { %v2646_v8 = vadd.f32 %v2622_v15, %v2569_v42  ;;  %v6731_v31 = vpop.permute.xlu1 %2314  ;;  %v2718_v48 = vsel %vm2533_vm6, %v2716_v19, %v2717_v56  ;;  %v2885_v42 = vrot.slane %v2851_v28, 1  ;;  %v2886_v32 = vrot.slane %v2852_v55, 1  ;;  %s7046_s27 = scalar_lea.hbm %s7211_s26, %s3842_s30 }
 0x839   : > { %v2665_v52 = vadd.f32 %v2657_v37, %v2645_v11  ;;  %v2550_v11 = vrot.slane %v2512_v44, 1  ;;  %v2549_v61 = vrot.slane %v2511_v17, 1  ;;  %v2624_v25 = vrot.slane %v2587_v50, 2 }
 0x83a   : > { %v2666_v14 = vadd.f32 %v2658_v21, %v2646_v8  ;;  %v6746_v29 = vpop.permute.xlu0 %2288  ;;  %v2960_v22 = vsel %vm2610_vm7, %v2958_v62, %v2959_v2  ;;  %v6751_v15 = vmul.f32 %v6344_v30, %v6686_v27  ;;  %v2548_v59 = vsel %vm2533_vm6, %v2546_v36, %v2547_v46 }
 0x83b   : > { %v2741_v24 = vadd.f32 %v2715_v38, %v2665_v52  ;;  %v2588_v52 = vmul.f32 %v6291_v58, %v6710_v3  ;;  %v2836_v33 = vadd.f32 %v2828_v5, %v6385_v6  ;;  %v6763_v62 = vmul.f32 %v6344_v30, %v6689_v20 }
 0x83c   : > { %v6755_v63 = vpop.permute.xlu1 %2286  ;;  %v2742_v8 = vadd.f32 %v2718_v48, %v2666_v14  ;;  %v2794_v56 = vsel %vm2610_vm7, %v2792_v7, %v2793_v18  ;;  %v2887_v19 = vsel %vm2533_vm6, %v2885_v42, %v2886_v32  ;;  %v2551_v35 = vsel %vm2533_vm6, %v2549_v61, %v2550_v11 }
 0x83d   : > { %v2817_v37 = vadd.f32 %v2791_v16, %v2741_v24  ;;  %v2623_v28 = vrot.slane %v2586_v26, 2  ;;  %v2686_v58 = vmul.f32 %v6315_v47, %v6524_v43  ;;  %v2961_v6 = vrot.slane %v6751_v15, 2 }
 0x83e   : > { %v2486_v5 = vmul.f32 %v6303_v51, %v6710_v3  ;;  %v2570_v20 = vadd.f32 %v2548_v59, %v2485_v41  ;;  %v2627_v44 = vrot.slane %v2589_v53, 2  ;;  %v2684_v27 = vmul.f32 %v6315_v47, %v6713_v13  ;;  %v6779_v17 = vpop.permute.xlu0 %2320 }
 0x83f   : > { %v2837_v21 = vadd.f32 %v2829_v34, %v2817_v37  ;;  %v2626_v38 = vrot.slane %v2588_v52, 2  ;;  %v2683_v55 = vmul.f32 %v6315_v47, %v6710_v3  ;;  %v2912_v50 = vadd.f32 %v6706_v10, %v2836_v33 }
 0x840   : > { %v2818_v2 = vadd.f32 %v2794_v56, %v2742_v8  ;;  %v2571_v16 = vadd.f32 %v2551_v35, %v2486_v5  ;;  %v6782_v46 = vpop.permute.xlu1 %2318  ;;  %v2853_v51 = vmul.f32 %v6334_v9, %v6710_v3  ;;  %v2854_v18 = vmul.f32 %v6334_v9, %v6713_v13 }
 0x841   : > { %v2913_v24 = vadd.f32 %v2887_v19, %v2837_v21  ;;  %v2685_v14 = vmul.f32 %v6315_v47, %v6521_v39  ;;  %v2625_v36 = vsel %vm2610_vm7, %v2623_v28, %v2624_v25  ;;  %v2762_v48 = vmul.f32 %v6317_v4, %v6524_v43 }
 0x842   : > { %v2760_v10 = vmul.f32 %v6317_v4, %v6713_v13  ;;  %v2647_v7 = vadd.f32 %v2625_v36, %v2570_v20  ;;  %v2659_v34 = vmul.f32 %v6331_v54, %v6710_v3  ;;  %v2723_v42 = vrot.slane %v2686_v58, 1  ;;  %v6806_v33 = vpop.permute.xlu0 %2292 }
 0x843   : > { %v2720_v11 = vrot.slane %v2684_v27, 1  ;;  %v2628_v32 = vsel %vm2610_vm7, %v2626_v38, %v2627_v44  ;;  %v2719_v61 = vrot.slane %v2683_v55, 1  ;;  %v2830_v47 = vmul.f32 %v6374_v23, %v6710_v3 }
 0x844   : > { %v2929_v26 = vmul.f32 %v6344_v30, %v6710_v3  ;;  %v2930_v25 = vmul.f32 %v6344_v30, %v6713_v13  ;;  %v2648_v37 = vadd.f32 %v2628_v32, %v2571_v16  ;;  %v2888_v53 = vrot.slane %v2853_v51, 1  ;;  %v6813_v28 = vpop.permute.xlu1 %2290 }
 0x845   : > { %v2889_v8 = vrot.slane %v2854_v18, 1  ;;  %v2722_v52 = vrot.slane %v2685_v14, 1  ;;  %v2761_v59 = vmul.f32 %v6317_v4, %v6521_v39  ;;  %v2962_v21 = vrot.slane %v6763_v62, 2  ;;  %v7197_v62 = vld [vmem:[#allocation35_spill] sm:$0xff] }
 0x846   : > { %v2660_v41 = vmul.f32 %v6331_v54, %v6521_v39  ;;  %v2667_v56 = vadd.f32 %v2659_v34, %v2647_v7  ;;  %v2759_v19 = vmul.f32 %v6317_v4, %v6710_v3  ;;  %v2799_v35 = vrot.slane %v2762_v48, 2  ;;  %v7198_v3 = vld [vmem:[#allocation36_spill] sm:$0xff] }
 0x847   : > { %v2796_v13 = vrot.slane %v2760_v10, 2  ;;  %v2988_v58 = vadd.f32 %v2960_v22, %v2912_v50  ;;  %v2721_v5 = vsel %vm2533_vm6, %v2719_v61, %v2720_v11  ;;  %v2838_v20 = vadd.f32 %v2830_v47, %v2818_v2 }
 0x848   : > { %v2964_v44 = vrot.slane %v2929_v26, 2  ;;  %v2965_v27 = vrot.slane %v2930_v25, 2  ;;  %v2668_v38 = vadd.f32 %v2660_v41, %v2648_v37  ;;  %v2372_v55 = vsel %vm2370_vm4, %v7197_v62, %v6695_v40 }
 0x849   : > { %v2890_v54 = vsel %vm2533_vm6, %v2888_v53, %v2889_v8  ;;  %v2724_v16 = vsel %vm2533_vm6, %v2722_v52, %v2723_v42  ;;  %v2798_v4 = vrot.slane %v2761_v59, 2  ;;  %v2371_v51 = vsel %vm2370_vm4, %v7198_v3, %v6693_v49  ;;  %v7199_v42 = vld [vmem:[#allocation34_spill] sm:$0xff] }
 0x84a   : > { %v2380_v22 = vsel %vm786_vm2, %v2372_v55, %v6723_v60  ;;  %v2743_v2 = vadd.f32 %v2721_v5, %v2667_v56  ;;  %v2795_v18 = vrot.slane %v2759_v19, 2  ;;  %v2379_v14 = vsel %vm786_vm2, %v2371_v51, %v6731_v31  ;;  %v7200_v19 = vld [vmem:[#allocation37_spill] sm:$0xff] }
 0x84b   : > { %v2857_v48 = vmul.f32 %v6334_v9, %v6556_v12  ;;  %v2858_v10 = vmul.f32 %v6334_v9, %v6548_v57  ;;  %v2963_v60 = vsel %vm2610_vm7, %v2961_v6, %v2962_v21  ;;  %v2744_v34 = vadd.f32 %v2724_v16, %v2668_v38 }
 0x84c   : > { %v2914_v31 = vadd.f32 %v2890_v54, %v2838_v20  ;;  %v2989_v32 = vadd.f32 %v2963_v60, %v2913_v24  ;;  %v2855_v61 = vmul.f32 %v6334_v9, %v6521_v39  ;;  %v2966_v26 = vsel %vm2610_vm7, %v2964_v44, %v2965_v27  ;;  %v7201_v20 = vld [vmem:[#allocation38_spill] sm:$0xff] }
 0x84d   : > { %v2832_v25 = vmul.f32 %v6374_v23, %v6556_v12  ;;  %v2797_v37 = vsel %vm2610_vm7, %v2795_v18, %v2796_v13  ;;  %v2856_v15 = vmul.f32 %v6334_v9, %v6524_v43  ;;  %v2800_v53 = vsel %vm2610_vm7, %v2798_v4, %v2799_v35 }
 0x84e   : > { %v2894_v8 = vrot.slane %v2857_v48, 1  ;;  %v2895_v24 = vrot.slane %v2858_v10, 1  ;;  %v2819_v52 = vadd.f32 %v2797_v37, %v2743_v2  ;;  %v2820_v59 = vadd.f32 %v2800_v53, %v2744_v34  ;;  %v7203_v10 = vld [vmem:[#allocation40_spill] sm:$0xff] }
 0x84f   : > { %v2831_v21 = vmul.f32 %v6374_v23, %v6521_v39  ;;  %v2931_v41 = vmul.f32 %v6344_v30, %v6521_v39  ;;  %v2932_v56 = vmul.f32 %v6344_v30, %v6524_v43  ;;  %v2374_v13 = vsel %vm2370_vm4, %v7200_v19, %v6746_v29  ;;  %v7204_v37 = vld [vmem:[#allocation32_spill] sm:$0xff] }
 0x850   : > { %v2933_v35 = vmul.f32 %v6344_v30, %v6556_v12  ;;  %v2891_v5 = vrot.slane %v2855_v61, 1  ;;  %v2373_v44 = vsel %vm2370_vm4, %v7201_v20, %v6755_v63  ;;  %v2382_v39 = vsel %vm786_vm2, %v2374_v13, %v6779_v17 }
 0x851   : > { %v2840_v43 = vadd.f32 %v2832_v25, %v2820_v59  ;;  %v2892_v38 = vrot.slane %v2856_v15, 1  ;;  %v2381_v29 = vsel %vm786_vm2, %v2373_v44, %v6782_v46  ;;  %v2896_v55 = vsel %vm2533_vm6, %v2894_v8, %v2895_v24 }
 0x852   : > { %v2990_v54 = vadd.f32 %v2966_v26, %v2914_v31  ;;  %v2970_v63 = vrot.slane %v2933_v35, 2  ;;  %v2967_v51 = vrot.slane %v2931_v41, 2  ;;  %v2968_v18 = vrot.slane %v2932_v56, 2 }
 0x853   : > { %v2893_v2 = vsel %vm2533_vm6, %v2891_v5, %v2892_v38  ;;  %v2834_v53 = vmul.f32 %v6374_v23, %v7204_v37  ;;  %v2937_v24 = vmul.f32 %v6344_v30, %v7204_v37  ;;  %v7206_v23 = vld [vmem:[#allocation41_spill] sm:$0xff]  ;;  %v7207_v5 = vld [vmem:[#allocation42_spill] sm:$0xff] }
 0x855   : > { %v2842_v59 = vadd.f32 %v2834_v53, %v6606_v0  ;;  %v2976_v41 = vrot.slane %v2937_v24, 2  ;;  %v5037_v53 = vld [vmem:[%s5612_s23 + $0x38] sm:$0xff] }
 0x856   : > { %v3425_v24 = vld [vmem:[#allocation11 + $0x88] sm:$0xff] }
 0x86b   : > { %v2349_v50 = vpop.permute.xlu0 %2348 }
 0x86c   : > { %v2389_v40 = vsel %vm2387_vm5, %v2380_v22, %v2349_v50  ;;  %v2347_v36 = vpop.permute.xlu1 %2346  ;;  %v2916_v50 = vadd.f32 %v2896_v55, %v2840_v43  ;;  %v3170_v55 = vld [vmem:[#allocation10 + $0xf8] sm:$0xff] }
 0x86d   : > { %v2996_v7 = vadd.f32 %v2988_v58, %v2389_v40  ;;  %v2388_v49 = vsel %vm2387_vm5, %v2379_v14, %v2347_v36  ;;  %v2934_v58 = vmul.f32 %v6344_v30, %v6548_v57  ;;  %v2839_v57 = vadd.f32 %v2831_v21, %v2819_v52  ;;  %v7202_v40 = vld [vmem:[#allocation39_spill] sm:$0xff] }
 0x86e   : > { %v2995_v11 = vadd.f32 %v7199_v42, %v2388_v49  ;;  %v2376_v36 = vsel %vm2370_vm4, %v7202_v40, %v6806_v33  ;;  %v2969_v42 = vsel %vm2610_vm7, %v2967_v51, %v2968_v18 }
 0x86f   : > { %v2325_v47 = vpop.permute.xlu0 %2324  ;;  %v2971_v3 = vrot.slane %v2934_v58, 2  ;;  %v2915_v14 = vadd.f32 %v2893_v2, %v2839_v57  ;;  %v3167_v57 = vld [vmem:[#allocation10 + $0xe0] sm:$0xff] }
 0x870   : > { %v2323_v6 = vpop.permute.xlu1 %2322  ;;  %4307 = vmatprep.mubr.f32.mxu0 %v2995_v11  ;;  %v2384_v49 = vsel %vm786_vm2, %v2376_v36, %v2325_v47  ;;  %v7205_v47 = vld [vmem:[#allocation33_spill] sm:$0xff]  ;;  %v5031_v2 = vld [vmem:[%s5612_s23 + $0x8] sm:$0xff] }
 0x871   : > { %4308 = vmatmul.mubr.f32.vlgmr.msra.gmra.mrb[32].mxu0 %v2996_v7  ;;  %v2972_v48 = vsel %vm2610_vm7, %v2970_v63, %v2971_v3  ;;  %v2375_v7 = vsel %vm2370_vm4, %v7203_v10, %v6813_v28  ;;  %v2861_v28 = vmul.f32 %v6334_v9, %v7204_v37  ;;  %v2862_v15 = vmul.f32 %v6334_v9, %v7205_v47  ;;  %v3818_v63 = vld [vmem:[%s7099_s5] ss:$0 sm:$0xff] }
 0x872   : > { %v2992_v60 = vadd.f32 %v2972_v48, %v2916_v50  ;;  %v2383_v11 = vsel %vm786_vm2, %v2375_v7, %v2323_v6  ;;  %v2938_v52 = vmul.f32 %v6344_v30, %v7205_v47  ;;  %v5032_v48 = vld [vmem:[%s5612_s23 + $0x10] sm:$0xff]  ;;  %v5033_v7 = vld [vmem:[%s5612_s23 + $0x18] sm:$0xff] }
 0x873   : > { %v2353_v27 = vpop.permute.xlu0 %2352  ;;  %v2900_v6 = vrot.slane %v2861_v28, 1  ;;  %v2901_v8 = vrot.slane %v2862_v15, 1  ;;  %v5036_v47 = vld [vmem:[%s5612_s23 + $0x30] sm:$0xff] }
 0x874   : > { %v2391_v62 = vsel %vm2387_vm5, %v2382_v39, %v2353_v27  ;;  %v2351_v12 = vpop.permute.xlu1 %2350  ;;  %v2977_v56 = vrot.slane %v2938_v52, 2 }
 0x875   : > { %v2390_v16 = vsel %vm2387_vm5, %v2381_v29, %v2351_v12  ;;  %v2998_v17 = vadd.f32 %v2990_v54, %v2391_v62  ;;  %v2902_v21 = vsel %vm2533_vm6, %v2900_v6, %v2901_v8  ;;  %v3168_v12 = vld [vmem:[#allocation10 + $0xe8] sm:$0xff]  ;;  %v3424_v8 = vld [vmem:[#allocation11 + $0x80] sm:$0xff] }
 0x876   : > { %v2997_v4 = vadd.f32 %v2989_v32, %v2390_v16  ;;  %v2991_v32 = vadd.f32 %v2969_v42, %v2915_v14  ;;  %v2918_v13 = vadd.f32 %v2902_v21, %v2842_v59  ;;  %v2978_v35 = vsel %vm2610_vm7, %v2976_v41, %v2977_v56  ;;  %v3169_v16 = vld [vmem:[#allocation10 + $0xf0] sm:$0xff]  ;;  %v3408_v59 = vld [vmem:[#allocation11] sm:$0xff]  ;;  %v3409_v21 = vld [vmem:[#allocation11 + $0x8] sm:$0xff] }
 0x877   : > { %v2297_v22 = vpop.permute.xlu0 %2296  ;;  %v4571_v54 = vpack.c.bf16 %v3170_v55, %v3168_v12  ;;  %v4575_v52 = vpack.c.bf16 %v3425_v24, %v3424_v8  ;;  %v4577_v41 = vpack.c.bf16 %v3409_v21, %v3408_v59  ;;  %v3426_v56 = vld [vmem:[#allocation11 + $0x90] sm:$0xff]  ;;  %v3433_v12 = vld [vmem:[#allocation11 + $0xc8] sm:$0xff] }
 0x878   : > { %v2295_v46 = vpop.permute.xlu1 %2294  ;;  %4310 = vmatprep.mubr.f32.mxu0 %v2997_v4  ;;  %v2378_v58 = vsel %vm2370_vm4, %v7206_v23, %v2297_v22  ;;  %v2994_v30 = vadd.f32 %v2978_v35, %v2918_v13  ;;  %v4573_v4 = vpack.c.bf16 %v3169_v16, %v3167_v57  ;;  %v5030_v22 = vld [vmem:[%s5612_s23] sm:$0xff]  ;;  %v3416_v57 = vld [vmem:[#allocation11 + $0x40] sm:$0xff] }
 0x879   : > { %4311 = vmatmul.mubr.f32.gmra.mrb[34].mxu0 %v2998_v17  ;;  %v2377_v20 = vsel %vm2370_vm4, %v7207_v5, %v2295_v46  ;;  %4572 = vmatprep.subr.bf16.mxu1 %v4571_v54  ;;  %v3411_v35 = vld [vmem:[#allocation11 + $0x18] sm:$0xff]  ;;  %v3417_v54 = vld [vmem:[#allocation11 + $0x48] sm:$0xff] }
 0x87a   : > { %4574 = vmatpush1.bf16.msra.mxu1 %v4573_v4  ;;  %4576 = vmatprep.subr.bf16.mxu0 %v4575_v52  ;;  %v4593_v16 = vpack.c.bf16 %v3417_v54, %v3416_v57  ;;  %v3434_v4 = vld [vmem:[#allocation11 + $0xd0] sm:$0xff] }
 0x87b   : > { %v2357_v34 = vpop.permute.xlu0 %2356  ;;  %4578 = vmatpush3.bf16.msra.mxu0 %v4577_v41 }
 0x87c   : > { %v2393_v31 = vsel %vm2387_vm5, %v2384_v49, %v2357_v34  ;;  %v2355_v61 = vpop.permute.xlu1 %2354 }
 0x87d   : > { %v3000_v26 = vadd.f32 %v2992_v60, %v2393_v31  ;;  %v2392_v33 = vsel %vm2387_vm5, %v2383_v11, %v2355_v61  ;;  %v5034_v31 = vld [vmem:[%s5612_s23 + $0x20] sm:$0xff]  ;;  %v5035_v61 = vld [vmem:[%s5612_s23 + $0x28] sm:$0xff] }
 0x87e   : > { %v2999_v25 = vadd.f32 %v2991_v32, %v2392_v33 }
 0x87f   : > { %v2329_v19 = vpop.permute.xlu0 %2328 }
 0x880   : > { %4313 = vmatprep.mubr.f32.mxu0 %v2999_v25  ;;  %v2327_v9 = vpop.permute.xlu1 %2326  ;;  %v2386_v44 = vsel %vm786_vm2, %v2378_v58, %v2329_v19  ;;  %v3427_v19 = vld [vmem:[#allocation11 + $0x98] sm:$0xff]  ;;  %v3429_v58 = vld [vmem:[#allocation11 + $0xa8] sm:$0xff] }
 0x881   : > { %4314 = vmatmul.mubr.f32.gmra.mrb[36].mxu0 %v3000_v26  ;;  %v2385_v0 = vsel %vm786_vm2, %v2377_v20, %v2327_v9  ;;  %v4579_v13 = vpack.c.bf16 %v3427_v19, %v3426_v56  ;;  %v3410_v9 = vld [vmem:[#allocation11 + $0x10] sm:$0xff]  ;;  %v3412_v20 = vld [vmem:[#allocation11 + $0x20] sm:$0xff] }
 0x882   : > { %v4581_v23 = vpack.c.bf16 %v3411_v35, %v3410_v9 }
 0x883   : > { %4580 = vmatprep.subr.bf16.mxu0 %v4579_v13 }
 0x884   : > { %4582 = vmatpush3.bf16.msra.mxu0 %v4581_v23 }
 0x8a3   : > { %v2361_v39 = vpop.permute.xlu0 %2360 }
 0x8a4   : > { %v2395_v27 = vsel %vm2387_vm5, %v2386_v44, %v2361_v39  ;;  %v2359_v43 = vpop.permute.xlu1 %2358  ;;  %v3413_v44 = vld [vmem:[#allocation11 + $0x28] sm:$0xff]  ;;  %v3430_v39 = vld [vmem:[#allocation11 + $0xb0] sm:$0xff] }
 0x8a5   : > { %v3002_v38 = vadd.f32 %v2994_v30, %v2395_v27  ;;  %v2394_v29 = vsel %vm2387_vm5, %v2385_v0, %v2359_v43  ;;  %v4585_v30 = vpack.c.bf16 %v3413_v44, %v3412_v20  ;;  %v3431_v0 = vld [vmem:[#allocation11 + $0xb8] sm:$0xff]  ;;  %v3414_v43 = vld [vmem:[#allocation11 + $0x30] sm:$0xff] }
 0x8a6   : > { %v3001_v62 = vadd.f32 %v6610_v1, %v2394_v29  ;;  %v4587_v27 = vpack.c.bf16 %v3431_v0, %v3430_v39 }
 0x8a8   : > { %4316 = vmatprep.mubr.f32.mxu0 %v3001_v62  ;;  %v3432_v62 = vld [vmem:[#allocation11 + $0xc0] sm:$0xff] }
 0x8a9   : > { %4317 = vmatmul.mubr.f32.gmra.mrb[38].mxu0 %v3002_v38  ;;  %v3415_v38 = vld [vmem:[#allocation11 + $0x38] sm:$0xff]  ;;  %v4591_v55 = vpack.c.bf16 %v3433_v12, %v3432_v62 }
 0x8aa   : > { %v4589_v29 = vpack.c.bf16 %v3415_v38, %v3414_v43 }
 0x944   : > { %v4309_v3 = vpop.f32.mrb[32].mxu0 }
 0x945   : > { %v3092_v51 = vpop.f32.mrb[33].mxu0  ;;  %v3098_v17 = vadd.f32 %v4309_v3, %v3818_v63 }
 0x946   : > { %v3093_v1 = vadd.f32 %v3818_v63, %v3092_v51  ;;  %v3418_v51 = vld [vmem:[#allocation11 + $0x50] sm:$0xff] }
 0x947   : > { %v6914_v18 = vadd.f32 %v5031_v2, %v3098_v17  ;;  %v3437_v2 = vld [vmem:[#allocation11 + $0xe8] sm:$0xff] }
 0x948   : > { %v6909_v50 = vadd.f32 %v5030_v22, %v3093_v1  ;;  %v3419_v1 = vld [vmem:[#allocation11 + $0x58] sm:$0xff]  ;;  %v3436_v22 = vld [vmem:[#allocation11 + $0xe0] sm:$0xff] }
 0x949   : > { %v4597_v17 = vpack.c.bf16 %v3419_v1, %v3418_v51 }
 0x94a   : > { %3248 = vmatmul.mubr.f32.vlgmr.msra.gmra.mrb[48].mxu1 %v6909_v50 }
 0x94b   : > { %3253 = vmatprep.mubr.f32.mxu1 %v7174_v45 }
 0x94c   : > { %v4312_v46 = vpop.f32.mrb[34].mxu0 }
 0x94d   : > { %v3102_v14 = vpop.f32.mrb[35].mxu0  ;;  %v3108_v36 = vadd.f32 %v4312_v46, %v3818_v63  ;;  %v4599_v46 = vpack.c.bf16 %v3437_v2, %v3436_v22 }
 0x94e   : > { %v3103_v40 = vadd.f32 %v3818_v63, %v3102_v14  ;;  %3254 = vmatmul.mubr.f32.gmra.mrb[50].mxu1 %v6914_v18  ;;  %v3420_v14 = vld [vmem:[#allocation11 + $0x60] sm:$0xff] }
 0x94f   : > { %3259 = vmatprep.mubr.f32.mxu1 %v7174_v45  ;;  %v6924_v49 = vadd.f32 %v5033_v7, %v3108_v36  ;;  %v3439_v7 = vld [vmem:[#allocation11 + $0xf8] sm:$0xff] }
 0x950   : > { %v6919_v10 = vadd.f32 %v5032_v48, %v3103_v40  ;;  %v3421_v40 = vld [vmem:[#allocation11 + $0x68] sm:$0xff]  ;;  %v3438_v48 = vld [vmem:[#allocation11 + $0xf0] sm:$0xff] }
 0x951   : > { %v4601_v36 = vpack.c.bf16 %v3421_v40, %v3420_v14 }
 0x952   : > { %3260 = vmatmul.mubr.f32.gmra.mrb[52].mxu1 %v6919_v10 }
 0x953   : > { %3265 = vmatprep.mubr.f32.mxu1 %v7174_v45 }
 0x954   : > { %v4315_v60 = vpop.f32.mrb[36].mxu0 }
 0x955   : > { %v3112_v34 = vpop.f32.mrb[37].mxu0  ;;  %v3118_v11 = vadd.f32 %v4315_v60, %v3818_v63  ;;  %v4603_v60 = vpack.c.bf16 %v3439_v7, %v3438_v48 }
 0x956   : > { %v3113_v42 = vadd.f32 %v3818_v63, %v3112_v34  ;;  %3266 = vmatmul.mubr.f32.gmra.mrb[54].mxu1 %v6924_v49  ;;  %v3422_v34 = vld [vmem:[#allocation11 + $0x70] sm:$0xff] }
 0x957   : > { %3271 = vmatprep.mubr.f32.mxu1 %v7174_v45  ;;  %v6934_v26 = vadd.f32 %v5035_v61, %v3118_v11  ;;  %v7208_v61 = vld [vmem:[#allocation19_spill] sm:$0xff] }
 0x958   : > { %v6929_v32 = vadd.f32 %v5034_v31, %v3113_v42  ;;  %v3423_v42 = vld [vmem:[#allocation11 + $0x78] sm:$0xff]  ;;  %v3171_v31 = vld [vmem:[%s7101_s7] sm:$0x3] }
 0x959   : > { %v4605_v11 = vpack.c.bf16 %v3423_v42, %v3422_v34 }
 0x95a   : > { %3272 = vmatmul.mubr.f32.gmra.mrb[56].mxu1 %v6929_v32 }
 0x95b   : > { %3277 = vmatprep.mubr.f32.mxu1 %v7174_v45 }
 0x95e   : > { %3278 = vmatmul.mubr.f32.gmra.mrb[58].mxu1 %v6934_v26 }
 0x95f   : > { %3283 = vmatprep.mubr.f32.mxu1 %v7174_v45 }
 0x97c   : > { %v4318_v33 = vpop.f32.mrb[38].mxu0 }
 0x97d   : > { %v3122_v25 = vpop.f32.mrb[39].mxu0  ;;  %v3128_v28 = vadd.f32 %v4318_v33, %v3818_v63  ;;  %v6951_v33 = vrot.slane %v3171_v31, %v7208_v61 }
 0x97e   : > { %v3123_v37 = vadd.f32 %v3818_v63, %v3122_v25  ;;  %v3435_v63 = vld [vmem:[#allocation11 + $0xd8] sm:$0xff]  ;;  %v7209_v25 = vld [vmem:[#allocation20_spill] sm:$0xff] }
 0x97f   : > { %v6944_v6 = vadd.f32 %v5037_v53, %v3128_v28  ;;  %v4595_v3 = vpack.c.bf16 %v3435_v63, %v3434_v4 }
 0x980   : > { %v6939_v15 = vadd.f32 %v5036_v47, %v3123_v37  ;;  %v6954_v37 = vrot.slane %v3171_v31, %v7209_v25 }
 0x982   : > { %3284 = vmatmul.mubr.f32.gmra.mrb[60].mxu1 %v6939_v15 }
 0x983   : > { %3289 = vmatprep.mubr.f32.mxu1 %v7174_v45  ;;  %v3428_v45 = vld [vmem:[#allocation11 + $0xa0] sm:$0xff] }
 0x984   : > { %v4583_v5 = vpack.c.bf16 %v3429_v58, %v3428_v45 }
 0x986   : > { %3290 = vmatmul.mubr.f32.gmra.mrb[62].mxu1 %v6944_v6  ;;  %4584 = vmatprep.subr.bf16.mxu0 %v4583_v5 }
 0x987   : > { %4586 = vmatpush3.bf16.msra.mxu0 %v4585_v30 }
 0x988   : > { %4588 = vmatprep.subr.bf16.mxu0 %v4587_v27 }
 0x98b   : > { %4590 = vmatpush3.bf16.msra.mxu0 %v4589_v29 }
 0x98c   : > { %4592 = vmatprep.subr.bf16.mxu0 %v4591_v55 }
 0x98f   : > { %4594 = vmatpush3.bf16.msra.mxu0 %v4593_v16 }
 0x990   : > { %4596 = vmatprep.subr.bf16.mxu0 %v4595_v3 }
 0x993   : > { %4598 = vmatpush3.bf16.msra.mxu0 %v4597_v17 }
 0x994   : > { %4600 = vmatprep.subr.bf16.mxu0 %v4599_v46 }
 0x997   : > { %4602 = vmatpush3.bf16.msra.mxu0 %v4601_v36 }
 0x998   : > { %4604 = vmatprep.subr.bf16.mxu0 %v4603_v60 }
 0x99b   : > { %4606 = vmatpush3.bf16.msra.mxu0 %v4605_v11 }
 0xa1d   : > { %v3249_v28 = vpop.f32.mrb[48].mxu1 }
 0xa1e   : > { %v6957_v47 = vadd.f32 %v3249_v28, %v6951_v33  ;;  %v3251_v53 = vpop.f32.mrb[49].mxu1 }
 0xa1f   : > { %v6960_v8 = vadd.f32 %v3251_v53, %v6954_v37 }
 0xa20   : > { %v3819_v24 = vmul.f32 -1.442695, %v6957_v47 }
 0xa21   : > { %v3820_v52 = vmul.f32 -1.442695, %v6960_v8  ;;  %v3255_v59 = vpop.f32.mrb[50].mxu1 }
 0xa22   : > { %4966 = vpow2.f32 %v3819_v24  ;;  %v6965_v21 = vadd.f32 %v3255_v59, %v6951_v33  ;;  %v3257_v41 = vpop.f32.mrb[51].mxu1 }
 0xa23   : > { %4968 = vpow2.f32 %v3820_v52  ;;  %v6968_v56 = vadd.f32 %v3257_v41, %v6954_v37 }
 0xa24   : > { %v3821_v19 = vmul.f32 -1.442695, %v6965_v21 }
 0xa25   : > { %v3822_v13 = vmul.f32 -1.442695, %v6968_v56  ;;  %v3261_v9 = vpop.f32.mrb[52].mxu1 }
 0xa26   : > { %4970 = vpow2.f32 %v3821_v19  ;;  %v6973_v35 = vadd.f32 %v3261_v9, %v6951_v33  ;;  %v3263_v23 = vpop.f32.mrb[53].mxu1 }
 0xa27   : > { %4972 = vpow2.f32 %v3822_v13  ;;  %v6976_v45 = vadd.f32 %v3263_v23, %v6954_v37 }
 0xa28   : > { %v3823_v58 = vmul.f32 -1.442695, %v6973_v35 }
 0xa29   : > { %v3824_v5 = vmul.f32 -1.442695, %v6976_v45  ;;  %v3267_v20 = vpop.f32.mrb[54].mxu1 }
 0xa2a   : > { %4974 = vpow2.f32 %v3823_v58  ;;  %v6981_v44 = vadd.f32 %v3267_v20, %v6951_v33  ;;  %v3269_v30 = vpop.f32.mrb[55].mxu1 }
 0xa2b   : > { %4976 = vpow2.f32 %v3824_v5  ;;  %v6984_v39 = vadd.f32 %v3269_v30, %v6954_v37 }
 0xa2c   : > { %v4967_v0 = vpop.eup %4966  ;;  %v3825_v27 = vmul.f32 -1.442695, %v6981_v44 }
 0xa2d   : > { %v4969_v43 = vpop.eup %4968  ;;  %v3344_v38 = vadd.f32 1.0, %v4967_v0  ;;  %v3826_v29 = vmul.f32 -1.442695, %v6984_v39  ;;  %v3273_v62 = vpop.f32.mrb[56].mxu1 }
 0xa2e   : > { %v3345_v12 = vadd.f32 1.0, %v4969_v43  ;;  %4978 = vpow2.f32 %v3825_v27  ;;  %v6989_v55 = vadd.f32 %v3273_v62, %v6951_v33  ;;  %v3275_v57 = vpop.f32.mrb[57].mxu1 }
 0xa2f   : > { %4980 = vrcp.f32 %v3344_v38  ;;  %v6992_v54 = vadd.f32 %v3275_v57, %v6954_v37 }
 0xa30   : > { %v4971_v16 = vpop.eup %4970  ;;  %4982 = vrcp.f32 %v3345_v12  ;;  %v3827_v4 = vmul.f32 -1.442695, %v6989_v55 }
 0xa31   : > { %v4973_v63 = vpop.eup %4972  ;;  %v3346_v3 = vadd.f32 1.0, %v4971_v16  ;;  %4984 = vpow2.f32 %v3826_v29  ;;  %v3828_v51 = vmul.f32 -1.442695, %v6992_v54  ;;  %v3279_v1 = vpop.f32.mrb[58].mxu1 }
 0xa32   : > { %v3347_v17 = vadd.f32 1.0, %v4973_v63  ;;  %4986 = vpow2.f32 %v3827_v4  ;;  %v6997_v22 = vadd.f32 %v3279_v1, %v6951_v33  ;;  %v3281_v2 = vpop.f32.mrb[59].mxu1 }
 0xa33   : > { %4988 = vrcp.f32 %v3346_v3  ;;  %v7000_v46 = vadd.f32 %v3281_v2, %v6954_v37 }
 0xa34   : > { %v4975_v14 = vpop.eup %4974  ;;  %4990 = vrcp.f32 %v3347_v17  ;;  %v3829_v40 = vmul.f32 -1.442695, %v6997_v22 }
 0xa35   : > { %v4977_v36 = vpop.eup %4976  ;;  %v3348_v48 = vadd.f32 1.0, %v4975_v14  ;;  %4992 = vpow2.f32 %v3828_v51  ;;  %v3830_v7 = vmul.f32 -1.442695, %v7000_v46 }
 0xa36   : > { %v3349_v60 = vadd.f32 1.0, %v4977_v36  ;;  %4994 = vpow2.f32 %v3829_v40 }
 0xa37   : > { %4996 = vrcp.f32 %v3348_v48 }
 0xa38   : > { %v4979_v34 = vpop.eup %4978  ;;  %4998 = vrcp.f32 %v3349_v60 }
 0xa39   : > { %v4981_v42 = vpop.eup %4980  ;;  %v3350_v11 = vadd.f32 1.0, %v4979_v34  ;;  %5000 = vpow2.f32 %v3830_v7 }
 0xa3a   : > { %v4983_v31 = vpop.eup %4982  ;;  %v3392_v53 = vmul.f32 %v4981_v42, %v6957_v47 }
 0xa3b   : > { %v4985_v61 = vpop.eup %4984  ;;  %v3393_v25 = vmul.f32 %v4983_v31, %v6960_v8  ;;  %5002 = vrcp.f32 %v3350_v11 }
 0xa3c   : > { %v4987_v28 = vpop.eup %4986  ;;  %v3351_v24 = vadd.f32 1.0, %v4985_v61 }
 0xa3d   : > { %v4989_v52 = vpop.eup %4988  ;;  %v3352_v59 = vadd.f32 1.0, %v4987_v28  ;;  %3511 = vmatprep.mubr.f32.mxu0 %v3393_v25 }
 0xa3e   : > { %v4991_v41 = vpop.eup %4990  ;;  %5004 = vrcp.f32 %v3351_v24  ;;  %3512 = vmatmul.mubr.f32.vlgmr.msra.gmra.mrb[40].mxu0 %v3392_v53  ;;  %v3394_v23 = vmul.f32 %v4989_v52, %v6965_v21  ;;  %v3835_v52 = vld [vmem:[%s7210_s20] ss:$0 sm:$0xff] }
 0xa3f   : > { %v4993_v19 = vpop.eup %4992  ;;  %v3395_v13 = vmul.f32 %v4991_v41, %v6968_v56  ;;  %5006 = vrcp.f32 %v3352_v59 }
 0xa40   : > { %v4995_v9 = vpop.eup %4994  ;;  %v3353_v58 = vadd.f32 1.0, %v4993_v19 }
 0xa41   : > { %v4997_v5 = vpop.eup %4996  ;;  %v3354_v8 = vadd.f32 1.0, %v4995_v9  ;;  %3516 = vmatprep.mubr.f32.mxu0 %v3395_v13 }
 0xa42   : > { %v4999_v47 = vpop.eup %4998  ;;  %5008 = vrcp.f32 %v3353_v58  ;;  %3517 = vmatmul.mubr.f32.gmra.mrb[42].mxu0 %v3394_v23  ;;  %v3396_v0 = vmul.f32 %v4997_v5, %v6973_v35 }
 0xa43   : > { %v5001_v20 = vpop.eup %5000  ;;  %v3397_v30 = vmul.f32 %v4999_v47, %v6976_v45  ;;  %5010 = vrcp.f32 %v3354_v8 }
 0xa44   : > { %v3355_v27 = vadd.f32 1.0, %v5001_v20 }
 0xa45   : > { %3521 = vmatprep.mubr.f32.mxu0 %v3397_v30  ;;  %v5003_v56 = vpop.eup %5002 }
 0xa46   : > { %5012 = vrcp.f32 %v3355_v27  ;;  %3522 = vmatmul.mubr.f32.gmra.mrb[44].mxu0 %v3396_v0  ;;  %v3398_v38 = vmul.f32 %v5003_v56, %v6981_v44 }
 0xa48   : > { %v5005_v21 = vpop.eup %5004 }
 0xa49   : > { %v3399_v43 = vmul.f32 %v5005_v21, %v6984_v39  ;;  %v5007_v29 = vpop.eup %5006 }
 0xa4a   : > { %v3400_v45 = vmul.f32 %v5007_v29, %v6989_v55 }
 0xa4b   : > { %3526 = vmatprep.mubr.f32.mxu0 %v3399_v43 }
 0xa4c   : > { %v5009_v62 = vpop.eup %5008  ;;  %3527 = vmatmul.mubr.f32.gmra.mrb[46].mxu0 %v3398_v38 }
 0xa4d   : > { %v3401_v12 = vmul.f32 %v5009_v62, %v6992_v54  ;;  %v5011_v35 = vpop.eup %5010 }
 0xa4e   : > { %v3402_v4 = vmul.f32 %v5011_v35, %v6997_v22 }
 0xa4f   : > { %3531 = vmatprep.mubr.f32.mxu0 %v3401_v12 }
 0xa50   : > { %v5013_v57 = vpop.eup %5012  ;;  %3532 = vmatmul.mubr.f32.gmra.mrb[48].mxu0 %v3400_v45 }
 0xa51   : > { %v3403_v16 = vmul.f32 %v5013_v57, %v7000_v46 }
 0xa53   : > { %3536 = vmatprep.mubr.f32.mxu0 %v3403_v16 }
 0xa54   : > { %3537 = vmatmul.mubr.f32.gmra.mrb[50].mxu0 %v3402_v4 }
 0xa55   : > { %v3285_v39 = vpop.f32.mrb[60].mxu1 }
 0xa56   : > { %v3286_v44 = vadd.f32 %v3285_v39, %v6951_v33  ;;  %v3287_v63 = vpop.f32.mrb[61].mxu1 }
 0xa57   : > { %v3288_v3 = vadd.f32 %v3287_v63, %v6954_v37 }
 0xa58   : > { %v3831_v51 = vmul.f32 -1.442695, %v3286_v44 }
 0xa59   : > { %v3832_v54 = vmul.f32 -1.442695, %v3288_v3  ;;  %v3291_v1 = vpop.f32.mrb[62].mxu1 }
 0xa5a   : > { %5014 = vpow2.f32 %v3831_v51  ;;  %v3292_v55 = vadd.f32 %v3291_v1, %v6951_v33  ;;  %v3293_v17 = vpop.f32.mrb[63].mxu1 }
 0xa5b   : > { %5016 = vpow2.f32 %v3832_v54  ;;  %v3294_v2 = vadd.f32 %v3293_v17, %v6954_v37 }
 0xa5c   : > { %v3833_v46 = vmul.f32 -1.442695, %v3292_v55 }
 0xa5d   : > { %v3834_v22 = vmul.f32 -1.442695, %v3294_v2 }
 0xa5e   : > { %5018 = vpow2.f32 %v3833_v46 }
 0xa5f   : > { %5020 = vpow2.f32 %v3834_v22 }
 0xa64   : > { %v5015_v14 = vpop.eup %5014 }
 0xa65   : > { %v5017_v40 = vpop.eup %5016  ;;  %v3356_v36 = vadd.f32 1.0, %v5015_v14 }
 0xa66   : > { %v3357_v48 = vadd.f32 1.0, %v5017_v40 }
 0xa67   : > { %5022 = vrcp.f32 %v3356_v36 }
 0xa68   : > { %v5019_v7 = vpop.eup %5018  ;;  %5024 = vrcp.f32 %v3357_v48 }
 0xa69   : > { %v5021_v60 = vpop.eup %5020  ;;  %v3358_v34 = vadd.f32 1.0, %v5019_v7 }
 0xa6a   : > { %v3359_v42 = vadd.f32 1.0, %v5021_v60 }
 0xa6b   : > { %5026 = vrcp.f32 %v3358_v34 }
 0xa6c   : > { %5028 = vrcp.f32 %v3359_v42 }
 0xa71   : > { %v5023_v33 = vpop.eup %5022 }
 0xa72   : > { %v5025_v11 = vpop.eup %5024  ;;  %v3404_v37 = vmul.f32 %v5023_v33, %v3286_v44 }
 0xa73   : > { %v3405_v31 = vmul.f32 %v5025_v11, %v3288_v3 }
 0xa75   : > { %v5027_v61 = vpop.eup %5026  ;;  %3541 = vmatprep.mubr.f32.mxu0 %v3405_v31 }
 0xa76   : > { %v5029_v25 = vpop.eup %5028  ;;  %3542 = vmatmul.mubr.f32.gmra.mrb[52].mxu0 %v3404_v37  ;;  %v3406_v53 = vmul.f32 %v5027_v61, %v3292_v55 }
 0xa77   : > { %v3407_v28 = vmul.f32 %v5029_v25, %v3294_v2 }
 0xa79   : > { %3546 = vmatprep.mubr.f32.mxu0 %v3407_v28 }
 0xa7a   : > { %3547 = vmatmul.mubr.f32.gmra.mrb[54].mxu0 %v3406_v53 }
 0xb11   : > { %v4027_v24 = vpop.f32.mrb[40].mxu0 }
 0xb12   : > { %v4028_v59 = vpop.f32.mrb[41].mxu0 }
 0xb13   : > { %v4029_v41 = vadd.f32 %v4028_v59, %v4027_v24 }
 0xb15   : > { %v3514_v19 = vadd.f32 %v4029_v41, %v3835_v52  ;;  %v4030_v13 = vpop.f32.mrb[42].mxu0 }
 0xb16   : > { %v4031_v9 = vpop.f32.mrb[43].mxu0 }
 0xb17   : > { %v3552_v23 = vadd.f32 %v3514_v19, %v6909_v50  ;;  %v4032_v58 = vadd.f32 %v4031_v9, %v4030_v13 }
 0xb19   : > { %3560 = vst [vmem:[%s7026_s12] sm:$0xff] %v3552_v23  ;;  %v3519_v5 = vadd.f32 %v4032_v58, %v3835_v52  ;;  %v4033_v8 = vpop.f32.mrb[44].mxu0 }
 0xb1a   : > { %v4034_v47 = vpop.f32.mrb[45].mxu0 }
 0xb1b   : > { %v3553_v20 = vadd.f32 %v3519_v5, %v6914_v18  ;;  %v4035_v30 = vadd.f32 %v4034_v47, %v4033_v8 }
 0xb1d   : > { %3561 = vst [vmem:[%s7026_s12 + $0x8] sm:$0xff] %v3553_v20  ;;  %v3524_v0 = vadd.f32 %v4035_v30, %v3835_v52 }
 0xb1f   : > { %v3554_v27 = vadd.f32 %v3524_v0, %v6919_v10  ;;  %v4036_v50 = vpop.f32.mrb[46].mxu0 }
 0xb20   : > { %v4037_v56 = vpop.f32.mrb[47].mxu0 }
 0xb21   : > { %3562 = vst [vmem:[%s7026_s12 + $0x10] sm:$0xff] %v3554_v27  ;;  %v4038_v21 = vadd.f32 %v4037_v56, %v4036_v50 }
 0xb23   : > { %v3529_v43 = vadd.f32 %v4038_v21, %v3835_v52  ;;  %v4039_v38 = vpop.f32.mrb[48].mxu0 }
 0xb24   : > { %v4040_v29 = vpop.f32.mrb[49].mxu0 }
 0xb25   : > { %v3555_v62 = vadd.f32 %v3529_v43, %v6924_v49  ;;  %v4041_v12 = vadd.f32 %v4040_v29, %v4039_v38 }
 0xb27   : > { %3563 = vst [vmem:[%s7026_s12 + $0x18] sm:$0xff] %v3555_v62  ;;  %v3534_v45 = vadd.f32 %v4041_v12, %v3835_v52  ;;  %v4042_v18 = vpop.f32.mrb[50].mxu0 }
 0xb28   : > { %v4043_v35 = vpop.f32.mrb[51].mxu0 }
 0xb29   : > { %v3556_v10 = vadd.f32 %v3534_v45, %v6929_v32  ;;  %v4044_v57 = vadd.f32 %v4043_v35, %v4042_v18 }
 0xb2b   : > { %3564 = vst [vmem:[%s7026_s12 + $0x20] sm:$0xff] %v3556_v10  ;;  %v3539_v16 = vadd.f32 %v4044_v57, %v3835_v52 }
 0xb2d   : > { %v3557_v4 = vadd.f32 %v3539_v16, %v6934_v26 }
 0xb2f   : > { %3565 = vst [vmem:[%s7026_s12 + $0x28] sm:$0xff] %v3557_v4 }
 0xb49   : > { %v4045_v39 = vpop.f32.mrb[52].mxu0 }
 0xb4a   : > { %v4046_v49 = vpop.f32.mrb[53].mxu0 }
 0xb4b   : > { %v4047_v44 = vadd.f32 %v4046_v49, %v4045_v39 }
 0xb4d   : > { %v3544_v63 = vadd.f32 %v4047_v44, %v3835_v52  ;;  %v4048_v3 = vpop.f32.mrb[54].mxu0 }
 0xb4e   : > { %v4049_v51 = vpop.f32.mrb[55].mxu0 }
 0xb4f   : > { %v3558_v54 = vadd.f32 %v3544_v63, %v6939_v15  ;;  %v4050_v1 = vadd.f32 %v4049_v51, %v4048_v3 }
 0xb51   : > { %3566 = vst [vmem:[%s7026_s12 + $0x30] sm:$0xff] %v3558_v54  ;;  %v3549_v32 = vadd.f32 %v4050_v1, %v3835_v52 }
 0xb53   : > { %v3559_v26 = vadd.f32 %v3549_v32, %v6944_v6 }
 0xb55   : > { %3567 = vst [vmem:[%s7026_s12 + $0x38] sm:$0xff] %v3559_v26 }
 0xb56   : > { %5221 = shalt.err (!%p5218_p8)
}
 0xb57   : > { %s5222_s25 = scalar_lea.hbm %s7046_s27, 1024  ;;  %s5226_s12 = scalar_lea.hbm %s7211_s26, 2048 }
 0xb58   : > { %p5223_p6 = scmp.ne.s32.totalorder %s7046_s27, %s5222_s25  ;;  %p5227_p3 = scmp.lt.u32.totalorder %s7046_s27, %s7211_s26 }
 0xb59   : > { %p5228_p0 = scmp.lt.u32.totalorder %s5226_s12, %s5222_s25  ;;  %p5230_p2 = scmp.lt.u32.totalorder %s5222_s25, %s7046_s27 }
 0xb5a   : > { %p5224_p9 = pnand %p5223_p6, %p7212_p7 }
 0xb5b   : > { %p5229_p5 = por %p5228_p0, %p5227_p3 }
 0xb5c   : > { %p5225_p4 = pneg %p5224_p9 }
 0xb5d   : > { %p5231_p10 = por %p5230_p2, %p5229_p5 }
 0xb5f   : > { %p5232_p1 = pnand %p5231_p10, %p5225_p4 }
 0xb61   : > { %5235 = shalt.err (!%p5232_p1)
}
 0xb62   : > { %s5307_s18 = smov 128   ;;  %s5308_s24 = smov 8  }
 0xb63   : > { %4629 = dma.vmem_to_hbm [thread:$0]  (%p7212_p7), %s7048_s10, 1024, %s7046_s27, %s3569_s22, %s5307_s18, %s5307_s18, %s5308_s24  }
 0xb64 PF: > { %s3597_s19 = sand.u32 1, %s5274_s13   ;;  %p7213_p11 = scmp.ne.s32.totalorder %s7150_s28, 0 }
 0xb65   : > { %p7214_p12 = scmp.ge.s32.totalorder %s5286_s16, 2  ;;  %s3598_s29 = scalar_lea.sflag [#allocation4], %s3597_s19 }
 0xb67   : > { %p4652_p13 = pnand %p7214_p12, %p7213_p11 }
 0xb69   : > { %5269 = dma.done.wait (!%p4652_p13), %s3598_s29, 1024  }
 0xb6a   : > { %5271 = vsyncadd (!%p4652_p13), %s3598_s29, 4294966272  ;;  %p26_p8 = scmp.ge.s32.totalorder %s5530_s11, 4   ;;  %s7215_s13 = smov %s5278_s14 }
 0xb6b   : > { %s7216_s14 = smov %s5282_s15  ;;  %s7217_s15 = smov %s5542_s4 }
 0xb6c   : > { %s7218_s16 = smov %s5530_s11  ;;  %28 = sbr.rel (!%p26_p8) target bundleno = 13 (0xd), region = 125 }
 0xb73   :  { %3603 = vsyncpa [#allocation3], 1 }
 0xb74   :  { %3605 = vsyncpa [#allocation3 + $0x1], 1 }
 0xb75   :  { %3606 = vsyncpa [#allocation6], 1 }
 0xb76   :  { %3607 = vsyncpa [#allocation9], 1 }
 0xb77   :  { %3608 = vsyncpa [#allocation12], 1 }
 0xb78   :  { %3609 = vsyncpa [#allocation4], 1 }
 0xb79   :  { %3611 = vsyncpa [#allocation4 + $0x1], 1 }

</bundles_post_ra>
